<compile_context>
chip_gen: v5e
topology: v5e:2x2
jax: 0.10.0
libtpu: 0.0.40
codegen_flags: <defaults>
</compile_context>

<pallas_src>
import jax
import jax.numpy as jnp
from jax.experimental import pallas as pl
from jax.experimental.pallas import tpu as pltpu


_UNROLL = 4  # LSTM substeps statically unrolled inside each dynamic chunk


def lstm_net_kernel(max_len_ref,                                  # (nb,)  i32  SMEM (prefetch)
                    xg_ref, lens_ref, feat_ref,                   # batch-tiled inputs
                    whh_ref, wf_ref, bf_ref, wl_ref, bl_ref,      # resident weights
                    out_ref):
    """One batch tile of the LSTMNet forward.

    xg_ref   : (T_pad, TB, 4H) bf16  pre-projected gate pre-activations x@W_ih^T + b_ih + b_hh
    lens_ref : (TB, 1)         i32   per-row valid lengths (>= 1)
    feat_ref : (TB, FP)        bf16  zero-padded additional features
    whh_ref  : (4H, 4H)        bf16  hidden->gates; only rows 3H:4H (where h lives) nonzero
    wf_ref   : (FP, 4H)        bf16  fc_features weight -> feat_x in lanes 0:H, zeros elsewhere
    bf_ref   : (1, 4H)         f32   fc_features bias (lanes 0:H)
    wl_ref   : (4H, CP)        bf16  fc_last; rows 0:H act on feat lanes, rows 3H:4H on h lanes
    bl_ref   : (1, CP)         f32   fc_last bias
    out_ref  : (TB, CP)        f32   lane-dense padded logits

    Lane layout (4H = 128 = one vreg width, PyTorch gate order [i|f|g|o]):
      gates/act lanes [0:H)=i  [H:2H)=f  [2H:3H)=g  [3H:4H)=o
      c state lives in lanes [H:2H), h state in lanes [3H:4H); all other lanes carry
      bounded don't-care values that only ever multiply zero weight rows.
    """
    T_pad, TB, G = xg_ref.shape
    H = G // 4

    whh = whh_ref[...]                                    # resident across all steps
    lens = lens_ref[...]                                  # (TB, 1) i32
    lane = jax.lax.broadcasted_iota(jnp.int32, (TB, G), 1)
    g_mask = (lane >= 2 * H) & (lane < 3 * H)             # tanh-activated gate lanes
    h_mask = lane >= 3 * H                                # lanes holding the real h

    def lstm_step(t, h, c):
        # gates = x_t @ W_ih^T + b + h_{t-1} @ W_hh^T, all four gates in one 128-lane block.
        gates = xg_ref[t].astype(jnp.float32) + jnp.dot(
            h.astype(jnp.bfloat16), whh, preferred_element_type=jnp.float32)
        # Single EUP pass for all activations: tanh(x) = 2*sigmoid(2x) - 1 on the g lanes.
        pre = jnp.where(g_mask, 2.0 * gates, gates)
        s = jax.nn.sigmoid(pre)
        act = jnp.where(g_mask, 2.0 * s - 1.0, s)                 # [i|f|g|o] activated
        # XLU rolls align the 32-lane gate sub-blocks (direction-convention safe, see header).
        prod = act * pltpu.roll(act, 2 * H, axis=1)               # lanes [0:H)&[2H:3H) = i*g
        c_new = act * c + pltpu.roll(prod, H, axis=1)             # lanes [H:2H)  = f*c + i*g
        h_new = act * pltpu.roll(jnp.tanh(c_new), 2 * H, axis=1)  # lanes [3H:4H) = o*tanh(c)
        valid = lens > t      # pack_padded_sequence: freeze h,c once t >= len[row]
        return jnp.where(valid, h_new, h), jnp.where(valid, c_new, c)

    # Serial recurrence bounded by the tile-wide max length (scalar prefetch), in chunks of
    # _UNROLL statically-unrolled substeps so EUP math can overlap the next MXU issue.
    max_len = max_len_ref[pl.program_id(0)]
    n_chunks = pl.cdiv(max_len, _UNROLL)          # steps beyond max_len are frozen for all rows

    def chunk(ci, carry):
        h, c = carry
        t0 = ci * _UNROLL
        for u in range(_UNROLL):                  # static unroll (T_pad is a multiple of it)
            h, c = lstm_step(t0 + u, h, c)
        return h, c

    h0 = jnp.zeros((TB, G), jnp.float32)
    c0 = jnp.zeros((TB, G), jnp.float32)
    h, _ = jax.lax.fori_loop(0, n_chunks, chunk, (h0, c0))
    # TODO(synk): for very long T, additionally tile the time axis as an 'arbitrary' grid
    # dimension (h/c kept in VMEM scratch) so the streamed xg block stays bounded on v7x.

    # fc_features lands in lanes [0:H) (zeros elsewhere); combine with h (lanes [3H:4H))
    # via a lane select and run a single fused fc_last matmul.
    feat_x = (jnp.dot(feat_ref[...], wf_ref[...], preferred_element_type=jnp.float32)
              + bf_ref[...])
    z = jnp.where(h_mask, h, feat_x).astype(jnp.bfloat16)
    out_ref[...] = (jnp.dot(z, wl_ref[...], preferred_element_type=jnp.float32)
                    + bl_ref[...])


def _round_up(n, m):
    return ((n + m - 1) // m) * m


def lstm_net_forward(tokens, features, params):
    """Glue (lengths, vocab-level input projection, weight re-layout) + batch-tiled pallas_call."""
    emb_table = params["word_embeddings"]                 # (V, E)
    H = params["w_hh"].shape[1]                           # PyTorch w_hh is (4H, H)
    G = 4 * H
    if G != 128:
        raise ValueError("kernel assumes hidden_dim=32 (4H == 128 lanes), got H=%d" % H)
    C = params["w_last"].shape[0]
    F = features.shape[1]
    B, T = tokens.shape

    TB = 128                                              # explicit batch tile; B > 128 gives
                                                          # >= 2 'parallel' tiles (v7x 2 TCs)
    CP = _round_up(max(C, 128), 128)                      # lane-dense output block
    FP = _round_up(max(F, 128), 128)                      # lane-dense feature block

    # ---- glue: lengths + input projection hoisted over the vocab ----
    # NOTE: lens = count of nonzero tokens assumes padding (token 0) is trailing-only,
    # consistent with the PyTorch reference.
    lens = jnp.maximum(jnp.sum((tokens != 0).astype(jnp.int32), axis=1), 1).astype(jnp.int32)

    bias = (params["b_ih"] + params["b_hh"]).astype(jnp.float32)
    proj_table = (emb_table.astype(jnp.float32) @ params["w_ih"].T.astype(jnp.float32)
                  + bias[None, :])                        # (V, 4H): embedding + W_ih fused once
    xg = proj_table[tokens]                               # (B, T, 4H) gate pre-activations
    xg = jnp.transpose(xg, (1, 0, 2))                     # (T, B, 4H) time-major

    T_pad = _round_up(T, _UNROLL)
    B_pad = _round_up(B, TB)
    nb = B_pad // TB
    xg = jnp.pad(xg, ((0, T_pad - T), (0, B_pad - B), (0, 0))).astype(jnp.bfloat16)
    lens_p = jnp.pad(lens, (0, B_pad - B), constant_values=1).reshape(B_pad, 1)
    feat_p = (jnp.zeros((B_pad, FP), jnp.float32)
              .at[:B, :F].set(features.astype(jnp.float32)).astype(jnp.bfloat16))
    max_len_tile = jnp.max(lens_p.reshape(nb, TB), axis=1).astype(jnp.int32)

    # ---- weight re-layout (see kernel docstring for the lane layout) ----
    whh_p = (jnp.zeros((G, G), jnp.float32)
             .at[3 * H:, :].set(params["w_hh"].T.astype(jnp.float32)).astype(jnp.bfloat16))
    wf_p = (jnp.zeros((FP, G), jnp.float32)
            .at[:F, :H].set(params["w_feat"].T.astype(jnp.float32)).astype(jnp.bfloat16))
    bf_p = jnp.zeros((1, G), jnp.float32).at[0, :H].set(params["b_feat"].astype(jnp.float32))
    wl_t = params["w_last"].T.astype(jnp.float32)         # (2H, C)
    wl_p = (jnp.zeros((G, CP), jnp.float32)
            .at[:H, :C].set(wl_t[H:])                     # feature part -> z lanes [0:H)
            .at[3 * H:, :C].set(wl_t[:H])                 # hidden part  -> z lanes [3H:4H)
            .astype(jnp.bfloat16))
    bl_p = jnp.zeros((1, CP), jnp.float32).at[0, :C].set(params["b_last"].astype(jnp.float32))

    # ---- scheduling hints ----
    flops = int(2 * T_pad * B_pad * G * G                 # recurrent h @ W_hh
                + 2 * B_pad * FP * G                      # fc_features
                + 2 * B_pad * G * CP)                     # fused fc_last
    transcendentals = int(2 * T_pad * B_pad * G)          # sigmoid(gates) + tanh(c) per step
    bytes_accessed = int(xg.size * 2 + feat_p.size * 2 + lens_p.size * 4 + nb * 4
                         + (whh_p.size + wf_p.size + wl_p.size) * 2
                         + (bf_p.size + bl_p.size) * 4
                         + B_pad * CP * 4)

    # VMEM budget: double-buffered per-tile blocks + resident weights, with headroom.
    block_bytes = T_pad * TB * G * 2 + TB * FP * 2 + TB * 4 + TB * CP * 4
    weight_bytes = (whh_p.size + wf_p.size + wl_p.size) * 2 + (bf_p.size + bl_p.size) * 4
    vmem_limit = int(min(100 * 1024 * 1024,
                         max(32 * 1024 * 1024, 4 * (2 * block_bytes + weight_bytes))))

    def wspec(shape):
        return pl.BlockSpec(shape, lambda i, ml: (0, 0))

    grid_spec = pltpu.PrefetchScalarGridSpec(
        num_scalar_prefetch=1,
        grid=(nb,),
        in_specs=[
            pl.BlockSpec((T_pad, TB, G), lambda i, ml: (0, i, 0)),   # xg (batch-tiled)
            pl.BlockSpec((TB, 1), lambda i, ml: (i, 0)),             # lens
            pl.BlockSpec((TB, FP), lambda i, ml: (i, 0)),            # features
            wspec((G, G)), wspec((FP, G)), wspec((1, G)),
            wspec((G, CP)), wspec((1, CP)),
        ],
        out_specs=pl.BlockSpec((TB, CP), lambda i, ml: (i, 0)),
    )

    out_p = pl.pallas_call(
        lstm_net_kernel,
        out_shape=jax.ShapeDtypeStruct((B_pad, CP), jnp.float32),
        grid_spec=grid_spec,
        compiler_params=pltpu.CompilerParams(
            dimension_semantics=("parallel",),
            vmem_limit_bytes=vmem_limit),
        cost_estimate=pl.CostEstimate(flops=flops,
                                      transcendentals=transcendentals,
                                      bytes_accessed=bytes_accessed),
    )(max_len_tile, xg, lens_p, feat_p, whh_p, wf_p, bf_p, wl_p, bl_p)

    return out_p[:B, :C]


def reference_forward(tokens, features, params):
    """Pure-JAX f32 reference mirroring the PyTorch forward (for validation)."""
    emb = params["word_embeddings"][tokens]               # (B, T, E)
    B, T, _ = emb.shape
    H = params["w_hh"].shape[1]
    lens = jnp.maximum(jnp.sum((tokens != 0).astype(jnp.int32), axis=1), 1)

    wih_t = params["w_ih"].T
    whh_t = params["w_hh"].T
    b = params["b_ih"] + params["b_hh"]

    def scan_step(carry, t):
        h, c = carry
        x_t = emb[:, t, :]
        gates = x_t @ wih_t + h @ whh_t + b
        i = jax.nn.sigmoid(gates[:, 0:H])
        f = jax.nn.sigmoid(gates[:, H:2 * H])
        g = jnp.tanh(gates[:, 2 * H:3 * H])
        o = jax.nn.sigmoid(gates[:, 3 * H:4 * H])
        c_new = f * c + i * g
        h_new = o * jnp.tanh(c_new)
        valid = (lens > t)[:, None]
        return (jnp.where(valid, h_new, h), jnp.where(valid, c_new, c)), None

    (h, _), _ = jax.lax.scan(scan_step,
                             (jnp.zeros((B, H)), jnp.zeros((B, H))),
                             jnp.arange(T))
    feat_x = features @ params["w_feat"].T + params["b_feat"]
    cat = jnp.concatenate([h, feat_x], axis=1)
    return cat @ params["w_last"].T + params["b_last"]


if __name__ == "__main__":
    VOCAB, EMB, HID = 50, 16, 32       # hidden_dim=32 is fixed by the module
    B, T = 16, 12
    ADD_FEAT, CLASSES = 4, 3

    key = jax.random.PRNGKey(0)
    ks = jax.random.split(key, 12)

    params = {
        "word_embeddings": jax.random.normal(ks[0], (VOCAB, EMB), jnp.float32) * 0.5,
        "w_ih": jax.random.normal(ks[1], (4 * HID, EMB), jnp.float32) * 0.1,
        "w_hh": jax.random.normal(ks[2], (4 * HID, HID), jnp.float32) * 0.1,
        "b_ih": jax.random.normal(ks[3], (4 * HID,), jnp.float32) * 0.1,
        "b_hh": jax.random.normal(ks[4], (4 * HID,), jnp.float32) * 0.1,
        "w_feat": jax.random.normal(ks[5], (HID, ADD_FEAT), jnp.float32) * 0.1,
        "b_feat": jax.random.normal(ks[6], (HID,), jnp.float32) * 0.1,
        "w_last": jax.random.normal(ks[7], (CLASSES, 2 * HID), jnp.float32) * 0.1,
        "b_last": jax.random.normal(ks[8], (CLASSES,), jnp.float32) * 0.1,
    }
    # padding row (index 0) set to zero, matching typical padded embedding tables
    params["word_embeddings"] = params["word_embeddings"].at[0].set(0.0)

    # tokens with variable-length padding (0 = pad)
    lengths = jax.random.randint(ks[9], (B,), 1, T + 1)
    tok_vals = jax.random.randint(ks[10], (B, T), 1, VOCAB)
    pos = jnp.arange(T)[None, :]
    tokens = jnp.where(pos < lengths[:, None], tok_vals, 0).astype(jnp.int32)

    features = jax.random.normal(ks[11], (B, ADD_FEAT), jnp.float32)

    fwd = jax.jit(lstm_net_forward)
    out = jax.block_until_ready(fwd(tokens, features, params))

    ref = reference_forward(tokens, features, params)
    assert out.shape == (B, CLASSES), out.shape
    # bf16 matmul operands / bf16-streamed gate pre-activations (f32 accumulation)
    # -> compare against the f32 reference loosely.
    max_err = float(jnp.max(jnp.abs(out - ref)))
    assert jnp.allclose(out, ref, atol=3e-2, rtol=3e-2), (max_err, out, ref)
    print("KERNEL_OK")
</pallas_src>

<mosaic_0001>
module attributes {stable_mosaic.version = 11 : i64} {
  func.func @lstm_net_kernel(%arg0: i32, %arg1: memref<1xi32, #tpu.memory_space<smem>>, %arg2: memref<12x128x128xbf16, #tpu.memory_space<vmem>>, %arg3: memref<128x1xi32, #tpu.memory_space<vmem>>, %arg4: memref<128x128xbf16, #tpu.memory_space<vmem>>, %arg5: memref<128x128xbf16, #tpu.memory_space<vmem>>, %arg6: memref<128x128xbf16, #tpu.memory_space<vmem>>, %arg7: memref<1x128xf32, #tpu.memory_space<vmem>>, %arg8: memref<128x128xbf16, #tpu.memory_space<vmem>>, %arg9: memref<1x128xf32, #tpu.memory_space<vmem>>, %arg10: memref<128x128xf32, #tpu.memory_space<vmem>>) attributes {dimension_semantics = [#tpu.dimension_semantics<parallel>], iteration_bounds = array<i64: 1>, scalar_prefetch = 1 : i64, scratch_operands = 0 : i64, tpu.core_type = #tpu.core_type<tc>, window_params = [{transform_indices = @transform_0, window_bounds = array<i64: 12, 128, 128>}, {transform_indices = @transform_1, window_bounds = array<i64: 128, 1>}, {transform_indices = @transform_2, window_bounds = array<i64: 128, 128>}, {pipeline_mode = #tpu.pipeline_mode<synchronous>, transform_indices = @transform_3, window_bounds = array<i64: 128, 128>}, {pipeline_mode = #tpu.pipeline_mode<synchronous>, transform_indices = @transform_4, window_bounds = array<i64: 128, 128>}, {pipeline_mode = #tpu.pipeline_mode<synchronous>, transform_indices = @transform_5, window_bounds = array<i64: 1, 128>}, {pipeline_mode = #tpu.pipeline_mode<synchronous>, transform_indices = @transform_6, window_bounds = array<i64: 128, 128>}, {pipeline_mode = #tpu.pipeline_mode<synchronous>, transform_indices = @transform_7, window_bounds = array<i64: 1, 128>}, {transform_indices = @transform_8, window_bounds = array<i64: 128, 128>}]} {
    %c0 = arith.constant 0 : index
    %c0_0 = arith.constant 0 : index
    %0 = vector.load %arg5[%c0, %c0_0] : memref<128x128xbf16, #tpu.memory_space<vmem>>, vector<128x128xbf16>
    %c0_1 = arith.constant 0 : index
    %c0_2 = arith.constant 0 : index
    %1 = vector.load %arg3[%c0_1, %c0_2] : memref<128x1xi32, #tpu.memory_space<vmem>>, vector<128x1xi32>
    %2 = tpu.iota {dimensions = array<i32: 1>} : vector<128x128xi32>
    %c64_i32 = arith.constant 64 : i32
    %3 = vector.broadcast %c64_i32 : i32 to vector<128x128xi32>
    %4 = arith.cmpi sge, %2, %3 : vector<128x128xi32>
    %c96_i32 = arith.constant 96 : i32
    %5 = vector.broadcast %c96_i32 : i32 to vector<128x128xi32>
    %6 = arith.cmpi slt, %2, %5 : vector<128x128xi32>
    %7 = arith.andi %4, %6 : vector<128x128xi1>
    %c96_i32_3 = arith.constant 96 : i32
    %8 = vector.broadcast %c96_i32_3 : i32 to vector<128x128xi32>
    %9 = arith.cmpi sge, %2, %8 : vector<128x128xi32>
    %10 = arith.index_cast %arg0 : i32 to index
    %11 = memref.load %arg1[%10] : memref<1xi32, #tpu.memory_space<smem>>
    %c3_i32 = arith.constant 3 : i32
    %12 = arith.addi %11, %c3_i32 : i32
    %c4_i32 = arith.constant 4 : i32
    %13 = arith.divsi %12, %c4_i32 : i32
    %cst = arith.constant 0.000000e+00 : f32
    %14 = vector.broadcast %cst : f32 to vector<128x128xf32>
    %cst_4 = arith.constant 0.000000e+00 : f32
    %15 = vector.broadcast %cst_4 : f32 to vector<128x128xf32>
    %c0_i32 = arith.constant 0 : i32
    %16 = arith.subi %13, %c0_i32 : i32
    %17 = arith.addi %c0_i32, %16 : i32
    %c1_i32 = arith.constant 1 : i32
    %18:2 = scf.for %arg11 = %c0_i32 to %17 step %c1_i32 iter_args(%arg12 = %14, %arg13 = %15) -> (vector<128x128xf32>, vector<128x128xf32>)  : i32 {
      %c4_i32_19 = arith.constant 4 : i32
      %33 = arith.muli %arg11, %c4_i32_19 : i32
      %c0_i32_20 = arith.constant 0 : i32
      %34 = arith.addi %33, %c0_i32_20 : i32
      %35 = arith.index_cast %34 : i32 to index
      %c0_21 = arith.constant 0 : index
      %c0_22 = arith.constant 0 : index
      %36 = vector.load %arg2[%35, %c0_21, %c0_22] : memref<12x128x128xbf16, #tpu.memory_space<vmem>>, vector<1x128x128xbf16>
      %37 = vector.shape_cast %36 : vector<1x128x128xbf16> to vector<128x128xbf16>
      %38 = arith.extf %37 : vector<128x128xbf16> to vector<128x128xf32>
      %39 = arith.truncf %arg12 : vector<128x128xf32> to vector<128x128xbf16>
      %cst_23 = arith.constant dense<0.000000e+00> : vector<128x128xf32>
      %40 = tpu.matmul %39, %0, %cst_23 {dimension_numbers = #tpu.dot_dimension_numbers<[1], [0], [0], [1], [0, 0, 1, 1], [], []>} : vector<128x128xbf16>, vector<128x128xbf16>, vector<128x128xf32> -> vector<128x128xf32>
      %41 = arith.addf %38, %40 : vector<128x128xf32>
      %cst_24 = arith.constant 2.000000e+00 : f32
      %42 = vector.broadcast %cst_24 : f32 to vector<128x128xf32>
      %43 = arith.mulf %42, %41 : vector<128x128xf32>
      %44 = arith.select %7, %43, %41 : vector<128x128xi1>, vector<128x128xf32>
      %45 = arith.negf %44 : vector<128x128xf32>
      %46 = math.exp %45 : vector<128x128xf32>
      %cst_25 = arith.constant 1.000000e+00 : f32
      %47 = vector.broadcast %cst_25 : f32 to vector<128x128xf32>
      %48 = arith.addf %47, %46 : vector<128x128xf32>
      %49 = arith.divf %47, %48 : vector<128x128xf32>
      %cst_26 = arith.constant 2.000000e+00 : f32
      %50 = vector.broadcast %cst_26 : f32 to vector<128x128xf32>
      %51 = arith.mulf %50, %49 : vector<128x128xf32>
      %cst_27 = arith.constant 1.000000e+00 : f32
      %52 = vector.broadcast %cst_27 : f32 to vector<128x128xf32>
      %53 = arith.subf %51, %52 : vector<128x128xf32>
      %54 = arith.select %7, %53, %49 : vector<128x128xi1>, vector<128x128xf32>
      %c64_i32_28 = arith.constant 64 : i32
      %55 = tpu.dynamic_rotate %54 by %c64_i32_28 dim 1 : vector<128x128xf32>, i32 -> vector<128x128xf32>
      %56 = arith.mulf %54, %55 : vector<128x128xf32>
      %57 = arith.mulf %54, %arg13 : vector<128x128xf32>
      %c32_i32 = arith.constant 32 : i32
      %58 = tpu.dynamic_rotate %56 by %c32_i32 dim 1 : vector<128x128xf32>, i32 -> vector<128x128xf32>
      %59 = arith.addf %57, %58 : vector<128x128xf32>
      %60 = math.tanh %59 : vector<128x128xf32>
      %c64_i32_29 = arith.constant 64 : i32
      %61 = tpu.dynamic_rotate %60 by %c64_i32_29 dim 1 : vector<128x128xf32>, i32 -> vector<128x128xf32>
      %62 = arith.mulf %54, %61 : vector<128x128xf32>
      %63 = vector.broadcast %34 : i32 to vector<128x1xi32>
      %64 = arith.cmpi sgt, %1, %63 : vector<128x1xi32>
      %65 = vector.shape_cast %64 : vector<128x1xi1> to vector<128x1xi1>
      %66 = vector.broadcast %65 : vector<128x1xi1> to vector<128x128xi1>
      %67 = arith.select %66, %62, %arg12 : vector<128x128xi1>, vector<128x128xf32>
      %68 = vector.shape_cast %64 : vector<128x1xi1> to vector<128x1xi1>
      %69 = vector.broadcast %68 : vector<128x1xi1> to vector<128x128xi1>
      %70 = arith.select %69, %59, %arg13 : vector<128x128xi1>, vector<128x128xf32>
      %c1_i32_30 = arith.constant 1 : i32
      %71 = arith.addi %33, %c1_i32_30 : i32
      %72 = arith.index_cast %71 : i32 to index
      %c0_31 = arith.constant 0 : index
      %c0_32 = arith.constant 0 : index
      %73 = vector.load %arg2[%72, %c0_31, %c0_32] : memref<12x128x128xbf16, #tpu.memory_space<vmem>>, vector<1x128x128xbf16>
      %74 = vector.shape_cast %73 : vector<1x128x128xbf16> to vector<128x128xbf16>
      %75 = arith.extf %74 : vector<128x128xbf16> to vector<128x128xf32>
      %76 = arith.truncf %67 : vector<128x128xf32> to vector<128x128xbf16>
      %cst_33 = arith.constant dense<0.000000e+00> : vector<128x128xf32>
      %77 = tpu.matmul %76, %0, %cst_33 {dimension_numbers = #tpu.dot_dimension_numbers<[1], [0], [0], [1], [0, 0, 1, 1], [], []>} : vector<128x128xbf16>, vector<128x128xbf16>, vector<128x128xf32> -> vector<128x128xf32>
      %78 = arith.addf %75, %77 : vector<128x128xf32>
      %cst_34 = arith.constant 2.000000e+00 : f32
      %79 = vector.broadcast %cst_34 : f32 to vector<128x128xf32>
      %80 = arith.mulf %79, %78 : vector<128x128xf32>
      %81 = arith.select %7, %80, %78 : vector<128x128xi1>, vector<128x128xf32>
      %82 = arith.negf %81 : vector<128x128xf32>
      %83 = math.exp %82 : vector<128x128xf32>
      %cst_35 = arith.constant 1.000000e+00 : f32
      %84 = vector.broadcast %cst_35 : f32 to vector<128x128xf32>
      %85 = arith.addf %84, %83 : vector<128x128xf32>
      %86 = arith.divf %84, %85 : vector<128x128xf32>
      %cst_36 = arith.constant 2.000000e+00 : f32
      %87 = vector.broadcast %cst_36 : f32 to vector<128x128xf32>
      %88 = arith.mulf %87, %86 : vector<128x128xf32>
      %cst_37 = arith.constant 1.000000e+00 : f32
      %89 = vector.broadcast %cst_37 : f32 to vector<128x128xf32>
      %90 = arith.subf %88, %89 : vector<128x128xf32>
      %91 = arith.select %7, %90, %86 : vector<128x128xi1>, vector<128x128xf32>
      %c64_i32_38 = arith.constant 64 : i32
      %92 = tpu.dynamic_rotate %91 by %c64_i32_38 dim 1 : vector<128x128xf32>, i32 -> vector<128x128xf32>
      %93 = arith.mulf %91, %92 : vector<128x128xf32>
      %94 = arith.mulf %91, %70 : vector<128x128xf32>
      %c32_i32_39 = arith.constant 32 : i32
      %95 = tpu.dynamic_rotate %93 by %c32_i32_39 dim 1 : vector<128x128xf32>, i32 -> vector<128x128xf32>
      %96 = arith.addf %94, %95 : vector<128x128xf32>
      %97 = math.tanh %96 : vector<128x128xf32>
      %c64_i32_40 = arith.constant 64 : i32
      %98 = tpu.dynamic_rotate %97 by %c64_i32_40 dim 1 : vector<128x128xf32>, i32 -> vector<128x128xf32>
      %99 = arith.mulf %91, %98 : vector<128x128xf32>
      %100 = vector.broadcast %71 : i32 to vector<128x1xi32>
      %101 = arith.cmpi sgt, %1, %100 : vector<128x1xi32>
      %102 = vector.shape_cast %101 : vector<128x1xi1> to vector<128x1xi1>
      %103 = vector.broadcast %102 : vector<128x1xi1> to vector<128x128xi1>
      %104 = arith.select %103, %99, %67 : vector<128x128xi1>, vector<128x128xf32>
      %105 = vector.shape_cast %101 : vector<128x1xi1> to vector<128x1xi1>
      %106 = vector.broadcast %105 : vector<128x1xi1> to vector<128x128xi1>
      %107 = arith.select %106, %96, %70 : vector<128x128xi1>, vector<128x128xf32>
      %c2_i32 = arith.constant 2 : i32
      %108 = arith.addi %33, %c2_i32 : i32
      %109 = arith.index_cast %108 : i32 to index
      %c0_41 = arith.constant 0 : index
      %c0_42 = arith.constant 0 : index
      %110 = vector.load %arg2[%109, %c0_41, %c0_42] : memref<12x128x128xbf16, #tpu.memory_space<vmem>>, vector<1x128x128xbf16>
      %111 = vector.shape_cast %110 : vector<1x128x128xbf16> to vector<128x128xbf16>
      %112 = arith.extf %111 : vector<128x128xbf16> to vector<128x128xf32>
      %113 = arith.truncf %104 : vector<128x128xf32> to vector<128x128xbf16>
      %cst_43 = arith.constant dense<0.000000e+00> : vector<128x128xf32>
      %114 = tpu.matmul %113, %0, %cst_43 {dimension_numbers = #tpu.dot_dimension_numbers<[1], [0], [0], [1], [0, 0, 1, 1], [], []>} : vector<128x128xbf16>, vector<128x128xbf16>, vector<128x128xf32> -> vector<128x128xf32>
      %115 = arith.addf %112, %114 : vector<128x128xf32>
      %cst_44 = arith.constant 2.000000e+00 : f32
      %116 = vector.broadcast %cst_44 : f32 to vector<128x128xf32>
      %117 = arith.mulf %116, %115 : vector<128x128xf32>
      %118 = arith.select %7, %117, %115 : vector<128x128xi1>, vector<128x128xf32>
      %119 = arith.negf %118 : vector<128x128xf32>
      %120 = math.exp %119 : vector<128x128xf32>
      %cst_45 = arith.constant 1.000000e+00 : f32
      %121 = vector.broadcast %cst_45 : f32 to vector<128x128xf32>
      %122 = arith.addf %121, %120 : vector<128x128xf32>
      %123 = arith.divf %121, %122 : vector<128x128xf32>
      %cst_46 = arith.constant 2.000000e+00 : f32
      %124 = vector.broadcast %cst_46 : f32 to vector<128x128xf32>
      %125 = arith.mulf %124, %123 : vector<128x128xf32>
      %cst_47 = arith.constant 1.000000e+00 : f32
      %126 = vector.broadcast %cst_47 : f32 to vector<128x128xf32>
      %127 = arith.subf %125, %126 : vector<128x128xf32>
      %128 = arith.select %7, %127, %123 : vector<128x128xi1>, vector<128x128xf32>
      %c64_i32_48 = arith.constant 64 : i32
      %129 = tpu.dynamic_rotate %128 by %c64_i32_48 dim 1 : vector<128x128xf32>, i32 -> vector<128x128xf32>
      %130 = arith.mulf %128, %129 : vector<128x128xf32>
      %131 = arith.mulf %128, %107 : vector<128x128xf32>
      %c32_i32_49 = arith.constant 32 : i32
      %132 = tpu.dynamic_rotate %130 by %c32_i32_49 dim 1 : vector<128x128xf32>, i32 -> vector<128x128xf32>
      %133 = arith.addf %131, %132 : vector<128x128xf32>
      %134 = math.tanh %133 : vector<128x128xf32>
      %c64_i32_50 = arith.constant 64 : i32
      %135 = tpu.dynamic_rotate %134 by %c64_i32_50 dim 1 : vector<128x128xf32>, i32 -> vector<128x128xf32>
      %136 = arith.mulf %128, %135 : vector<128x128xf32>
      %137 = vector.broadcast %108 : i32 to vector<128x1xi32>
      %138 = arith.cmpi sgt, %1, %137 : vector<128x1xi32>
      %139 = vector.shape_cast %138 : vector<128x1xi1> to vector<128x1xi1>
      %140 = vector.broadcast %139 : vector<128x1xi1> to vector<128x128xi1>
      %141 = arith.select %140, %136, %104 : vector<128x128xi1>, vector<128x128xf32>
      %142 = vector.shape_cast %138 : vector<128x1xi1> to vector<128x1xi1>
      %143 = vector.broadcast %142 : vector<128x1xi1> to vector<128x128xi1>
      %144 = arith.select %143, %133, %107 : vector<128x128xi1>, vector<128x128xf32>
      %c3_i32_51 = arith.constant 3 : i32
      %145 = arith.addi %33, %c3_i32_51 : i32
      %146 = arith.index_cast %145 : i32 to index
      %c0_52 = arith.constant 0 : index
      %c0_53 = arith.constant 0 : index
      %147 = vector.load %arg2[%146, %c0_52, %c0_53] : memref<12x128x128xbf16, #tpu.memory_space<vmem>>, vector<1x128x128xbf16>
      %148 = vector.shape_cast %147 : vector<1x128x128xbf16> to vector<128x128xbf16>
      %149 = arith.extf %148 : vector<128x128xbf16> to vector<128x128xf32>
      %150 = arith.truncf %141 : vector<128x128xf32> to vector<128x128xbf16>
      %cst_54 = arith.constant dense<0.000000e+00> : vector<128x128xf32>
      %151 = tpu.matmul %150, %0, %cst_54 {dimension_numbers = #tpu.dot_dimension_numbers<[1], [0], [0], [1], [0, 0, 1, 1], [], []>} : vector<128x128xbf16>, vector<128x128xbf16>, vector<128x128xf32> -> vector<128x128xf32>
      %152 = arith.addf %149, %151 : vector<128x128xf32>
      %cst_55 = arith.constant 2.000000e+00 : f32
      %153 = vector.broadcast %cst_55 : f32 to vector<128x128xf32>
      %154 = arith.mulf %153, %152 : vector<128x128xf32>
      %155 = arith.select %7, %154, %152 : vector<128x128xi1>, vector<128x128xf32>
      %156 = arith.negf %155 : vector<128x128xf32>
      %157 = math.exp %156 : vector<128x128xf32>
      %cst_56 = arith.constant 1.000000e+00 : f32
      %158 = vector.broadcast %cst_56 : f32 to vector<128x128xf32>
      %159 = arith.addf %158, %157 : vector<128x128xf32>
      %160 = arith.divf %158, %159 : vector<128x128xf32>
      %cst_57 = arith.constant 2.000000e+00 : f32
      %161 = vector.broadcast %cst_57 : f32 to vector<128x128xf32>
      %162 = arith.mulf %161, %160 : vector<128x128xf32>
      %cst_58 = arith.constant 1.000000e+00 : f32
      %163 = vector.broadcast %cst_58 : f32 to vector<128x128xf32>
      %164 = arith.subf %162, %163 : vector<128x128xf32>
      %165 = arith.select %7, %164, %160 : vector<128x128xi1>, vector<128x128xf32>
      %c64_i32_59 = arith.constant 64 : i32
      %166 = tpu.dynamic_rotate %165 by %c64_i32_59 dim 1 : vector<128x128xf32>, i32 -> vector<128x128xf32>
      %167 = arith.mulf %165, %166 : vector<128x128xf32>
      %168 = arith.mulf %165, %144 : vector<128x128xf32>
      %c32_i32_60 = arith.constant 32 : i32
      %169 = tpu.dynamic_rotate %167 by %c32_i32_60 dim 1 : vector<128x128xf32>, i32 -> vector<128x128xf32>
      %170 = arith.addf %168, %169 : vector<128x128xf32>
      %171 = math.tanh %170 : vector<128x128xf32>
      %c64_i32_61 = arith.constant 64 : i32
      %172 = tpu.dynamic_rotate %171 by %c64_i32_61 dim 1 : vector<128x128xf32>, i32 -> vector<128x128xf32>
      %173 = arith.mulf %165, %172 : vector<128x128xf32>
      %174 = vector.broadcast %145 : i32 to vector<128x1xi32>
      %175 = arith.cmpi sgt, %1, %174 : vector<128x1xi32>
      %176 = vector.shape_cast %175 : vector<128x1xi1> to vector<128x1xi1>
      %177 = vector.broadcast %176 : vector<128x1xi1> to vector<128x128xi1>
      %178 = arith.select %177, %173, %141 : vector<128x128xi1>, vector<128x128xf32>
      %179 = vector.shape_cast %175 : vector<128x1xi1> to vector<128x1xi1>
      %180 = vector.broadcast %179 : vector<128x1xi1> to vector<128x128xi1>
      %181 = arith.select %180, %170, %144 : vector<128x128xi1>, vector<128x128xf32>
      scf.yield %178, %181 : vector<128x128xf32>, vector<128x128xf32>
    }
    %c0_5 = arith.constant 0 : index
    %c0_6 = arith.constant 0 : index
    %19 = vector.load %arg4[%c0_5, %c0_6] : memref<128x128xbf16, #tpu.memory_space<vmem>>, vector<128x128xbf16>
    %c0_7 = arith.constant 0 : index
    %c0_8 = arith.constant 0 : index
    %20 = vector.load %arg6[%c0_7, %c0_8] : memref<128x128xbf16, #tpu.memory_space<vmem>>, vector<128x128xbf16>
    %cst_9 = arith.constant dense<0.000000e+00> : vector<128x128xf32>
    %21 = tpu.matmul %19, %20, %cst_9 {dimension_numbers = #tpu.dot_dimension_numbers<[1], [0], [0], [1], [0, 0, 1, 1], [], []>} : vector<128x128xbf16>, vector<128x128xbf16>, vector<128x128xf32> -> vector<128x128xf32>
    %c0_10 = arith.constant 0 : index
    %c0_11 = arith.constant 0 : index
    %22 = vector.load %arg7[%c0_10, %c0_11] : memref<1x128xf32, #tpu.memory_space<vmem>>, vector<1x128xf32>
    %23 = vector.broadcast %22 : vector<1x128xf32> to vector<128x128xf32>
    %24 = arith.addf %21, %23 : vector<128x128xf32>
    %25 = arith.select %9, %18#0, %24 : vector<128x128xi1>, vector<128x128xf32>
    %26 = arith.truncf %25 : vector<128x128xf32> to vector<128x128xbf16>
    %c0_12 = arith.constant 0 : index
    %c0_13 = arith.constant 0 : index
    %27 = vector.load %arg8[%c0_12, %c0_13] : memref<128x128xbf16, #tpu.memory_space<vmem>>, vector<128x128xbf16>
    %cst_14 = arith.constant dense<0.000000e+00> : vector<128x128xf32>
    %28 = tpu.matmul %26, %27, %cst_14 {dimension_numbers = #tpu.dot_dimension_numbers<[1], [0], [0], [1], [0, 0, 1, 1], [], []>} : vector<128x128xbf16>, vector<128x128xbf16>, vector<128x128xf32> -> vector<128x128xf32>
    %c0_15 = arith.constant 0 : index
    %c0_16 = arith.constant 0 : index
    %29 = vector.load %arg9[%c0_15, %c0_16] : memref<1x128xf32, #tpu.memory_space<vmem>>, vector<1x128xf32>
    %30 = vector.broadcast %29 : vector<1x128xf32> to vector<128x128xf32>
    %31 = arith.addf %28, %30 : vector<128x128xf32>
    %c0_17 = arith.constant 0 : index
    %c0_18 = arith.constant 0 : index
    %32 = vector.load %arg10[%c0_17, %c0_18] : memref<128x128xf32, #tpu.memory_space<vmem>>, vector<128x128xf32>
    tpu.vector_store %arg10[%c0_17, %c0_18], %31 {strides = array<i32>} : memref<128x128xf32, #tpu.memory_space<vmem>>, vector<128x128xf32>,
    return
  }
  func.func @transform_0(%arg0: i32, %arg1: memref<1xi32, #tpu.memory_space<smem>>) -> (i32, i32, i32) {
    %c0_i32 = arith.constant 0 : i32
    %c0_i32_0 = arith.constant 0 : i32
    %c0_i32_1 = arith.constant 0 : i32
    return %c0_i32, %arg0, %c0_i32_0 : i32, i32, i32
  }
  func.func @transform_1(%arg0: i32, %arg1: memref<1xi32, #tpu.memory_space<smem>>) -> (i32, i32) {
    %c0_i32 = arith.constant 0 : i32
    %c0_i32_0 = arith.constant 0 : i32
    return %arg0, %c0_i32 : i32, i32
  }
  func.func @transform_2(%arg0: i32, %arg1: memref<1xi32, #tpu.memory_space<smem>>) -> (i32, i32) {
    %c0_i32 = arith.constant 0 : i32
    %c0_i32_0 = arith.constant 0 : i32
    return %arg0, %c0_i32 : i32, i32
  }
  func.func @transform_3(%arg0: i32, %arg1: memref<1xi32, #tpu.memory_space<smem>>) -> (i32, i32) {
    %c0_i32 = arith.constant 0 : i32
    %c0_i32_0 = arith.constant 0 : i32
    %c0_i32_1 = arith.constant 0 : i32
    return %c0_i32, %c0_i32_0 : i32, i32
  }
  func.func @transform_4(%arg0: i32, %arg1: memref<1xi32, #tpu.memory_space<smem>>) -> (i32, i32) {
    %c0_i32 = arith.constant 0 : i32
    %c0_i32_0 = arith.constant 0 : i32
    %c0_i32_1 = arith.constant 0 : i32
    return %c0_i32, %c0_i32_0 : i32, i32
  }
  func.func @transform_5(%arg0: i32, %arg1: memref<1xi32, #tpu.memory_space<smem>>) -> (i32, i32) {
    %c0_i32 = arith.constant 0 : i32
    %c0_i32_0 = arith.constant 0 : i32
    %c0_i32_1 = arith.constant 0 : i32
    return %c0_i32, %c0_i32_0 : i32, i32
  }
  func.func @transform_6(%arg0: i32, %arg1: memref<1xi32, #tpu.memory_space<smem>>) -> (i32, i32) {
    %c0_i32 = arith.constant 0 : i32
    %c0_i32_0 = arith.constant 0 : i32
    %c0_i32_1 = arith.constant 0 : i32
    return %c0_i32, %c0_i32_0 : i32, i32
  }
  func.func @transform_7(%arg0: i32, %arg1: memref<1xi32, #tpu.memory_space<smem>>) -> (i32, i32) {
    %c0_i32 = arith.constant 0 : i32
    %c0_i32_0 = arith.constant 0 : i32
    %c0_i32_1 = arith.constant 0 : i32
    return %c0_i32, %c0_i32_0 : i32, i32
  }
  func.func @transform_8(%arg0: i32, %arg1: memref<1xi32, #tpu.memory_space<smem>>) -> (i32, i32) {
    %c0_i32 = arith.constant 0 : i32
    %c0_i32_0 = arith.constant 0 : i32
    return %arg0, %c0_i32 : i32, i32
  }
}

</mosaic_0001>

<bundles_post_ra>
// kernel: lstm_net_forward.1
= control target key start
LH: loop header
LB: loop body
LE: loop exit
PB: predicated region body
PF: predicated region fallthrough
CT: control target
= control target key end

     0   :  { %v63_v6 = vlaneseq  ;;  %v5744_v35 = vmov 0.0   ;;  %v5746_v36 = vmov 0.0   ;;  %v5748_v37 = vmov 0.0   ;;  %s8553_s1 = inlined_call_operand.vmem [shape: bf16[12,128,128], index: 1, kind: input, shape index: {}]   ;;  %s8554_s3 = inlined_call_operand.vmem [shape: bf16[128,128], index: 3, kind: input, shape index: {}]   ;;  %s8555_s4 = inlined_call_operand.vmem [shape: bf16[128,128], index: 4, kind: input, shape index: {}]   ;;  %s8556_s5 = inlined_call_operand.vmem [shape: bf16[128,128], index: 5, kind: input, shape index: {}]   ;;  %s8557_s6 = inlined_call_operand.vmem [shape: f32[1,128], index: 6, kind: input, shape index: {}]   ;;  %s8558_s7 = inlined_call_operand.vmem [shape: bf16[128,128], index: 7, kind: input, shape index: {}]   ;;  %s8559_s8 = inlined_call_operand.vmem [shape: f32[1,128], index: 8, kind: input, shape index: {}]   ;;  %s8560_s9 = inlined_call_operand.vmem [shape: f32[128,128], index: 9, kind: output, shape index: {}]   ;;  %s8561_s0 = inlined_call_operand.<no memory space> [shape: s32[1], index: 0, kind: input, shape index: {}]   ;;  %s8562_s2 = inlined_call_operand.vmem [shape: s32[128,1], index: 2, kind: input, shape index: {}]  }
   0x1   :  { %v5571_v0 = vld [vmem:[%s8555_s4] sm:$0xf]  ;;  %v5576_v1 = vld [vmem:[%s8555_s4] sm:$0xf0]  ;;  %v5581_v2 = vld [vmem:[%s8555_s4 + $0x8] sm:$0xf] }
   0x2   :  { %8732 = vst [vmem:[#allocation4_spill] sm:$0xff] %v5571_v0  ;;  %v5586_v3 = vld [vmem:[%s8555_s4 + $0x8] sm:$0xf0]  ;;  %v5591_v4 = vld [vmem:[%s8555_s4 + $0x10] sm:$0xf]  ;;  %v5651_v17 = vld [vmem:[%s8562_s2] sm:$0xff] }
   0x3   :  { %8733 = vst [vmem:[#allocation5_spill] sm:$0xff] %v5576_v1  ;;  %v5596_v5 = vld [vmem:[%s8555_s4 + $0x10] sm:$0xf0]  ;;  %v5601_v7 = vld [vmem:[%s8555_s4 + $0x18] sm:$0xf]  ;;  %v5656_v18 = vld [vmem:[%s8562_s2 + $0x8] sm:$0xff] }
   0x4   :  { %8734 = vst [vmem:[#allocation6_spill] sm:$0xff] %v5581_v2  ;;  %v5606_v8 = vld [vmem:[%s8555_s4 + $0x18] sm:$0xf0]  ;;  %v5611_v9 = vld [vmem:[%s8555_s4 + $0x20] sm:$0xf]  ;;  %v5658_v19 = vand.u32 127, %v63_v6 }
   0x5   :  { %8735 = vst [vmem:[#allocation7_spill] sm:$0xff] %v5586_v3  ;;  %v5616_v10 = vld [vmem:[%s8555_s4 + $0x20] sm:$0xf0]  ;;  %v5621_v11 = vld [vmem:[%s8555_s4 + $0x28] sm:$0xf]  ;;  %s70_s26 = sadd.s32 3, %s8561_s0 }
   0x6   :  { %8736 = vst [vmem:[#allocation8_spill] sm:$0xff] %v5591_v4  ;;  %v5626_v12 = vld [vmem:[%s8555_s4 + $0x28] sm:$0xf0]  ;;  %v5631_v13 = vld [vmem:[%s8555_s4 + $0x30] sm:$0xf]  ;;  %v5671_v21 = vld [vmem:[%s8562_s2 + $0x18] sm:$0xff] }
   0x7   :  { %8737 = vst [vmem:[#allocation9_spill] sm:$0xff] %v5596_v5  ;;  %v5636_v14 = vld [vmem:[%s8555_s4 + $0x30] sm:$0xf0]  ;;  %v5641_v15 = vld [vmem:[%s8555_s4 + $0x38] sm:$0xf]  ;;  %v5676_v22 = vld [vmem:[%s8562_s2 + $0x20] sm:$0xff] }
   0x8   :  { %8738 = vst [vmem:[#allocation10_spill] sm:$0xff] %v5601_v7  ;;  %v5646_v16 = vld [vmem:[%s8555_s4 + $0x38] sm:$0xf0]  ;;  %v5666_v20 = vld [vmem:[%s8562_s2 + $0x10] sm:$0xff]  ;;  %p71_p0 = scmp.lt.s32.totalorder %s70_s26, 0  ;;  %s72_s11 = ssub.s32 0, %s70_s26 }
   0x9   :  { %8739 = vst [vmem:[#allocation11_spill] sm:$0xff] %v5606_v8  ;;  %v5681_v23 = vld [vmem:[%s8562_s2 + $0x28] sm:$0xff]  ;;  %v5686_v24 = vld [vmem:[%s8562_s2 + $0x30] sm:$0xff]  ;;  %v5691_v25 = vld [vmem:[%s8562_s2 + $0x38] sm:$0xff]  ;;  %vm65_vm0 = vcmp.ge.s32.totalorder %v5658_v19, 64  ;;  %vm66_vm1 = vcmp.lt.s32.totalorder %v5658_v19, 96  ;;  %s3812_s17 = smin.u32 %s72_s11, %s70_s26 }
   0xa   :  { %8740 = vst [vmem:[#allocation12_spill] sm:$0xff] %v5611_v9  ;;  %v5699_v26 = vld [vmem:[%s8562_s2 + $0x40] sm:$0xff]  ;;  %v5704_v27 = vld [vmem:[%s8562_s2 + $0x48] sm:$0xff]  ;;  %v5709_v28 = vld [vmem:[%s8562_s2 + $0x50] sm:$0xff]  ;;  %s74_s24 = sshrl.u32 %s3812_s17, 2  ;;  %v5750_v38 = vmov 0.0  }
   0xb   :  { %8741 = vst [vmem:[#allocation13_spill] sm:$0xff] %v5616_v10  ;;  %v5714_v29 = vld [vmem:[%s8562_s2 + $0x58] sm:$0xff]  ;;  %v5719_v30 = vld [vmem:[%s8562_s2 + $0x60] sm:$0xff]  ;;  %v5724_v31 = vld [vmem:[%s8562_s2 + $0x68] sm:$0xff]  ;;  %s75_s10 = ssub.s32 0, %s74_s24  ;;  %v5752_v39 = vmov 0.0  }
   0xc   :  { %8742 = vst [vmem:[#allocation14_spill] sm:$0xff] %v5621_v11  ;;  %v5729_v32 = vld [vmem:[%s8562_s2 + $0x70] sm:$0xff]  ;;  %v5734_v33 = vld [vmem:[%s8562_s2 + $0x78] sm:$0xff]  ;;  %vm5736_vm3 = vmand %vm65_vm0, %vm66_vm1  ;;  %s9200_s10 = smov (!%p71_p0, %s75_s10), %s74_s24  ;;  %v5754_v40 = vmov 0.0   ;;  %v5756_v41 = vmov 0.0   ;;  %v5758_v42 = vmov 0.0  }
   0xd   :  { %8743 = vst [vmem:[#allocation15_spill] sm:$0xff] %v5626_v12  ;;  %p3813_p1 = scmp.le.s32.totalorder %s9200_s10, 0  ;;  %v5760_v43 = vmov 0.0   ;;  %v5762_v44 = vmov 0.0   ;;  %v5764_v45 = vmov 0.0   ;;  %v5766_v46 = vmov 0.0  }
   0xe   :  { %8744 = vst [vmem:[#allocation16_spill] sm:$0xff] %v5631_v13  ;;  %v5768_v47 = vmov 0.0   ;;  %v5770_v48 = vmov 0.0   ;;  %v5772_v49 = vmov 0.0   ;;  %v5774_v50 = vmov 0.0   ;;  %s5842_s2 = smov (!%p3813_p1), 0  }
   0xf   :  { %8745 = vst [vmem:[#allocation17_spill] sm:$0xff] %v5636_v14 }
  0x10   :  { %8746 = vst [vmem:[#allocation18_spill] sm:$0xff] %v5641_v15 }
  0x11   :  { %8747 = vst [vmem:[#allocation19_spill] sm:$0xff] %v5646_v16 }
  0x12   :  { %8748 = vst [vmem:[#allocation20_spill] sm:$0xff] %v5651_v17 }
  0x13   :  { %8749 = vst [vmem:[#allocation21_spill] sm:$0xff] %v5656_v18 }
  0x14   :  { %8750 = vst [vmem:[#allocation22_spill] sm:$0xff] %v5658_v19 }
  0x15   :  { %8751 = vst [vmem:[#allocation23_spill] sm:$0xff] %v5666_v20 }
  0x16   :  { %8752 = vst [vmem:[#allocation24_spill] sm:$0xff] %v5671_v21 }
  0x17   :  { %8753 = vst [vmem:[#allocation25_spill] sm:$0xff] %v5676_v22 }
  0x18   :  { %8754 = vst [vmem:[#allocation26_spill] sm:$0xff] %v5681_v23 }
  0x19   :  { %8755 = vst [vmem:[#allocation27_spill] sm:$0xff] %v5686_v24 }
  0x1a   :  { %8756 = vst [vmem:[#allocation28_spill] sm:$0xff] %v5691_v25 }
  0x1b   :  { %8757 = vst [vmem:[#allocation29_spill] sm:$0xff] %v5699_v26 }
  0x1c   :  { %8758 = vst [vmem:[#allocation30_spill] sm:$0xff] %v5704_v27 }
  0x1d   :  { %8759 = vst [vmem:[#allocation31_spill] sm:$0xff] %v5709_v28 }
  0x1e   :  { %8760 = vst [vmem:[#allocation32_spill] sm:$0xff] %v5714_v29  ;;  %3745 = sbr.rel (%p3813_p1) target bundleno = 2483 (0x9b3), region = 57 }
  0x1f   :  { %8761 = vst [vmem:[#allocation33_spill] sm:$0xff] %v5719_v30 }
  0x20   :  { %8762 = vst [vmem:[#allocation34_spill] sm:$0xff] %v5724_v31 }
  0x21   :  { %8763 = vst [vmem:[#allocation35_spill] sm:$0xff] %v5729_v32 }
  0x22   :  { %8764 = vst [vmem:[#allocation36_spill] sm:$0xff] %v5734_v33 }
  0x23   :  { %v5778_v51 = vmov 0.0   ;;  %v5780_v52 = vmov 0.0   ;;  %v5782_v53 = vmov 0.0   ;;  %v5784_v54 = vmov 0.0  }
  0x24   :  { %v5786_v55 = vmov 0.0   ;;  %v5788_v56 = vmov 0.0   ;;  %v5790_v57 = vmov 0.0   ;;  %v5792_v58 = vmov 0.0  }
  0x25   :  { %v5794_v59 = vmov 0.0   ;;  %v5796_v60 = vmov 0.0   ;;  %v5798_v61 = vmov 0.0   ;;  %v5800_v62 = vmov 0.0  }
  0x26   :  { %v5802_v63 = vmov 0.0   ;;  %v5804_v6 = vmov 0.0   ;;  %v5806_v35 = vmov 0.0   ;;  %v5808_v36 = vmov 0.0  }
  0x27   :  { %v5810_v37 = vmov 0.0   ;;  %v5812_v38 = vmov 0.0   ;;  %v5814_v39 = vmov 0.0   ;;  %v5816_v40 = vmov 0.0  }
  0x28   :  { %v5818_v41 = vmov 0.0   ;;  %v5820_v42 = vmov 0.0   ;;  %v5822_v43 = vmov 0.0   ;;  %v5824_v44 = vmov 0.0  }
  0x29   :  { %v5826_v45 = vmov 0.0   ;;  %v5828_v46 = vmov 0.0   ;;  %v5830_v47 = vmov 0.0   ;;  %v5832_v48 = vmov 0.0  }
  0x2a   :  { %v5834_v49 = vmov 0.0   ;;  %v5836_v50 = vmov 0.0   ;;  %v5838_v19 = vmov 0.0   ;;  %v5840_v33 = vmov 0.0  }
  0x2b LB: > { %v8767_v23 = vld [vmem:[#allocation26_spill] sm:$0xff]  ;;  %v8768_v22 = vld [vmem:[#allocation25_spill] sm:$0xff]  ;;  %v8769_v20 = vld [vmem:[#allocation23_spill] sm:$0xff]  ;;  %8771 = vst [vmem:[#allocation37_spill] sm:$0xff] %v5321_v51  ;;  %s4136_s26 = sshll.u32 %s5449_s2, 8  ;;  %s5515_s17 = smov 64   ;;  %v5333_v54 = vphi %v5784_v54, %v9144_v54   ;;  %v5329_v53 = vphi %v5782_v53, %v3352_v53   ;;  %v5325_v52 = vphi %v5780_v52, %v3353_v52   ;;  %v5321_v51 = vphi %v5778_v51, %v3354_v51   ;;  %s5449_s2 = sphi %s5842_s2, %s9165_s2   ;;  %v5445_v33 = vphi %v5840_v33, %v9164_v33   ;;  %v5441_v19 = vphi %v5838_v19, %v9163_v19   ;;  %v5437_v50 = vphi %v5836_v50, %v9162_v50   ;;  %v5433_v49 = vphi %v5834_v49, %v9161_v49   ;;  %v5429_v48 = vphi %v5832_v48, %v9160_v48   ;;  %v5425_v47 = vphi %v5830_v47, %v9159_v47   ;;  %v5421_v46 = vphi %v5828_v46, %v9158_v46   ;;  %v5417_v45 = vphi %v5826_v45, %v9157_v45   ;;  %v5413_v44 = vphi %v5824_v44, %v9156_v44   ;;  %v5409_v43 = vphi %v5822_v43, %v9155_v43   ;;  %v5405_v42 = vphi %v5820_v42, %v9154_v42   ;;  %v5401_v41 = vphi %v5818_v41, %v9153_v41   ;;  %v5397_v40 = vphi %v5816_v40, %v9152_v40   ;;  %v5393_v39 = vphi %v5814_v39, %v9151_v39   ;;  %v5389_v38 = vphi %v5812_v38, %v9150_v38   ;;  %v5385_v37 = vphi %v5810_v37, %v9149_v37   ;;  %v5381_v36 = vphi %v5808_v36, %v9148_v36   ;;  %v5377_v35 = vphi %v5806_v35, %v7981_v35   ;;  %v5373_v6 = vphi %v5804_v6, %v9147_v6   ;;  %v5369_v63 = vphi %v5802_v63, %v9146_v63   ;;  %v5365_v62 = vphi %v5800_v62, %v8005_v62   ;;  %v5361_v61 = vphi %v5798_v61, %v8022_v61   ;;  %v5357_v60 = vphi %v5796_v60, %v7952_v60   ;;  %v5353_v59 = vphi %v5794_v59, %v9145_v59   ;;  %v5349_v58 = vphi %v5792_v58, %v8046_v58   ;;  %v5345_v57 = vphi %v5790_v57, %v7964_v57   ;;  %v5341_v56 = vphi %v5788_v56, %v8114_v56   ;;  %v5337_v55 = vphi %v5786_v55, %v8077_v55  }
  0x2c   : > { %v8770_v21 = vld [vmem:[#allocation24_spill] sm:$0xff]  ;;  %8772 = vst [vmem:[#allocation38_spill] sm:$0xff] %v5325_v52  ;;  %v8791_v15 = vld [vmem:[#allocation18_spill] sm:$0xff]  ;;  %v8792_v16 = vld [vmem:[#allocation19_spill] sm:$0xff]  ;;  %s5975_s16 = scalar_lea.vmem %s8553_s1, %s4136_s26  ;;  %s5517_s18 = smov 32  }
  0x2d   : > { %8773 = vst [vmem:[#allocation39_spill] sm:$0xff] %v5329_v53  ;;  %v3848_v51 = vor.u32 %v8792_v16, %v8791_v15  ;;  %v8793_v13 = vld [vmem:[#allocation16_spill] sm:$0xff]  ;;  %v8794_v14 = vld [vmem:[#allocation17_spill] sm:$0xff]  ;;  %v8795_v11 = vld [vmem:[#allocation14_spill] sm:$0xff]  ;;  %s6123_s19 = sshll.u32 %s5449_s2, 2  ;;  %s80_s23 = sadd.s32 1, %s5449_s2  }
  0x2e   : > { %8774 = vst [vmem:[#allocation40_spill] sm:$0xff] %v5333_v54  ;;  %v3844_v52 = vor.u32 %v8794_v14, %v8793_v13  ;;  %v8796_v12 = vld [vmem:[#allocation15_spill] sm:$0xff]  ;;  %v8797_v9 = vld [vmem:[#allocation12_spill] sm:$0xff]  ;;  %v8798_v10 = vld [vmem:[#allocation13_spill] sm:$0xff]  ;;  %s961_s20 = sadd.s32 1, %s6123_s19  ;;  %s1759_s21 = sadd.s32 2, %s6123_s19 }
  0x2f   : > { %8775 = vst [vmem:[#allocation41_spill] sm:$0xff] %v5337_v55  ;;  %207 = vmatpush.bf16.msra.mxu0 %v3848_v51  ;;  %1005 = vmatpush.bf16.msra.mxu1 %v3848_v51  ;;  %v3840_v32 = vor.u32 %v8796_v12, %v8795_v11  ;;  %v3836_v53 = vor.u32 %v8798_v10, %v8797_v9  ;;  %v8799_v7 = vld [vmem:[#allocation10_spill] sm:$0xff]  ;;  %v8800_v8 = vld [vmem:[#allocation11_spill] sm:$0xff]  ;;  %v8801_v4 = vld [vmem:[#allocation8_spill] sm:$0xff]  ;;  %s2557_s22 = sadd.s32 3, %s6123_s19  ;;  %p8191_p2 = scmp.ge.s32.totalorder %s80_s23, %s9200_s10 }
  0x30   : > { %8776 = vst [vmem:[#allocation42_spill] sm:$0xff] %v5341_v56  ;;  %1803 = vmatpush.bf16.msra.mxu2 %v3848_v51  ;;  %2601 = vmatpush.bf16.msra.mxu3 %v3848_v51  ;;  %v3832_v13 = vor.u32 %v8800_v8, %v8799_v7  ;;  %v8802_v5 = vld [vmem:[#allocation9_spill] sm:$0xff]  ;;  %v8803_v2 = vld [vmem:[#allocation6_spill] sm:$0xff]  ;;  %v8804_v3 = vld [vmem:[#allocation7_spill] sm:$0xff]  ;;  %s9165_s2 = smov %s80_s23 }
  0x31   : > { %8777 = vst [vmem:[#allocation43_spill] sm:$0xff] %v5345_v57  ;;  %v3828_v51 = vor.u32 %v8802_v5, %v8801_v4  ;;  %v8805_v0 = vld [vmem:[#allocation4_spill] sm:$0xff]  ;;  %v8806_v1 = vld [vmem:[#allocation5_spill] sm:$0xff]  ;;  %v8829_v27 = vld [vmem:[#allocation30_spill] sm:$0xff] }
  0x32   : > { %8778 = vst [vmem:[#allocation44_spill] sm:$0xff] %v5377_v35  ;;  %v4292_v5 = vld [vmem:[%s5975_s16 + $0x8] sm:$0xff]   ;;  %v8817_v17 = vld [vmem:[#allocation20_spill] sm:$0xff]  ;;  %v8830_v28 = vld [vmem:[#allocation31_spill] sm:$0xff] }
  0x33   : > { %8779 = vst [vmem:[#allocation45_spill] sm:$0xff] %v5385_v37  ;;  %208 = vmatpush.bf16.msra.mxu0 %v3844_v52  ;;  %1006 = vmatpush.bf16.msra.mxu1 %v3844_v52  ;;  %v4170_v9 = vunpack.c.l.bf16 %v4292_v5  ;;  %v8815_v18 = vld [vmem:[#allocation21_spill] sm:$0xff]  ;;  %v8827_v25 = vld [vmem:[#allocation28_spill] sm:$0xff]  ;;  %v8831_v24 = vld [vmem:[#allocation27_spill] sm:$0xff] }
  0x34   : > { %8780 = vst [vmem:[#allocation46_spill] sm:$0xff] %v5389_v38  ;;  %1804 = vmatpush.bf16.msra.mxu2 %v3844_v52  ;;  %2602 = vmatpush.bf16.msra.mxu3 %v3844_v52  ;;  %v3824_v52 = vor.u32 %v8804_v3, %v8803_v2 }
  0x35   : > { %8781 = vst [vmem:[#allocation47_spill] sm:$0xff] %v5393_v39 }
  0x36   : > { %8782 = vst [vmem:[#allocation48_spill] sm:$0xff] %v5397_v40 }
  0x37   : > { %8783 = vst [vmem:[#allocation49_spill] sm:$0xff] %v5401_v41  ;;  %209 = vmatpush.bf16.msra.mxu0 %v3840_v32  ;;  %1007 = vmatpush.bf16.msra.mxu1 %v3840_v32 }
  0x38   : > { %8784 = vst [vmem:[#allocation50_spill] sm:$0xff] %v5405_v42  ;;  %1805 = vmatpush.bf16.msra.mxu2 %v3840_v32  ;;  %2603 = vmatpush.bf16.msra.mxu3 %v3840_v32  ;;  %v3820_v32 = vor.u32 %v8806_v1, %v8805_v0  ;;  %v155_v0 = vpack.c.bf16 %v5409_v43, %v5413_v44 }
  0x39   : > { %8785 = vst [vmem:[#allocation51_spill] sm:$0xff] %v5409_v43 }
  0x3a   : > { %8786 = vst [vmem:[#allocation52_spill] sm:$0xff] %v5413_v44 }
  0x3b   : > { %8787 = vst [vmem:[#allocation53_spill] sm:$0xff] %v5417_v45  ;;  %210 = vmatpush.bf16.msra.mxu0 %v3836_v53  ;;  %1008 = vmatpush.bf16.msra.mxu1 %v3836_v53 }
  0x3c   : > { %8788 = vst [vmem:[#allocation54_spill] sm:$0xff] %v5421_v46  ;;  %1806 = vmatpush.bf16.msra.mxu2 %v3836_v53  ;;  %2604 = vmatpush.bf16.msra.mxu3 %v3836_v53  ;;  %v151_v53 = vpack.c.bf16 %v5441_v19, %v5445_v33 }
  0x3d   : > { %8789 = vst [vmem:[#allocation55_spill] sm:$0xff] %v5425_v47 }
  0x3e   : > { %8790 = vst [vmem:[#allocation56_spill] sm:$0xff] %v5429_v48 }
  0x3f   : > { %211 = vmatpush.bf16.msra.mxu0 %v3832_v13  ;;  %1009 = vmatpush.bf16.msra.mxu1 %v3832_v13 }
  0x40   : > { %1807 = vmatpush.bf16.msra.mxu2 %v3832_v13  ;;  %2605 = vmatpush.bf16.msra.mxu3 %v3832_v13  ;;  %v152_v13 = vpack.c.bf16 %v5433_v49, %v5437_v50 }
  0x43   : > { %212 = vmatpush.bf16.msra.mxu0 %v3828_v51  ;;  %1010 = vmatpush.bf16.msra.mxu1 %v3828_v51 }
  0x44   : > { %1808 = vmatpush.bf16.msra.mxu2 %v3828_v51  ;;  %2606 = vmatpush.bf16.msra.mxu3 %v3828_v51  ;;  %v153_v51 = vpack.c.bf16 %v5425_v47, %v5429_v48 }
  0x47   : > { %213 = vmatpush.bf16.msra.mxu0 %v3824_v52  ;;  %1011 = vmatpush.bf16.msra.mxu1 %v3824_v52 }
  0x48   : > { %1809 = vmatpush.bf16.msra.mxu2 %v3824_v52  ;;  %2607 = vmatpush.bf16.msra.mxu3 %v3824_v52  ;;  %v154_v52 = vpack.c.bf16 %v5417_v45, %v5421_v46 }
  0x4b   : > { %214 = vmatpush.bf16.msra.mxu0 %v3820_v32  ;;  %1012 = vmatpush.bf16.msra.mxu1 %v3820_v32 }
  0x4c   : > { %1810 = vmatpush.bf16.msra.mxu2 %v3820_v32  ;;  %2608 = vmatpush.bf16.msra.mxu3 %v3820_v32  ;;  %v156_v32 = vpack.c.bf16 %v5401_v41, %v5405_v42 }
  0x4e   : > { %215 = vmatmul.bf16.vlgmr.msra.gmra.mxu0 %v151_v53  ;;  %v4165_v53 = vld [vmem:[%s5975_s16] sm:$0xff]  }
  0x4f   : > { %v4167_v2 = vunpack.c.h.bf16 %v4165_v53 }
  0x5e   : > { %220 = vmatmul.bf16.gmra.mxu0 %v152_v13  ;;  %v4166_v13 = vunpack.c.l.bf16 %v4165_v53  ;;  %v4171_v53 = vunpack.c.h.bf16 %v4292_v5 }
  0x6e   : > { %225 = vmatmul.bf16.gmra.mxu0 %v153_v51 }
  0x7e   : > { %230 = vmatmul.bf16.gmra.mxu0 %v154_v52 }
  0x8e   : > { %235 = vmatmul.bf16.gmra.mxu0 %v155_v0 }
  0x9e   : > { %240 = vmatmul.bf16.gmra.mxu0 %v156_v32 }
  0xcb   : > { %v216_v51 = vpop.f32.mrf.mxu0 }
  0xcc   : > { %v256_v52 = vadd.f32 %v4166_v13, %v216_v51 }
  0xce   : > { %v272_v1 = vmul.f32 2.0, %v256_v52 }
  0xd0   : > { %v288_v0 = vsel %vm5736_vm3, %v272_v1, %v256_v52 }
  0xd1   : > { %v3849_v3 = vmul.f32 -1.442695, %v288_v0 }
  0xd3   : > { %4737 = vpow2.f32 %v3849_v3  ;;  %v218_v32 = vpop.f32.mrf.mxu0 }
  0xd4   : > { %v257_v4 = vadd.f32 %v4167_v2, %v218_v32 }
  0xd6   : > { %v273_v7 = vmul.f32 2.0, %v257_v4 }
  0xd8   : > { %v289_v8 = vsel %vm5736_vm3, %v273_v7, %v257_v4 }
  0xd9   : > { %v4738_v10 = vpop.eup %4737  ;;  %v3850_v11 = vmul.f32 -1.442695, %v289_v8 }
  0xda   : > { %v352_v12 = vadd.f32 1.0, %v4738_v10  ;;  %v4293_v10 = vld [vmem:[%s5975_s16 + $0x10] sm:$0xff]  }
  0xdb   : > { %4739 = vpow2.f32 %v3850_v11  ;;  %v221_v13 = vpop.f32.mrf.mxu0  ;;  %v4174_v5 = vunpack.c.l.bf16 %v4293_v10 }
  0xdc   : > { %4741 = vrcp.f32 %v352_v12  ;;  %v258_v51 = vadd.f32 %v4170_v9, %v221_v13  ;;  %v379_v15 = vand.u32 2147483648, %v352_v12  ;;  %v377_v9 = vand.u32 2147483647, %v352_v12 }
  0xdd   : > { %vm373_vm5 = vweird.f32 %v352_v12 }
  0xde   : > { %v274_v1 = vmul.f32 2.0, %v258_v51  ;;  %v380_v42 = vor.u32 1.1754944e-38, %v379_v15  ;;  %vm378_vm7 = vcmp.eq.f32.partialorder %v377_v9, 8.507059e+37  ;;  %v4175_v15 = vunpack.c.h.bf16 %v4293_v10 }
  0xe0   : > { %v290_v3 = vsel %vm5736_vm3, %v274_v1, %v258_v51 }
  0xe1   : > { %v4740_v2 = vpop.eup %4739  ;;  %v3851_v52 = vmul.f32 -1.442695, %v290_v3 }
  0xe2   : > { %v4742_v0 = vpop.eup %4741  ;;  %v353_v32 = vadd.f32 1.0, %v4740_v2 }
  0xe3   : > { %4743 = vpow2.f32 %v3851_v52  ;;  %v223_v4 = vpop.f32.mrf.mxu0  ;;  %v369_v7 = vmul.f32 %v4742_v0, %v352_v12  ;;  %vm374_vm4 = vweird.f32 %v4742_v0 }
  0xe4   : > { %4745 = vrcp.f32 %v353_v32  ;;  %v259_v8 = vadd.f32 %v4171_v53, %v223_v4  ;;  %vm375_vm6 = vmor %vm373_vm5, %vm374_vm4  ;;  %v394_v45 = vand.u32 2147483648, %v353_v32  ;;  %vm388_vm9 = vweird.f32 %v353_v32 }
  0xe5   : > { %v370_v11 = vsub.f32 1.0, %v369_v7 }
  0xe6   : > { %v275_v14 = vmul.f32 2.0, %v259_v8 }
  0xe7   : > { %v371_v16 = vmul.f32 %v4742_v0, %v370_v11 }
  0xe8   : > { %v291_v13 = vsel %vm5736_vm3, %v275_v14, %v259_v8  ;;  %v392_v8 = vand.u32 2147483647, %v353_v32 }
  0xe9   : > { %v4744_v51 = vpop.eup %4743  ;;  %v3852_v1 = vmul.f32 -1.442695, %v291_v13  ;;  %v372_v3 = vadd.f32 %v4742_v0, %v371_v16 }
  0xea   : > { %v4746_v2 = vpop.eup %4745  ;;  %v354_v52 = vadd.f32 1.0, %v4744_v51  ;;  %vm393_vm11 = vcmp.eq.f32.partialorder %v392_v8, 8.507059e+37 }
  0xeb   : > { %4747 = vpow2.f32 %v3852_v1  ;;  %v226_v53 = vpop.f32.mrf.mxu0  ;;  %v376_v4 = vsel %vm375_vm6, %v4742_v0, %v372_v3  ;;  %v384_v7 = vmul.f32 %v4746_v2, %v353_v32  ;;  %vm389_vm8 = vweird.f32 %v4746_v2 }
  0xec   : > { %4749 = vrcp.f32 %v354_v52  ;;  %v260_v11 = vadd.f32 %v4174_v5, %v226_v53  ;;  %v381_v41 = vsel %vm378_vm7, %v380_v42, %v376_v4  ;;  %vm390_vm10 = vmor %vm388_vm9, %vm389_vm8  ;;  %vm403_vm12 = vweird.f32 %v354_v52 }
  0xed   : > { %v608_v43 = vmul.f32 2.0, %v381_v41  ;;  %v385_v44 = vsub.f32 1.0, %v384_v7  ;;  %v409_v4 = vand.u32 2147483648, %v354_v52  ;;  %v4294_v7 = vld [vmem:[%s5975_s16 + $0x18] sm:$0xff]  }
  0xee   : > { %v276_v14 = vmul.f32 2.0, %v260_v11  ;;  %v4178_v8 = vunpack.c.l.bf16 %v4294_v7 }
  0xef   : > { %v3865_v13 = vadd.f32 -1.0, %v608_v43  ;;  %v386_v16 = vmul.f32 %v4746_v2, %v385_v44  ;;  %v395_v43 = vor.u32 1.1754944e-38, %v394_v45 }
  0xf0   : > { %v292_v12 = vsel %vm5736_vm3, %v276_v14, %v260_v11  ;;  %v407_v14 = vand.u32 2147483647, %v354_v52 }
  0xf1   : > { %v4748_v51 = vpop.eup %4747  ;;  %v3853_v1 = vmul.f32 -1.442695, %v292_v12  ;;  %v5992_v0 = vsel %vm5736_vm3, %v3865_v13, %v381_v41  ;;  %v387_v9 = vadd.f32 %v4746_v2, %v386_v16 }
  0xf2   : > { %v4750_v42 = vpop.eup %4749  ;;  %v355_v5 = vadd.f32 1.0, %v4748_v51  ;;  %656 = vrot.lane.b32.xlu0 %v5992_v0, %s5515_s17  ;;  %vm408_vm15 = vcmp.eq.f32.partialorder %v407_v14, 8.507059e+37 }
  0xf3   : > { %4751 = vpow2.f32 %v3853_v1  ;;  %v228_v44 = vpop.f32.mrf.mxu0  ;;  %v391_v10 = vsel %vm390_vm10, %v4746_v2, %v387_v9  ;;  %v399_v3 = vmul.f32 %v4750_v42, %v354_v52  ;;  %vm404_vm13 = vweird.f32 %v4750_v42 }
  0xf4   : > { %4753 = vrcp.f32 %v355_v5  ;;  %v261_v41 = vadd.f32 %v4175_v15, %v228_v44  ;;  %v396_v53 = vsel %vm393_vm11, %v395_v43, %v391_v10  ;;  %vm6000_vm14 = vmor %vm403_vm12, %vm404_vm13  ;;  %v410_v15 = vor.u32 1.1754944e-38, %v409_v4 }
  0xf5   : > { %v609_v32 = vmul.f32 2.0, %v396_v53  ;;  %v400_v11 = vsub.f32 1.0, %v399_v3  ;;  %vm418_vm0 = vweird.f32 %v355_v5  ;;  %v422_v14 = vand.u32 2147483647, %v355_v5 }
  0xf6   : > { %v277_v13 = vmul.f32 2.0, %v261_v41  ;;  %v4179_v2 = vunpack.c.h.bf16 %v4294_v7 }
  0xf7   : > { %v3866_v16 = vadd.f32 -1.0, %v609_v32  ;;  %v401_v12 = vmul.f32 %v4750_v42, %v400_v11  ;;  %v424_v11 = vand.u32 2147483648, %v355_v5  ;;  %vm423_vm5 = vcmp.eq.f32.partialorder %v422_v14, 8.507059e+37 }
  0xf8   : > { %v293_v45 = vsel %vm5736_vm3, %v277_v13, %v261_v41 }
  0xf9   : > { %v4752_v51 = vpop.eup %4751  ;;  %v3854_v1 = vmul.f32 -1.442695, %v293_v45  ;;  %v6006_v9 = vsel %vm5736_vm3, %v3866_v16, %v396_v53  ;;  %v402_v43 = vadd.f32 %v4750_v42, %v401_v12 }
  0xfa   : > { %v4754_v44 = vpop.eup %4753  ;;  %v356_v10 = vadd.f32 1.0, %v4752_v51  ;;  %658 = vrot.lane.b32.xlu0 %v6006_v9, %s5515_s17 }
  0xfb   : > { %4755 = vpow2.f32 %v3854_v1  ;;  %v231_v52 = vpop.f32.mrf.mxu0  ;;  %v406_v3 = vsel %vm6000_vm14, %v4750_v42, %v402_v43  ;;  %v414_v41 = vmul.f32 %v4754_v44, %v355_v5  ;;  %vm419_vm1 = vweird.f32 %v4754_v44 }
  0xfc   : > { %4757 = vrcp.f32 %v356_v10  ;;  %v262_v4 = vadd.f32 %v4178_v8, %v231_v52  ;;  %v411_v32 = vsel %vm408_vm15, %v410_v15, %v406_v3  ;;  %vm6014_vm4 = vmor %vm418_vm0, %vm419_vm1  ;;  %v425_v42 = vor.u32 1.1754944e-38, %v424_v11 }
  0xfd   : > { %v610_v53 = vmul.f32 2.0, %v411_v32  ;;  %v415_v13 = vsub.f32 1.0, %v414_v41  ;;  %vm433_vm6 = vweird.f32 %v356_v10  ;;  %v437_v14 = vand.u32 2147483647, %v356_v10 }
  0xfe   : > { %v278_v16 = vmul.f32 2.0, %v262_v4 }
  0xff   : > { %v3867_v12 = vadd.f32 -1.0, %v610_v53  ;;  %v416_v45 = vmul.f32 %v4754_v44, %v415_v13  ;;  %v439_v53 = vand.u32 2147483648, %v356_v10  ;;  %vm438_vm9 = vcmp.eq.f32.partialorder %v437_v14, 8.507059e+37 }
 0x100   : > { %v294_v51 = vsel %vm5736_vm3, %v278_v16, %v262_v4 }
 0x101   : > { %v4756_v43 = vpop.eup %4755  ;;  %v3855_v8 = vmul.f32 -1.442695, %v294_v51  ;;  %v6020_v15 = vsel %vm5736_vm3, %v3867_v12, %v411_v32  ;;  %v417_v52 = vadd.f32 %v4754_v44, %v416_v45  ;;  %v440_v1 = vor.u32 1.1754944e-38, %v439_v53 }
 0x102   : > { %v4758_v5 = vpop.eup %4757  ;;  %v357_v3 = vadd.f32 1.0, %v4756_v43  ;;  %660 = vrot.lane.b32.xlu1 %v6020_v15, %s5515_s17 }
 0x103   : > { %4759 = vpow2.f32 %v3855_v8  ;;  %v421_v41 = vsel %vm6014_vm4, %v4754_v44, %v417_v52  ;;  %v429_v4 = vmul.f32 %v4758_v5, %v356_v10  ;;  %v233_v7 = vpop.f32.mrf.mxu0  ;;  %vm434_vm7 = vweird.f32 %v4758_v5 }
 0x104   : > { %4761 = vrcp.f32 %v357_v3  ;;  %v426_v11 = vsel %vm423_vm5, %v425_v42, %v421_v41  ;;  %v6026_v13 = vadd.f32 %v4179_v2, %v233_v7  ;;  %vm6029_vm8 = vmor %vm433_vm6, %vm434_vm7  ;;  %v157_v44 = vpack.c.bf16 %v5393_v39, %v5397_v40 }
 0x105   : > { %v611_v32 = vmul.f32 2.0, %v426_v11  ;;  %v430_v16 = vsub.f32 1.0, %v429_v4  ;;  %vm448_vm10 = vweird.f32 %v357_v3  ;;  %v454_v53 = vand.u32 2147483648, %v357_v3 }
 0x106   : > { %245 = vmatmul.bf16.gmra.mxu0 %v157_v44 }
 0x107   : > { %v3868_v12 = vadd.f32 -1.0, %v611_v32  ;;  %v431_v45 = vmul.f32 %v4758_v5, %v430_v16  ;;  %v452_v16 = vand.u32 2147483647, %v357_v3 }
 0x109   : > { %v4760_v43 = vpop.eup %4759  ;;  %v6037_v42 = vsel %vm5736_vm3, %v3868_v12, %v426_v11  ;;  %v432_v2 = vadd.f32 %v4758_v5, %v431_v45  ;;  %v455_v45 = vor.u32 1.1754944e-38, %v454_v53  ;;  %vm453_vm13 = vcmp.eq.f32.partialorder %v452_v16, 8.507059e+37 }
 0x10a   : > { %v4762_v8 = vpop.eup %4761  ;;  %v358_v52 = vadd.f32 1.0, %v4760_v43  ;;  %662 = vrot.lane.b32.xlu1 %v6037_v42, %s5515_s17  ;;  %v158_v16 = vpack.c.bf16 %v5385_v37, %v5389_v38 }
 0x10b   : > { %v436_v10 = vsel %vm6029_vm8, %v4758_v5, %v432_v2  ;;  %v444_v41 = vmul.f32 %v4762_v8, %v357_v3  ;;  %v236_v4 = vpop.f32.mrf.mxu0  ;;  %vm449_vm11 = vweird.f32 %v4762_v8 }
 0x10c   : > { %4763 = vrcp.f32 %v358_v52  ;;  %v441_v7 = vsel %vm438_vm9, %v440_v1, %v436_v10  ;;  %vm450_vm12 = vmor %vm448_vm10, %vm449_vm11  ;;  %vm463_vm14 = vweird.f32 %v358_v52  ;;  %v467_v2 = vand.u32 2147483647, %v358_v52 }
 0x10d   : > { %v612_v32 = vmul.f32 2.0, %v441_v7  ;;  %v445_v11 = vsub.f32 1.0, %v444_v41  ;;  %v469_v41 = vand.u32 2147483648, %v358_v52 }
 0x10e   : > { %vm468_vm1 = vcmp.eq.f32.partialorder %v467_v2, 8.507059e+37 }
 0x10f   : > { %v3869_v14 = vadd.f32 -1.0, %v612_v32  ;;  %v446_v12 = vmul.f32 %v4762_v8, %v445_v11 }
 0x111   : > { %v6045_v44 = vsel %vm5736_vm3, %v3869_v14, %v441_v7  ;;  %v447_v51 = vadd.f32 %v4762_v8, %v446_v12  ;;  %v470_v14 = vor.u32 1.1754944e-38, %v469_v41 }
 0x112   : > { %v4764_v5 = vpop.eup %4763  ;;  %664 = vrot.lane.b32.xlu2 %v6045_v44, %s5515_s17 }
 0x113   : > { %v451_v1 = vsel %vm450_vm12, %v4762_v8, %v447_v51  ;;  %v459_v43 = vmul.f32 %v4764_v5, %v358_v52  ;;  %v238_v10 = vpop.f32.mrf.mxu0  ;;  %vm464_vm15 = vweird.f32 %v4764_v5 }
 0x114   : > { %v456_v3 = vsel %vm453_vm13, %v455_v45, %v451_v1  ;;  %vm465_vm0 = vmor %vm463_vm14, %vm464_vm15 }
 0x115   : > { %v613_v32 = vmul.f32 2.0, %v456_v3  ;;  %v460_v53 = vsub.f32 1.0, %v459_v43  ;;  %v4296_v43 = vld [vmem:[%s5975_s16 + $0x28] sm:$0xff]  }
 0x116   : > { %250 = vmatmul.bf16.gmra.mxu0 %v158_v16 }
 0x117   : > { %v3870_v11 = vadd.f32 -1.0, %v613_v32  ;;  %v461_v7 = vmul.f32 %v4764_v5, %v460_v53  ;;  %v4187_v53 = vunpack.c.h.bf16 %v4296_v43 }
 0x119   : > { %v6053_v8 = vsel %vm5736_vm3, %v3870_v11, %v456_v3  ;;  %v462_v12 = vadd.f32 %v4764_v5, %v461_v7 }
 0x11a   : > { %666 = vrot.lane.b32.xlu2 %v6053_v8, %s5515_s17 }
 0x11b   : > { %v466_v52 = vsel %vm465_vm0, %v4764_v5, %v462_v12  ;;  %v241_v45 = vpop.f32.mrf.mxu0  ;;  %v4295_v5 = vld [vmem:[%s5975_s16 + $0x20] sm:$0xff]   ;;  %v279_v12 = vmul.f32 2.0, %v6026_v13 }
 0x11c   : > { %v471_v51 = vsel %vm468_vm1, %v470_v14, %v466_v52  ;;  %v4182_v14 = vunpack.c.l.bf16 %v4295_v5  ;;  %v4183_v52 = vunpack.c.h.bf16 %v4295_v5 }
 0x11d   : > { %v614_v1 = vmul.f32 2.0, %v471_v51 }
 0x11f   : > { %v3871_v32 = vadd.f32 -1.0, %v614_v1  ;;  %v264_v1 = vadd.f32 %v4182_v14, %v236_v4  ;;  %v4186_v14 = vunpack.c.l.bf16 %v4296_v43 }
 0x121   : > { %v6060_v41 = vsel %vm5736_vm3, %v3871_v32, %v471_v51  ;;  %v295_v51 = vsel %vm5736_vm3, %v279_v12, %v6026_v13  ;;  %v265_v32 = vadd.f32 %v4183_v52, %v238_v10 }
 0x122   : > { %668 = vrot.lane.b32.xlu2 %v6060_v41, %s5515_s17 }
 0x123   : > { %v243_v2 = vpop.f32.mrf.mxu0  ;;  %v281_v39 = vmul.f32 2.0, %v265_v32 }
 0x124   : > { %v267_v3 = vadd.f32 %v4187_v53, %v243_v2  ;;  %v3856_v53 = vmul.f32 -1.442695, %v295_v51  ;;  %v280_v2 = vmul.f32 2.0, %v264_v1  ;;  %v266_v51 = vadd.f32 %v4186_v14, %v241_v45 }
 0x126   : > { %v283_v11 = vmul.f32 2.0, %v267_v3  ;;  %v282_v43 = vmul.f32 2.0, %v266_v51 }
 0x128   : > { %v299_v7 = vsel %vm5736_vm3, %v283_v11, %v267_v3  ;;  %v296_v3 = vsel %vm5736_vm3, %v280_v2, %v264_v1  ;;  %v297_v11 = vsel %vm5736_vm3, %v281_v39, %v265_v32 }
 0x129   : > { %v3860_v16 = vmul.f32 -1.442695, %v299_v7  ;;  %v3857_v4 = vmul.f32 -1.442695, %v296_v3 }
 0x12b   : > { %4765 = vpow2.f32 %v3860_v16  ;;  %v3858_v16 = vmul.f32 -1.442695, %v297_v11 }
 0x131   : > { %v4766_v37 = vpop.eup %4765 }
 0x132   : > { %v363_v38 = vadd.f32 1.0, %v4766_v37 }
 0x134   : > { %4767 = vrcp.f32 %v363_v38  ;;  %v544_v40 = vand.u32 2147483648, %v363_v38  ;;  %vm538_vm4 = vweird.f32 %v363_v38  ;;  %v542_v37 = vand.u32 2147483647, %v363_v38 }
 0x135   : > { %4769 = vpow2.f32 %v3856_v53 }
 0x136   : > { %4771 = vpow2.f32 %v3857_v4  ;;  %v545_v52 = vor.u32 1.1754944e-38, %v544_v40  ;;  %vm543_vm7 = vcmp.eq.f32.partialorder %v542_v37, 8.507059e+37  ;;  %v298_v4 = vsel %vm5736_vm3, %v282_v43, %v266_v51 }
 0x137   : > { %4773 = vpow2.f32 %v3858_v16 }
 0x13a   : > { %v4768_v7 = vpop.eup %4767 }
 0x13b   : > { %v534_v5 = vmul.f32 %v4768_v7, %v363_v38  ;;  %vm539_vm5 = vweird.f32 %v4768_v7  ;;  %v4770_v10 = vpop.eup %4769 }
 0x13c   : > { %vm540_vm6 = vmor %vm538_vm4, %vm539_vm5  ;;  %v359_v1 = vadd.f32 1.0, %v4770_v10  ;;  %v4772_v2 = vpop.eup %4771 }
 0x13d   : > { %v535_v13 = vsub.f32 1.0, %v534_v5  ;;  %v4774_v11 = vpop.eup %4773  ;;  %v360_v46 = vadd.f32 1.0, %v4772_v2 }
 0x13e   : > { %4775 = vrcp.f32 %v359_v1  ;;  %v361_v38 = vadd.f32 1.0, %v4774_v11  ;;  %vm478_vm8 = vweird.f32 %v359_v1  ;;  %v482_v43 = vand.u32 2147483647, %v359_v1 }
 0x13f   : > { %v536_v12 = vmul.f32 %v4768_v7, %v535_v13  ;;  %4777 = vrcp.f32 %v360_v46  ;;  %vm493_vm12 = vweird.f32 %v360_v46 }
 0x140   : > { %4779 = vrcp.f32 %v361_v38  ;;  %vm483_vm11 = vcmp.eq.f32.partialorder %v482_v43, 8.507059e+37  ;;  %vm508_vm14 = vweird.f32 %v361_v38  ;;  %v514_v31 = vand.u32 2147483648, %v361_v38 }
 0x141   : > { %v537_v53 = vadd.f32 %v4768_v7, %v536_v12 }
 0x143   : > { %v541_v39 = vsel %vm540_vm6, %v4768_v7, %v537_v53  ;;  %v3859_v7 = vmul.f32 -1.442695, %v298_v4 }
 0x144   : > { %v546_v32 = vsel %vm543_vm7, %v545_v52, %v541_v39  ;;  %v4776_v45 = vpop.eup %4775  ;;  %v484_v39 = vand.u32 2147483648, %v359_v1 }
 0x145   : > { %v619_v3 = vmul.f32 2.0, %v546_v32  ;;  %v474_v16 = vmul.f32 %v4776_v45, %v359_v1  ;;  %4781 = vpow2.f32 %v3859_v7  ;;  %v4778_v14 = vpop.eup %4777  ;;  %vm479_vm9 = vweird.f32 %v4776_v45 }
 0x146   : > { %v4780_v37 = vpop.eup %4779  ;;  %v489_v10 = vmul.f32 %v4778_v14, %v360_v46  ;;  %vm480_vm10 = vmor %vm478_vm8, %vm479_vm9  ;;  %v485_v11 = vor.u32 1.1754944e-38, %v484_v39  ;;  %vm494_vm13 = vweird.f32 %v4778_v14 }
 0x147   : > { %v3876_v5 = vadd.f32 -1.0, %v619_v3  ;;  %v475_v13 = vsub.f32 1.0, %v474_v16  ;;  %v504_v51 = vmul.f32 %v4780_v37, %v361_v38  ;;  %vm509_vm15 = vweird.f32 %v4780_v37  ;;  %vm6088_vm0 = vmor %vm493_vm12, %vm494_vm13 }
 0x148   : > { %vm510_vm1 = vmor %vm508_vm14, %vm509_vm15 }
 0x149   : > { %v6079_v40 = vsel %vm5736_vm3, %v3876_v5, %v546_v32  ;;  %v476_v52 = vmul.f32 %v4776_v45, %v475_v13  ;;  %v490_v32 = vsub.f32 1.0, %v489_v10  ;;  %v505_v3 = vsub.f32 1.0, %v504_v51 }
 0x14a   : > { %678 = vrot.lane.b32.xlu2 %v6079_v40, %s5515_s17  ;;  %v8581_v10 = vmov 0   ;;  %v512_v51 = vand.u32 2147483647, %v361_v38 }
 0x14b   : > { %v4782_v12 = vpop.eup %4781  ;;  %v477_v2 = vadd.f32 %v4776_v45, %v476_v52  ;;  %v491_v5 = vmul.f32 %v4778_v14, %v490_v32  ;;  %v506_v7 = vmul.f32 %v4780_v37, %v505_v3  ;;  %4735 = vset.pattern.permute.xlu2 %v8581_v10  ;;  %4734 = vset.pattern.permute.xlu1 %v8581_v10 }
 0x14c   : > { %v6083_v53 = vadd.f32 1.0, %v4782_v12  ;;  %v499_v12 = vand.u32 2147483648, %v360_v46  ;;  %4736 = vset.pattern.permute.xlu0 %v8581_v10  ;;  %vm513_vm5 = vcmp.eq.f32.partialorder %v512_v51, 8.507059e+37 }
 0x14d   : > { %v481_v4 = vsel %vm480_vm10, %v4776_v45, %v477_v2  ;;  %v492_v13 = vadd.f32 %v4778_v14, %v491_v5  ;;  %v497_v45 = vand.u32 2147483647, %v360_v46  ;;  %v507_v52 = vadd.f32 %v4780_v37, %v506_v7 }
 0x14e   : > { %4783 = vrcp.f32 %v6083_v53  ;;  %v486_v16 = vsel %vm483_vm11, %v485_v11, %v481_v4  ;;  %v500_v11 = vor.u32 1.1754944e-38, %v499_v12  ;;  %v515_v5 = vor.u32 1.1754944e-38, %v514_v31 }
 0x14f   : > { %v615_v2 = vmul.f32 2.0, %v486_v16  ;;  %v496_v3 = vsel %vm6088_vm0, %v4778_v14, %v492_v13  ;;  %vm498_vm4 = vcmp.eq.f32.partialorder %v497_v45, 8.507059e+37  ;;  %v511_v4 = vsel %vm510_vm1, %v4780_v37, %v507_v52 }
 0x150   : > { %v501_v7 = vsel %vm498_vm4, %v500_v11, %v496_v3  ;;  %v516_v38 = vsel %vm513_vm5, %v515_v5, %v511_v4  ;;  %vm523_vm6 = vweird.f32 %v6083_v53  ;;  %v529_v45 = vand.u32 2147483648, %v6083_v53 }
 0x151   : > { %v3872_v10 = vadd.f32 -1.0, %v615_v2  ;;  %v616_v29 = vmul.f32 2.0, %v501_v7  ;;  %v527_v52 = vand.u32 2147483647, %v6083_v53  ;;  %v6131_v4 = vstv %s6123_s19 }
 0x152   : > { %vm834_vm10 = vcmp.gt.s32.totalorder %v8815_v18, %v6131_v4  ;;  %vm833_vm11 = vcmp.gt.s32.totalorder %v8817_v17, %v6131_v4 }
 0x153   : > { %v6102_v31 = vsel %vm5736_vm3, %v3872_v10, %v486_v16  ;;  %v3873_v13 = vadd.f32 -1.0, %v616_v29  ;;  %v530_v29 = vor.u32 1.1754944e-38, %v529_v45  ;;  %vm528_vm9 = vcmp.eq.f32.partialorder %v527_v52, 8.507059e+37 }
 0x154   : > { %v4784_v39 = vpop.eup %4783 }
 0x155   : > { %v519_v46 = vmul.f32 %v4784_v39, %v6083_v53  ;;  %vm524_vm7 = vweird.f32 %v4784_v39 }
 0x156   : > { %vm525_vm8 = vmor %vm523_vm6, %vm524_vm7 }
 0x157   : > { %v520_v54 = vsub.f32 1.0, %v519_v46 }
 0x159   : > { %v521_v37 = vmul.f32 %v4784_v39, %v520_v54  ;;  %v6112_v54 = vsel %vm5736_vm3, %v3873_v13, %v501_v7 }
 0x164   : > { %v657_v32 = vpop.permute.xlu0 %656 }
 0x165   : > { %v688_v43 = vmul.f32 %v657_v32, %v5992_v0  ;;  %v617_v32 = vmul.f32 2.0, %v516_v38 }
 0x167   : > { %720 = vrot.lane.b32.xlu0 %v688_v43, %s5517_s18  ;;  %v3874_v12 = vadd.f32 -1.0, %v617_v32 }
 0x169   : > { %v6116_v10 = vsel %vm5736_vm3, %v3874_v12, %v516_v38 }
 0x16c   : > { %v659_v30 = vpop.permute.xlu0 %658  ;;  %v665_v14 = vpop.permute.xlu2 %664 }
 0x16d   : > { %v689_v1 = vmul.f32 %v659_v30, %v6006_v9  ;;  %v522_v30 = vadd.f32 %v4784_v39, %v521_v37  ;;  %v692_v12 = vmul.f32 %v665_v14, %v6045_v44 }
 0x16f   : > { %722 = vrot.lane.b32.xlu1 %v689_v1, %s5517_s18  ;;  %670 = vrot.lane.b32.xlu0 %v6102_v31, %s5515_s17  ;;  %v526_v51 = vsel %vm525_vm8, %v4784_v39, %v522_v30  ;;  %v8816_v1 = vmov 0   ;;  %v4297_v30 = vld [vmem:[%s5975_s16 + $0x30] sm:$0xff]  }
 0x170   : > { %v531_v2 = vsel %vm528_vm9, %v530_v29, %v526_v51  ;;  %v850_v37 = vsel %vm834_vm10, 1, %v8816_v1  ;;  %v849_v13 = vsel %vm833_vm11, 1, %v8816_v1  ;;  %v4298_v29 = vld [vmem:[%s5975_s16 + $0x38] sm:$0xff]  }
 0x171   : > { %v618_v3 = vmul.f32 2.0, %v531_v2 }
 0x173   : > { %v3875_v46 = vadd.f32 -1.0, %v618_v3 }
 0x174   : > { %v661_v16 = vpop.permute.xlu1 %660  ;;  %v667_v53 = vpop.permute.xlu2 %666 }
 0x175   : > { %v690_v11 = vmul.f32 %v661_v16, %v6020_v15  ;;  %v693_v5 = vmul.f32 %v667_v53, %v6053_v8  ;;  %v6138_v38 = vsel %vm5736_vm3, %v3875_v46, %v531_v2  ;;  %v4191_v16 = vunpack.c.h.bf16 %v4297_v30 }
 0x176   : > { %v4194_v53 = vunpack.c.l.bf16 %v4298_v29  ;;  %v4190_v2 = vunpack.c.l.bf16 %v4297_v30 }
 0x177   : > { %672 = vrot.lane.b32.xlu0 %v6112_v54, %s5515_s17  ;;  %674 = vrot.lane.b32.xlu1 %v6116_v10, %s5515_s17 }
 0x17c   : > { %v663_v43 = vpop.permute.xlu1 %662  ;;  %v669_v7 = vpop.permute.xlu2 %668 }
 0x17d   : > { %v691_v39 = vmul.f32 %v663_v43, %v6037_v42  ;;  %v694_v32 = vmul.f32 %v669_v7, %v6060_v41 }
 0x17f   : > { %730 = vrot.lane.b32.xlu0 %v693_v5, %s5517_s18  ;;  %724 = vrot.lane.b32.xlu1 %v690_v11, %s5517_s18 }
 0x180   : > { %726 = vrot.lane.b32.xlu2 %v691_v39, %s5517_s18 }
 0x183   : > { %v246_v45 = vpop.f32.mrf.mxu0 }
 0x184   : > { %v268_v5 = vadd.f32 %v4190_v2, %v246_v45 }
 0x186   : > { %v284_v14 = vmul.f32 2.0, %v268_v5 }
 0x187   : > { %732 = vrot.lane.b32.xlu0 %v694_v32, %s5517_s18  ;;  %676 = vrot.lane.b32.xlu1 %v6138_v38, %s5515_s17 }
 0x188   : > { %869 = vperm.xlu2 %4735, %v850_v37   ;;  %v300_v37 = vsel %vm5736_vm3, %v284_v14, %v268_v5 }
 0x18b   : > { %v248_v52 = vpop.f32.mrf.mxu0 }
 0x18c   : > { %v269_v51 = vadd.f32 %v4191_v16, %v248_v52  ;;  %v4195_v52 = vunpack.c.h.bf16 %v4298_v29 }
 0x18e   : > { %v285_v3 = vmul.f32 2.0, %v269_v51 }
 0x18f   : > { %866 = vperm.xlu1 %4734, %v849_v13  }
 0x190   : > { %728 = vrot.lane.b32.xlu2 %v692_v12, %s5517_s18  ;;  %v301_v39 = vsel %vm5736_vm3, %v285_v3, %v269_v51  ;;  %v3861_v12 = vmul.f32 -1.442695, %v300_v37 }
 0x191   : > { %v3862_v7 = vmul.f32 -1.442695, %v301_v39 }
 0x193   : > { %v251_v43 = vpop.f32.mrf.mxu0  ;;  %4785 = vpow2.f32 %v3862_v7 }
 0x194   : > { %v270_v11 = vadd.f32 %v4194_v53, %v251_v43 }
 0x196   : > { %v286_v46 = vmul.f32 2.0, %v270_v11 }
 0x198   : > { %v302_v32 = vsel %vm5736_vm3, %v286_v46, %v270_v11 }
 0x199   : > { %v3863_v13 = vmul.f32 -1.442695, %v302_v32  ;;  %v4786_v30 = vpop.eup %4785 }
 0x19a   : > { %v365_v53 = vadd.f32 1.0, %v4786_v30 }
 0x19b   : > { %4787 = vpow2.f32 %v3863_v13  ;;  %v253_v16 = vpop.f32.mrf.mxu0 }
 0x19c   : > { %4789 = vpow2.f32 %v3861_v12  ;;  %v271_v45 = vadd.f32 %v4195_v52, %v253_v16  ;;  %vm568_vm12 = vweird.f32 %v365_v53 }
 0x19d   : > { %4791 = vrcp.f32 %v365_v53 }
 0x19e   : > { %v287_v51 = vmul.f32 2.0, %v271_v45 }
 0x1a0   : > { %v303_v11 = vsel %vm5736_vm3, %v287_v51, %v271_v45  ;;  %v704_v45 = vmul.f32 %v5381_v36, %v5992_v0  ;;  %v574_v51 = vand.u32 2147483648, %v365_v53 }
 0x1a1   : > { %v4788_v2 = vpop.eup %4787  ;;  %v3864_v5 = vmul.f32 -1.442695, %v303_v11 }
 0x1a2   : > { %v4790_v43 = vpop.eup %4789  ;;  %v366_v3 = vadd.f32 1.0, %v4788_v2 }
 0x1a3   : > { %v6160_v39 = vadd.f32 1.0, %v4790_v43  ;;  %v4792_v46 = vpop.eup %4791 }
 0x1a4   : > { %4793 = vrcp.f32 %v366_v3  ;;  %v564_v29 = vmul.f32 %v4792_v46, %v365_v53  ;;  %vm569_vm13 = vweird.f32 %v4792_v46  ;;  %vm583_vm0 = vweird.f32 %v366_v3 }
 0x1a5   : > { %4795 = vrcp.f32 %v6160_v39  ;;  %vm6171_vm14 = vmor %vm568_vm12, %vm569_vm13  ;;  %vm553_vm4 = vweird.f32 %v6160_v39  ;;  %vm836_vm12 = vcmp.gt.s32.totalorder %v8770_v21, %v6131_v4 }
 0x1a6   : > { %4797 = vpow2.f32 %v3864_v5  ;;  %v565_v32 = vsub.f32 1.0, %v564_v29  ;;  %v572_v5 = vand.u32 2147483647, %v365_v53  ;;  %v559_v53 = vand.u32 2147483648, %v6160_v39 }
 0x1a8   : > { %v566_v30 = vmul.f32 %v4792_v46, %v565_v32  ;;  %vm573_vm15 = vcmp.eq.f32.partialorder %v572_v5, 8.507059e+37 }
 0x1aa   : > { %v4794_v14 = vpop.eup %4793  ;;  %v567_v11 = vadd.f32 %v4792_v46, %v566_v30 }
 0x1ab   : > { %v4796_v7 = vpop.eup %4795  ;;  %v579_v13 = vmul.f32 %v4794_v14, %v366_v3  ;;  %vm584_vm1 = vweird.f32 %v4794_v14 }
 0x1ac   : > { %v4798_v37 = vpop.eup %4797  ;;  %v549_v12 = vmul.f32 %v4796_v7, %v6160_v39  ;;  %v571_v17 = vsel %vm6171_vm14, %v4792_v46, %v567_v11  ;;  %vm554_vm5 = vweird.f32 %v4796_v7  ;;  %v557_v11 = vand.u32 2147483647, %v6160_v39  ;;  %vm6187_vm6 = vmor %vm583_vm0, %vm584_vm1 }
 0x1ad   : > { %v6164_v52 = vadd.f32 1.0, %v4798_v37  ;;  %v580_v16 = vsub.f32 1.0, %v579_v13  ;;  %v575_v37 = vor.u32 1.1754944e-38, %v574_v51  ;;  %v705_v51 = vmul.f32 %v5377_v35, %v6006_v9  ;;  %vm6193_vm7 = vmor %vm553_vm4, %vm554_vm5 }
 0x1ae   : > { %v550_v2 = vsub.f32 1.0, %v549_v12  ;;  %v589_v12 = vand.u32 2147483648, %v366_v3  ;;  %vm558_vm9 = vcmp.eq.f32.partialorder %v557_v11, 8.507059e+37  ;;  %vm837_vm1 = vcmp.gt.s32.totalorder %v8768_v22, %v6131_v4 }
 0x1af   : > { %4799 = vrcp.f32 %v6164_v52  ;;  %v581_v32 = vmul.f32 %v4794_v14, %v580_v16  ;;  %v6182_v16 = vpop.permute.xlu2 %678  ;;  %vm598_vm10 = vweird.f32 %v6164_v52  ;;  %v602_v11 = vand.u32 2147483647, %v6164_v52 }
 0x1b0   : > { %v551_v13 = vmul.f32 %v4796_v7, %v550_v2  ;;  %v576_v2 = vsel %vm573_vm15, %v575_v37, %v571_v17  ;;  %v560_v37 = vor.u32 1.1754944e-38, %v559_v53  ;;  %vm835_vm15 = vcmp.gt.s32.totalorder %v8769_v20, %v6131_v4 }
 0x1b1   : > { %v582_v30 = vadd.f32 %v4794_v14, %v581_v32  ;;  %v621_v35 = vmul.f32 2.0, %v576_v2  ;;  %vm603_vm14 = vcmp.eq.f32.partialorder %v602_v11, 8.507059e+37  ;;  %v851_v11 = vsel %vm835_vm15, 1, %v8816_v1 }
 0x1b2   : > { %v552_v46 = vadd.f32 %v4796_v7, %v551_v13  ;;  %v590_v13 = vor.u32 1.1754944e-38, %v589_v12  ;;  %vm838_vm4 = vcmp.gt.s32.totalorder %v8767_v23, %v6131_v4  ;;  %vm840_vm5 = vcmp.gt.s32.totalorder %v8827_v25, %v6131_v4 }
 0x1b3   : > { %v586_v55 = vsel %vm6187_vm6, %v4794_v14, %v582_v30  ;;  %v3878_v53 = vadd.f32 -1.0, %v621_v35  ;;  %vm842_vm6 = vcmp.gt.s32.totalorder %v8829_v27, %v6131_v4 }
 0x1d9   : > { %v721_v43 = vpop.permute.xlu0 %720 }
 0x1da   : > { %v6168_v18 = vadd.f32 %v721_v43, %v704_v45  ;;  %v587_v45 = vand.u32 2147483647, %v366_v3  ;;  %v6180_v43 = vpop.eup %4799 }
 0x1db   : > { %v594_v39 = vmul.f32 %v6180_v43, %v6164_v52  ;;  %vm599_vm11 = vweird.f32 %v6180_v43 }
 0x1dc   : > { %4801 = vtanh.f32 %v6168_v18  ;;  %vm588_vm8 = vcmp.eq.f32.partialorder %v587_v45, 8.507059e+37  ;;  %vm6232_vm13 = vmor %vm598_vm10, %vm599_vm11 }
 0x1e1   : > { %v723_v29 = vpop.permute.xlu1 %722  ;;  %v671_v47 = vpop.permute.xlu0 %670 }
 0x1e2   : > { %v4802_v32 = vpop.eup %4801  ;;  %v6197_v48 = vadd.f32 %v723_v29, %v705_v51  ;;  %v695_v17 = vmul.f32 %v671_v47, %v6102_v31  ;;  %v556_v51 = vsel %vm6193_vm7, %v4796_v7, %v552_v46  ;;  %v591_v47 = vsel %vm588_vm8, %v590_v13, %v586_v55 }
 0x1e3   : > { %784 = vrot.lane.b32.xlu2 %v4802_v32, %s5515_s17  ;;  %v561_v12 = vsel %vm558_vm9, %v560_v37, %v556_v51  ;;  %v595_v29 = vsub.f32 1.0, %v594_v39  ;;  %v727_v32 = vpop.permute.xlu2 %726  ;;  %v622_v14 = vmul.f32 2.0, %v591_v47  ;;  %v706_v37 = vmul.f32 %v5373_v6, %v6020_v15 }
 0x1e4   : > { %4803 = vtanh.f32 %v6197_v48  ;;  %734 = vrot.lane.b32.xlu1 %v695_v17, %s5517_s18  ;;  %v620_v56 = vmul.f32 2.0, %v561_v12  ;;  %v6213_v17 = vsel %vm5736_vm3, %v3878_v53, %v576_v2  ;;  %v604_v2 = vand.u32 2147483648, %v6164_v52 }
 0x1e5   : > { %v596_v7 = vmul.f32 %v6180_v43, %v595_v29  ;;  %v3879_v55 = vadd.f32 -1.0, %v622_v14  ;;  %vm843_vm7 = vcmp.gt.s32.totalorder %v8830_v28, %v6131_v4  ;;  %vm839_vm9 = vcmp.gt.s32.totalorder %v8831_v24, %v6131_v4 }
 0x1e6   : > { %v3877_v35 = vadd.f32 -1.0, %v620_v56  ;;  %v852_v56 = vsel %vm836_vm12, 1, %v8816_v1  ;;  %v605_v29 = vor.u32 1.1754944e-38, %v604_v2 }
 0x1e7   : > { %v597_v46 = vadd.f32 %v6180_v43, %v596_v7  ;;  %v6239_v51 = vsel %vm5736_vm3, %v3879_v55, %v591_v47 }
 0x1e8   : > { %v6245_v52 = vsel %vm5736_vm3, %v3877_v35, %v561_v12  ;;  %v708_v35 = vmul.f32 %v5365_v62, %v6045_v44 }
 0x1e9   : > { %v673_v26 = vpop.permute.xlu0 %672  ;;  %v675_v5 = vpop.permute.xlu1 %674  ;;  %v601_v14 = vsel %vm6232_vm13, %v6180_v43, %v597_v46 }
 0x1ea   : > { %v4804_v30 = vpop.eup %4803  ;;  %v696_v45 = vmul.f32 %v673_v26, %v6112_v54  ;;  %v707_v26 = vmul.f32 %v5369_v63, %v6037_v42  ;;  %v606_v47 = vsel %vm603_vm14, %v605_v29, %v601_v14  ;;  %v697_v12 = vmul.f32 %v675_v5, %v6116_v10 }
 0x1eb   : > { %786 = vrot.lane.b32.xlu0 %v4804_v30, %s5515_s17  ;;  %v709_v5 = vmul.f32 %v5361_v61, %v6053_v8  ;;  %v699_v14 = vmul.f32 %v6182_v16, %v6079_v40  ;;  %v853_v16 = vsel %vm837_vm1, 1, %v8816_v1 }
 0x1ec   : > { %682 = vrot.lane.b32.xlu1 %v6213_v17, %s5515_s17  ;;  %736 = vrot.lane.b32.xlu2 %v696_v45, %s5517_s18  ;;  %v6228_v3 = vadd.f32 %v727_v32, %v707_v26  ;;  %v6247_v32 = vpop.permute.xlu2 %869  ;;  %v623_v45 = vmul.f32 2.0, %v606_v47 }
 0x1ed   : > { %vm914_vm8 = vcmp.eq.s32.totalorder %v6247_v32, 1 }
 0x1ee   : > { %4805 = vtanh.f32 %v6228_v3  ;;  %v3880_v26 = vadd.f32 -1.0, %v623_v45  ;;  %v854_v45 = vsel %vm838_vm4, 1, %v8816_v1 }
 0x1f1   : > { %v725_v39 = vpop.permute.xlu1 %724  ;;  %v731_v2 = vpop.permute.xlu0 %730 }
 0x1f2   : > { %v6241_v53 = vadd.f32 %v725_v39, %v706_v37  ;;  %v6271_v37 = vadd.f32 %v731_v2, %v709_v5  ;;  %v6275_v39 = vsel %vm5736_vm3, %v3880_v26, %v606_v47  ;;  %v712_v26 = vmul.f32 %v5349_v58, %v6112_v54 }
 0x1f3   : > { %680 = vrot.lane.b32.xlu0 %v6245_v52, %s5515_s17 }
 0x1f4   : > { %875 = vperm.xlu1 %4734, %v852_v56   ;;  %684 = vrot.lane.b32.xlu2 %v6239_v51, %s5515_s17  ;;  %4807 = vtanh.f32 %v6241_v53  ;;  %v4806_v7 = vpop.eup %4805  ;;  %v729_v43 = vpop.permute.xlu2 %728 }
 0x1f5   : > { %v6268_v46 = vadd.f32 %v729_v43, %v708_v35 }
 0x1f7   : > { %4809 = vtanh.f32 %v6268_v46 }
 0x1f8   : > { %4811 = vtanh.f32 %v6271_v37 }
 0x1f9   : > { %v677_v30 = vpop.permute.xlu1 %676 }
 0x1fa   : > { %v4808_v55 = vpop.eup %4807  ;;  %v698_v56 = vmul.f32 %v677_v30, %v6138_v38 }
 0x1fb   : > { %738 = vrot.lane.b32.xlu0 %v697_v12, %s5517_s18 }
 0x1fc   : > { %788 = vrot.lane.b32.xlu1 %v4808_v55, %s5515_s17  ;;  %790 = vrot.lane.b32.xlu2 %v4806_v7, %s5515_s17  ;;  %v856_v55 = vsel %vm840_vm5, 1, %v8816_v1 }
 0x1fd   : > { %v4810_v47 = vpop.eup %4809 }
 0x1fe   : > { %v4812_v12 = vpop.eup %4811 }
 0x201   : > { %v867_v13 = vpop.permute.xlu1 %866 }
 0x202   : > { %vm913_vm0 = vcmp.eq.s32.totalorder %v867_v13, 1 }
 0x203   : > { %v6281_v29 = vsel %vm913_vm0, %v6168_v18, %v5381_v36  ;;  %872 = vperm.xlu0 %4736, %v851_v11   ;;  %v733_v18 = vpop.permute.xlu0 %732  ;;  %v710_v36 = vmul.f32 %v5357_v60, %v6060_v41  ;;  %v858_v11 = vsel %vm842_vm6, 1, %v8816_v1 }
 0x204   : > { %8826 = vst [vmem:[#allocation57_spill] sm:$0xff] %v6281_v29  ;;  %686 = vrot.lane.b32.xlu1 %v6275_v39, %s5515_s17  ;;  %740 = vrot.lane.b32.xlu2 %v698_v56, %s5517_s18 }
 0x205   : > { %v6300_v30 = vadd.f32 %v733_v18, %v710_v36 }
 0x207   : > { %4813 = vtanh.f32 %v6300_v30 }
 0x20b   : > { %742 = vrot.lane.b32.xlu0 %v699_v14, %s5517_s18 }
 0x20c   : > { %792 = vrot.lane.b32.xlu1 %v4810_v47, %s5515_s17  ;;  %794 = vrot.lane.b32.xlu2 %v4812_v12, %s5515_s17  ;;  %v859_v12 = vsel %vm843_vm7, 1, %v8816_v1 }
 0x20d   : > { %v4814_v7 = vpop.eup %4813 }
 0x213   : > { %878 = vperm.xlu0 %4736, %v853_v16  }
 0x214   : > { %881 = vperm.xlu1 %4734, %v854_v45  }
 0x21c   : > { %796 = vrot.lane.b32.xlu1 %v4814_v7, %s5515_s17 }
 0x224   : > { %887 = vperm.xlu1 %4734, %v856_v55  }
 0x23d   : > { %v785_v43 = vpop.permute.xlu2 %784 }
 0x23e   : > { %v816_v14 = vmul.f32 %v785_v43, %v5992_v0 }
 0x240   : > { %v6326_v45 = vsel %vm913_vm0, %v816_v14, %v5445_v33 }
 0x246   : > { %v737_v35 = vpop.permute.xlu2 %736 }
 0x247   : > { %v6310_v2 = vadd.f32 %v737_v35, %v712_v26  ;;  %v855_v26 = vsel %vm839_vm9, 1, %v8816_v1 }
 0x249   : > { %8828 = vst [vmem:[#allocation58_spill] sm:$0xff] %v6310_v2  ;;  %4815 = vtanh.f32 %v6310_v2 }
 0x24e   : > { %v685_v13 = vpop.permute.xlu2 %684 }
 0x24f   : > { %v4816_v5 = vpop.eup %4815 }
 0x250   : > { %800 = vrot.lane.b32.xlu1 %v4816_v5, %s5515_s17 }
 0x256   : > { %v735_v56 = vpop.permute.xlu1 %734  ;;  %v791_v14 = vpop.permute.xlu2 %790 }
 0x258   : > { %893 = vperm.xlu1 %4734, %v858_v11  }
 0x25d   : > { %v787_v47 = vpop.permute.xlu0 %786 }
 0x25e   : > { %v817_v18 = vmul.f32 %v787_v47, %v6006_v9  ;;  %v683_v36 = vpop.permute.xlu1 %682  ;;  %v711_v9 = vmul.f32 %v5353_v59, %v6102_v31  ;;  %v819_v47 = vmul.f32 %v791_v14, %v6037_v42 }
 0x25f   : > { %v701_v16 = vmul.f32 %v683_v36, %v6213_v17 }
 0x260   : > { %896 = vperm.xlu1 %4734, %v859_v12   ;;  %v6331_v7 = vsel %vm914_vm8, %v817_v18, %v5441_v19  ;;  %v6340_v33 = vadd.f32 %v735_v56, %v711_v9  ;;  %v713_v56 = vmul.f32 %v5345_v57, %v6116_v10 }
 0x261   : > { %746 = vrot.lane.b32.xlu0 %v701_v16, %s5517_s18  ;;  %v997_v0 = vpack.c.bf16 %v6331_v7, %v6326_v45  ;;  %v702_v16 = vmul.f32 %v685_v13, %v6239_v51  ;;  %v741_v13 = vpop.permute.xlu2 %740 }
 0x262   : > { %4817 = vtanh.f32 %v6340_v33 }
 0x263   : > { %1013 = vmatmul.bf16.vlgmr.msra.gmra.mxu1 %v997_v0 }
 0x265   : > { %v681_v55 = vpop.permute.xlu0 %680 }
 0x266   : > { %v700_v43 = vmul.f32 %v681_v55, %v6245_v52  ;;  %v6343_v19 = vpop.permute.xlu1 %875 }
 0x267   : > { %vm916_vm10 = vcmp.eq.s32.totalorder %v6343_v19, 1 }
 0x268   : > { %744 = vrot.lane.b32.xlu2 %v700_v43, %s5517_s18  ;;  %v4818_v11 = vpop.eup %4817  ;;  %v6369_v42 = vsel %vm916_vm10, %v819_v47, %v5433_v49  ;;  %v8835_v43 = vld [vmem:[#allocation42_spill] sm:$0xff]  ;;  %v8837_v49 = vld [vmem:[#allocation41_spill] sm:$0xff] }
 0x269   : > { %884 = vperm.xlu0 %4736, %v855_v26   ;;  %8834 = vst [vmem:[#allocation61_spill] sm:$0xff] %v6369_v42  ;;  %v8836_v26 = vld [vmem:[#allocation29_spill] sm:$0xff] }
 0x26a   : > { %vm841_vm12 = vcmp.gt.s32.totalorder %v8836_v26, %v6131_v4 }
 0x26b   : > { %v857_v47 = vsel %vm841_vm12, 1, %v8816_v1 }
 0x26d   : > { %v739_v35 = vpop.permute.xlu0 %738 }
 0x26e   : > { %v789_v5 = vpop.permute.xlu1 %788  ;;  %v6353_v12 = vadd.f32 %v739_v35, %v713_v56  ;;  %v715_v35 = vmul.f32 %v8837_v49, %v6079_v40 }
 0x26f   : > { %v818_v18 = vmul.f32 %v789_v5, %v6020_v15 }
 0x270   : > { %798 = vrot.lane.b32.xlu2 %v4818_v11, %s5515_s17  ;;  %8832 = vst [vmem:[#allocation59_spill] sm:$0xff] %v6353_v12  ;;  %4819 = vtanh.f32 %v6353_v12 }
 0x275   : > { %v6356_v36 = vpop.permute.xlu0 %872 }
 0x276   : > { %vm915_vm11 = vcmp.eq.s32.totalorder %v6356_v36, 1  ;;  %v687_v0 = vpop.permute.xlu1 %686 }
 0x277   : > { %v703_v9 = vmul.f32 %v687_v0, %v6275_v39  ;;  %v6364_v55 = vsel %vm915_vm11, %v818_v18, %v5437_v50  ;;  %v714_v50 = vmul.f32 %v8835_v43, %v6138_v38  ;;  %v4820_v18 = vpop.eup %4819 }
 0x278   : > { %8833 = vst [vmem:[#allocation60_spill] sm:$0xff] %v6364_v55  ;;  %748 = vrot.lane.b32.xlu2 %v702_v16, %s5517_s18  ;;  %v998_v15 = vpack.c.bf16 %v6369_v42, %v6364_v55  ;;  %v795_v16 = vpop.permute.xlu2 %794 }
 0x279   : > { %750 = vrot.lane.b32.xlu0 %v703_v9, %s5517_s18  ;;  %v6382_v5 = vadd.f32 %v741_v13, %v714_v50 }
 0x27a   : > { %1018 = vmatmul.bf16.gmra.mxu1 %v998_v15  ;;  %v821_v15 = vmul.f32 %v795_v16, %v6053_v8 }
 0x27b   : > { %8838 = vst [vmem:[#allocation62_spill] sm:$0xff] %v6382_v5  ;;  %4821 = vtanh.f32 %v6382_v5  ;;  %v8849_v5 = vld [vmem:[#allocation34_spill] sm:$0xff] }
 0x27c   : > { %vm846_vm4 = vcmp.gt.s32.totalorder %v8849_v5, %v6131_v4 }
 0x27d   : > { %v743_v11 = vpop.permute.xlu0 %742 }
 0x27e   : > { %v6384_v14 = vadd.f32 %v743_v11, %v715_v35  ;;  %v793_v56 = vpop.permute.xlu1 %792  ;;  %v8840_v35 = vld [vmem:[#allocation56_spill] sm:$0xff] }
 0x27f   : > { %v820_v0 = vmul.f32 %v793_v56, %v6045_v44  ;;  %v8842_v44 = vld [vmem:[#allocation55_spill] sm:$0xff] }
 0x280   : > { %8839 = vst [vmem:[#allocation63_spill] sm:$0xff] %v6384_v14  ;;  %802 = vrot.lane.b32.xlu2 %v4820_v18, %s5515_s17  ;;  %4823 = vtanh.f32 %v6384_v14  ;;  %v8844_v18 = vld [vmem:[#allocation32_spill] sm:$0xff] }
 0x281   : > { %890 = vperm.xlu0 %4736, %v857_v47   ;;  %v4822_v50 = vpop.eup %4821  ;;  %vm844_vm15 = vcmp.gt.s32.totalorder %v8844_v18, %v6131_v4 }
 0x282   : > { %v860_v16 = vsel %vm844_vm15, 1, %v8816_v1 }
 0x285   : > { %v6391_v9 = vpop.permute.xlu0 %878 }
 0x286   : > { %vm917_vm13 = vcmp.eq.s32.totalorder %v6391_v9, 1  ;;  %v6395_v13 = vpop.permute.xlu1 %881  ;;  %v4824_v47 = vpop.eup %4823 }
 0x287   : > { %vm918_vm14 = vcmp.eq.s32.totalorder %v6395_v13, 1  ;;  %v6401_v11 = vsel %vm917_vm13, %v820_v0, %v8840_v35 }
 0x288   : > { %8841 = vst [vmem:[#allocation56_spill] sm:$0xff] %v6401_v11  ;;  %804 = vrot.lane.b32.xlu2 %v4822_v50, %s5515_s17  ;;  %v6407_v56 = vsel %vm918_vm14, %v821_v15, %v8842_v44  ;;  %v8845_v50 = vld [vmem:[#allocation33_spill] sm:$0xff]  ;;  %v8847_v44 = vld [vmem:[#allocation40_spill] sm:$0xff] }
 0x289   : > { %8843 = vst [vmem:[#allocation55_spill] sm:$0xff] %v6407_v56  ;;  %806 = vrot.lane.b32.xlu0 %v4824_v47, %s5515_s17  ;;  %v999_v8 = vpack.c.bf16 %v6407_v56, %v6401_v11  ;;  %vm845_vm0 = vcmp.gt.s32.totalorder %v8845_v50, %v6131_v4 }
 0x28a   : > { %v861_v35 = vsel %vm845_vm0, 1, %v8816_v1 }
 0x28b   : > { %1023 = vmatmul.bf16.gmra.mxu1 %v999_v8  ;;  %v716_v8 = vmul.f32 %v8847_v44, %v6245_v52 }
 0x28e   : > { %v797_v0 = vpop.permute.xlu1 %796 }
 0x290   : > { %899 = vperm.xlu2 %4735, %v860_v16  }
 0x296   : > { %v888_v15 = vpop.permute.xlu1 %887 }
 0x297   : > { %vm920_vm1 = vcmp.eq.s32.totalorder %v888_v15, 1 }
 0x298   : > { %v6421_v47 = vsel %vm920_vm1, %v6340_v33, %v5353_v59  ;;  %902 = vperm.xlu2 %4735, %v861_v35   ;;  %v862_v59 = vsel %vm846_vm4, 1, %v8816_v1  ;;  %v8850_v33 = vld [vmem:[#allocation39_spill] sm:$0xff] }
 0x299   : > { %8846 = vst [vmem:[#allocation64_spill] sm:$0xff] %v6421_v47  ;;  %v717_v35 = vmul.f32 %v8850_v33, %v6213_v17  ;;  %v4299_v33 = vld [vmem:[%s5975_s16 + $0x40] sm:$0xff]  }
 0x2c2   : > { %v745_v56 = vpop.permute.xlu2 %744  ;;  %v801_v15 = vpop.permute.xlu1 %800 }
 0x2c3   : > { %v6425_v11 = vadd.f32 %v745_v56, %v716_v8  ;;  %v8852_v56 = vld [vmem:[#allocation35_spill] sm:$0xff]  ;;  %v8855_v8 = vld [vmem:[#allocation54_spill] sm:$0xff] }
 0x2c4   : > { %vm847_vm5 = vcmp.gt.s32.totalorder %v8852_v56, %v6131_v4  ;;  %v4198_v56 = vunpack.c.l.bf16 %v4299_v33 }
 0x2c5   : > { %8848 = vst [vmem:[#allocation65_spill] sm:$0xff] %v6425_v11  ;;  %4825 = vtanh.f32 %v6425_v11  ;;  %v863_v42 = vsel %vm847_vm5, 1, %v8816_v1 }
 0x2ca   : > { %v799_v50 = vpop.permute.xlu2 %798 }
 0x2cb   : > { %v4826_v16 = vpop.eup %4825  ;;  %v823_v5 = vmul.f32 %v799_v50, %v6102_v31  ;;  %v8857_v50 = vld [vmem:[#allocation53_spill] sm:$0xff] }
 0x2cc   : > { %808 = vrot.lane.b32.xlu0 %v4826_v16, %s5515_s17  ;;  %v8853_v16 = vld [vmem:[#allocation38_spill] sm:$0xff] }
 0x2cd   : > { %v718_v43 = vmul.f32 %v8853_v16, %v6239_v51 }
 0x2d2   : > { %v749_v11 = vpop.permute.xlu2 %748 }
 0x2d3   : > { %v747_v18 = vpop.permute.xlu0 %746  ;;  %v6443_v55 = vadd.f32 %v749_v11, %v718_v43  ;;  %v6458_v43 = vsel %vm920_vm1, %v823_v5, %v8857_v50  ;;  %v8859_v5 = vld [vmem:[#allocation36_spill] sm:$0xff] }
 0x2d4   : > { %v6434_v44 = vadd.f32 %v747_v18, %v717_v35  ;;  %905 = vperm.xlu0 %4736, %v862_v59   ;;  %v822_v18 = vmul.f32 %v797_v0, %v6060_v41  ;;  %8858 = vst [vmem:[#allocation53_spill] sm:$0xff] %v6458_v43  ;;  %vm848_vm7 = vcmp.gt.s32.totalorder %v8859_v5, %v6131_v4 }
 0x2d5   : > { %8854 = vst [vmem:[#allocation67_spill] sm:$0xff] %v6443_v55  ;;  %v824_v5 = vmul.f32 %v801_v15, %v6112_v54 }
 0x2d6   : > { %8851 = vst [vmem:[#allocation66_spill] sm:$0xff] %v6434_v44  ;;  %4827 = vtanh.f32 %v6434_v44 }
 0x2d7   : > { %4829 = vtanh.f32 %v6443_v55 }
 0x2db   : > { %v6447_v35 = vpop.permute.xlu0 %884 }
 0x2dc   : > { %v4828_v59 = vpop.eup %4827  ;;  %vm919_vm6 = vcmp.eq.s32.totalorder %v6447_v35, 1  ;;  %908 = vperm.xlu0 %4736, %v863_v42  }
 0x2dd   : > { %810 = vrot.lane.b32.xlu1 %v4828_v59, %s5515_s17  ;;  %v6454_v31 = vsel %vm919_vm6, %v822_v18, %v8855_v8  ;;  %v4830_v59 = vpop.eup %4829  ;;  %v4199_v8 = vunpack.c.h.bf16 %v4299_v33 }
 0x2de   : > { %8856 = vst [vmem:[#allocation54_spill] sm:$0xff] %v6454_v31  ;;  %v1000_v41 = vpack.c.bf16 %v6458_v43, %v6454_v31  ;;  %v8860_v43 = vld [vmem:[#allocation37_spill] sm:$0xff] }
 0x2e0   : > { %v1014_v11 = vpop.f32.mrf.mxu1  ;;  %1028 = vmatmul.bf16.gmra.mxu1 %v1000_v41  ;;  %v719_v41 = vmul.f32 %v8860_v43, %v6275_v39 }
 0x2e1   : > { %v1054_v42 = vadd.f32 %v4198_v56, %v1014_v11  ;;  %v864_v56 = vsel %vm848_vm7, 1, %v8816_v1  ;;  %v803_v11 = vpop.permute.xlu2 %802 }
 0x2e3   : > { %v1070_v0 = vmul.f32 2.0, %v1054_v42 }
 0x2e5   : > { %v1086_v16 = vsel %vm5736_vm3, %v1070_v0, %v1054_v42  ;;  %812 = vrot.lane.b32.xlu1 %v4830_v59, %s5515_s17 }
 0x2e6   : > { %v3899_v18 = vmul.f32 -1.442695, %v1086_v16 }
 0x2e8   : > { %4831 = vpow2.f32 %v3899_v18  ;;  %v1016_v50 = vpop.f32.mrf.mxu1  ;;  %v825_v18 = vmul.f32 %v803_v11, %v6116_v10  ;;  %v8866_v10 = vld [vmem:[#allocation51_spill] sm:$0xff] }
 0x2e9   : > { %v1055_v55 = vadd.f32 %v4199_v8, %v1016_v50  ;;  %v6476_v8 = vpop.permute.xlu1 %893  ;;  %v4300_v50 = vld [vmem:[%s5975_s16 + $0x48] sm:$0xff]  }
 0x2ea   : > { %8862 = vst [vmem:[#allocation69_spill] sm:$0xff] %v6476_v8  ;;  %vm922_vm9 = vcmp.eq.s32.totalorder %v6476_v8, 1  ;;  %v4203_v44 = vunpack.c.h.bf16 %v4300_v50 }
 0x2eb   : > { %v1071_v31 = vmul.f32 2.0, %v1055_v55  ;;  %v751_v42 = vpop.permute.xlu0 %750  ;;  %v6494_v54 = vsel %vm922_vm9, %v825_v18, %v8866_v10 }
 0x2ec   : > { %v6471_v0 = vadd.f32 %v751_v42, %v719_v41  ;;  %8867 = vst [vmem:[#allocation51_spill] sm:$0xff] %v6494_v54 }
 0x2ed   : > { %v1087_v33 = vsel %vm5736_vm3, %v1071_v31, %v1055_v55  ;;  %911 = vperm.xlu1 %4734, %v864_v56   ;;  %v4202_v55 = vunpack.c.l.bf16 %v4300_v50  ;;  %v805_v31 = vpop.permute.xlu2 %804  ;;  %v8864_v56 = vld [vmem:[#allocation52_spill] sm:$0xff] }
 0x2ee   : > { %8861 = vst [vmem:[#allocation68_spill] sm:$0xff] %v6471_v0  ;;  %v4832_v16 = vpop.eup %4831  ;;  %v3900_v4 = vmul.f32 -1.442695, %v1087_v33  ;;  %4833 = vtanh.f32 %v6471_v0 }
 0x2ef   : > { %v1150_v59 = vadd.f32 1.0, %v4832_v16 }
 0x2f0   : > { %4835 = vpow2.f32 %v3900_v4 }
 0x2f1   : > { %4837 = vrcp.f32 %v1150_v59  ;;  %v1177_v14 = vand.u32 2147483648, %v1150_v59  ;;  %vm1171_vm0 = vweird.f32 %v1150_v59 }
 0x2f3   : > { %v6481_v41 = vpop.permute.xlu0 %890  ;;  %v1178_v50 = vor.u32 1.1754944e-38, %v1177_v14 }
 0x2f4   : > { %8863 = vst [vmem:[#allocation70_spill] sm:$0xff] %v6481_v41  ;;  %v4834_v42 = vpop.eup %4833  ;;  %vm921_vm12 = vcmp.eq.s32.totalorder %v6481_v41, 1 }
 0x2f5   : > { %814 = vrot.lane.b32.xlu2 %v4834_v42, %s5515_s17  ;;  %v6489_v33 = vsel %vm921_vm12, %v824_v5, %v8864_v56 }
 0x2f6   : > { %8865 = vst [vmem:[#allocation52_spill] sm:$0xff] %v6489_v33  ;;  %v4836_v15 = vpop.eup %4835  ;;  %v1001_v11 = vpack.c.bf16 %v6494_v54, %v6489_v33  ;;  %v1175_v54 = vand.u32 2147483647, %v1150_v59 }
 0x2f7   : > { %v4838_v16 = vpop.eup %4837  ;;  %v6498_v4 = vadd.f32 1.0, %v4836_v15  ;;  %v1019_v0 = vpop.f32.mrf.mxu1 }
 0x2f8   : > { %v1056_v43 = vadd.f32 %v4202_v55, %v1019_v0  ;;  %1033 = vmatmul.bf16.gmra.mxu1 %v1001_v11  ;;  %v1167_v42 = vmul.f32 %v4838_v16, %v1150_v59  ;;  %vm1172_vm15 = vweird.f32 %v4838_v16  ;;  %v6503_v0 = vpop.permute.xlu2 %899  ;;  %vm1176_vm4 = vcmp.eq.f32.partialorder %v1175_v54, 8.507059e+37 }
 0x2f9   : > { %4839 = vrcp.f32 %v6498_v4  ;;  %8868 = vst [vmem:[#allocation71_spill] sm:$0xff] %v6503_v0  ;;  %vm1173_vm1 = vmor %vm1171_vm0, %vm1172_vm15  ;;  %vm8615_vm5 = vcmp.eq.s32.totalorder %v6503_v0, 1  ;;  %v1192_v54 = vand.u32 2147483648, %v6498_v4  ;;  %vm1186_vm0 = vweird.f32 %v6498_v4 }
 0x2fa   : > { %v1072_v5 = vmul.f32 2.0, %v1056_v43  ;;  %v1168_v56 = vsub.f32 1.0, %v1167_v42  ;;  %v6506_v42 = vpop.permute.xlu1 %896 }
 0x2fb   : > { %v807_v10 = vpop.permute.xlu0 %806  ;;  %8869 = vst [vmem:[#allocation72_spill] sm:$0xff] %v6506_v42  ;;  %vm8614_vm7 = vcmp.eq.s32.totalorder %v6506_v42, 1 }
 0x2fc   : > { %v1088_v18 = vsel %vm5736_vm3, %v1072_v5, %v1056_v43  ;;  %v1169_v49 = vmul.f32 %v4838_v16, %v1168_v56  ;;  %v827_v55 = vmul.f32 %v807_v10, %v6079_v40  ;;  %v8870_v40 = vld [vmem:[#allocation49_spill] sm:$0xff] }
 0x2fd   : > { %v3901_v33 = vmul.f32 -1.442695, %v1088_v18 }
 0x2fe   : > { %v1170_v15 = vadd.f32 %v4838_v16, %v1169_v49  ;;  %v826_v49 = vmul.f32 %v805_v31, %v6138_v38  ;;  %v6516_v14 = vsel %vm8615_vm5, %v827_v55, %v8870_v40 }
 0x2ff   : > { %v4840_v26 = vpop.eup %4839  ;;  %4841 = vpow2.f32 %v3901_v33  ;;  %v1021_v11 = vpop.f32.mrf.mxu1  ;;  %v4301_v33 = vld [vmem:[%s5975_s16 + $0x50] sm:$0xff]   ;;  %8871 = vst [vmem:[#allocation49_spill] sm:$0xff] %v6516_v14 }
 0x300   : > { %v1057_v43 = vadd.f32 %v4203_v44, %v1021_v11  ;;  %v1174_v5 = vsel %vm1173_vm1, %v4838_v16, %v1170_v15  ;;  %v1182_v56 = vmul.f32 %v4840_v26, %v6498_v4  ;;  %v1190_v44 = vand.u32 2147483647, %v6498_v4 }
 0x301   : > { %v1179_v59 = vsel %vm1176_vm4, %v1178_v50, %v1174_v5  ;;  %vm1187_vm15 = vweird.f32 %v4840_v26  ;;  %v4206_v11 = vunpack.c.l.bf16 %v4301_v33  ;;  %v8872_v50 = vld [vmem:[#allocation50_spill] sm:$0xff] }
 0x302   : > { %v1073_v18 = vmul.f32 2.0, %v1057_v43  ;;  %v1406_v28 = vmul.f32 2.0, %v1179_v59  ;;  %v1183_v8 = vsub.f32 1.0, %v1182_v56  ;;  %v6525_v5 = vsel %vm8614_vm7, %v826_v49, %v8872_v50  ;;  %vm1188_vm1 = vmor %vm1186_vm0, %vm1187_vm15 }
 0x303   : > { %8873 = vst [vmem:[#allocation50_spill] sm:$0xff] %v6525_v5  ;;  %vm1191_vm4 = vcmp.eq.f32.partialorder %v1190_v44, 8.507059e+37 }
 0x304   : > { %v1089_v38 = vsel %vm5736_vm3, %v1073_v18, %v1057_v43  ;;  %v3915_v31 = vadd.f32 -1.0, %v1406_v28  ;;  %v1184_v16 = vmul.f32 %v4840_v26, %v1183_v8  ;;  %v1002_v28 = vpack.c.bf16 %v6516_v14, %v6525_v5 }
 0x305   : > { %v4842_v10 = vpop.eup %4841  ;;  %v3902_v15 = vmul.f32 -1.442695, %v1089_v38  ;;  %v1193_v43 = vor.u32 1.1754944e-38, %v1192_v54 }
 0x306   : > { %v1152_v55 = vadd.f32 1.0, %v4842_v10  ;;  %v6530_v56 = vsel %vm5736_vm3, %v3915_v31, %v1179_v59  ;;  %v1185_v8 = vadd.f32 %v4840_v26, %v1184_v16 }
 0x307   : > { %4843 = vpow2.f32 %v3902_v15  ;;  %1454 = vrot.lane.b32.xlu2 %v6530_v56, %s5515_s17  ;;  %v4207_v15 = vunpack.c.h.bf16 %v4301_v33 }
 0x308   : > { %4845 = vrcp.f32 %v1152_v55  ;;  %v1024_v49 = vpop.f32.mrf.mxu1  ;;  %1038 = vmatmul.bf16.gmra.mxu1 %v1002_v28  ;;  %v1189_v18 = vsel %vm1188_vm1, %v4840_v26, %v1185_v8  ;;  %v1207_v8 = vand.u32 2147483648, %v1152_v55  ;;  %v1205_v33 = vand.u32 2147483647, %v1152_v55 }
 0x309   : > { %v1058_v4 = vadd.f32 %v4206_v11, %v1024_v49  ;;  %v1194_v40 = vsel %vm1191_vm4, %v1193_v43, %v1189_v18  ;;  %vm1201_vm0 = vweird.f32 %v1152_v55 }
 0x30a   : > { %v1407_v38 = vmul.f32 2.0, %v1194_v40  ;;  %vm1206_vm4 = vcmp.eq.f32.partialorder %v1205_v33, 8.507059e+37 }
 0x30b   : > { %v1074_v59 = vmul.f32 2.0, %v1058_v4 }
 0x30c   : > { %v3916_v31 = vadd.f32 -1.0, %v1407_v38 }
 0x30d   : > { %v4844_v10 = vpop.eup %4843  ;;  %v1090_v16 = vsel %vm5736_vm3, %v1074_v59, %v1058_v4  ;;  %v1208_v59 = vor.u32 1.1754944e-38, %v1207_v8 }
 0x30e   : > { %v4846_v50 = vpop.eup %4845  ;;  %v1153_v14 = vadd.f32 1.0, %v4844_v10  ;;  %v3903_v5 = vmul.f32 -1.442695, %v1090_v16  ;;  %v6540_v54 = vsel %vm5736_vm3, %v3916_v31, %v1194_v40 }
 0x30f   : > { %1456 = vrot.lane.b32.xlu0 %v6540_v54, %s5515_s17  ;;  %v1197_v26 = vmul.f32 %v4846_v50, %v1152_v55  ;;  %vm1202_vm15 = vweird.f32 %v4846_v50 }
 0x310   : > { %4847 = vrcp.f32 %v1153_v14  ;;  %v1026_v44 = vpop.f32.mrf.mxu1  ;;  %vm1203_vm1 = vmor %vm1201_vm0, %vm1202_vm15  ;;  %vm1216_vm15 = vweird.f32 %v1153_v14 }
 0x311   : > { %4849 = vpow2.f32 %v3903_v5  ;;  %v1059_v11 = vadd.f32 %v4207_v15, %v1026_v44  ;;  %v1198_v28 = vsub.f32 1.0, %v1197_v26 }
 0x313   : > { %v1075_v43 = vmul.f32 2.0, %v1059_v11  ;;  %v1199_v49 = vmul.f32 %v4846_v50, %v1198_v28  ;;  %v1222_v28 = vand.u32 2147483648, %v1153_v14 }
 0x315   : > { %v1091_v18 = vsel %vm5736_vm3, %v1075_v43, %v1059_v11  ;;  %v1200_v4 = vadd.f32 %v4846_v50, %v1199_v49  ;;  %v1220_v11 = vand.u32 2147483647, %v1153_v14  ;;  %v1223_v43 = vor.u32 1.1754944e-38, %v1222_v28 }
 0x316   : > { %v4848_v40 = vpop.eup %4847  ;;  %v3904_v38 = vmul.f32 -1.442695, %v1091_v18 }
 0x317   : > { %v4850_v31 = vpop.eup %4849  ;;  %v1204_v10 = vsel %vm1203_vm1, %v4846_v50, %v1200_v4  ;;  %v1212_v5 = vmul.f32 %v4848_v40, %v1153_v14  ;;  %vm1217_vm2 = vweird.f32 %v4848_v40  ;;  %vm1221_vm1 = vcmp.eq.f32.partialorder %v1220_v11, 8.507059e+37 }
 0x318   : > { %v1154_v16 = vadd.f32 1.0, %v4850_v31  ;;  %4851 = vpow2.f32 %v3904_v38  ;;  %v1209_v15 = vsel %vm1206_vm4, %v1208_v59, %v1204_v10  ;;  %vm1218_vm0 = vmor %vm1216_vm15, %vm1217_vm2 }
 0x319   : > { %v1408_v26 = vmul.f32 2.0, %v1209_v15  ;;  %v1213_v44 = vsub.f32 1.0, %v1212_v5 }
 0x31a   : > { %4853 = vrcp.f32 %v1154_v16  ;;  %v1235_v5 = vand.u32 2147483647, %v1154_v16  ;;  %vm1231_vm2 = vweird.f32 %v1154_v16 }
 0x31b   : > { %v3917_v42 = vadd.f32 -1.0, %v1408_v26  ;;  %v1214_v0 = vmul.f32 %v4848_v40, %v1213_v44 }
 0x31d   : > { %v6548_v55 = vsel %vm5736_vm3, %v3917_v42, %v1209_v15  ;;  %v1215_v8 = vadd.f32 %v4848_v40, %v1214_v0  ;;  %v1237_v42 = vand.u32 2147483648, %v1154_v16 }
 0x31e   : > { %v4852_v50 = vpop.eup %4851  ;;  %1458 = vrot.lane.b32.xlu1 %v6548_v55, %s5515_s17 }
 0x31f   : > { %v1155_v49 = vadd.f32 1.0, %v4852_v50  ;;  %v1219_v33 = vsel %vm1218_vm0, %v4848_v40, %v1215_v8  ;;  %v1238_v26 = vor.u32 1.1754944e-38, %v1237_v42  ;;  %vm1236_vm0 = vcmp.eq.f32.partialorder %v1235_v5, 8.507059e+37 }
 0x320   : > { %v4854_v18 = vpop.eup %4853  ;;  %v1224_v4 = vsel %vm1221_vm1, %v1223_v43, %v1219_v33 }
 0x321   : > { %4855 = vrcp.f32 %v1155_v49  ;;  %v1409_v38 = vmul.f32 2.0, %v1224_v4  ;;  %v1227_v59 = vmul.f32 %v4854_v18, %v1154_v16  ;;  %vm1232_vm4 = vweird.f32 %v4854_v18 }
 0x322   : > { %vm1233_vm15 = vmor %vm1231_vm2, %vm1232_vm4  ;;  %v1252_v43 = vand.u32 2147483648, %v1155_v49  ;;  %vm1246_vm7 = vweird.f32 %v1155_v49 }
 0x323   : > { %v3918_v31 = vadd.f32 -1.0, %v1409_v38  ;;  %v1228_v10 = vsub.f32 1.0, %v1227_v59 }
 0x324   : > { %v1253_v16 = vor.u32 1.1754944e-38, %v1252_v43 }
 0x325   : > { %v6554_v0 = vsel %vm5736_vm3, %v3918_v31, %v1224_v4  ;;  %v1229_v14 = vmul.f32 %v4854_v18, %v1228_v10  ;;  %v1250_v4 = vand.u32 2147483647, %v1155_v49 }
 0x326   : > { %1460 = vrot.lane.b32.xlu2 %v6554_v0, %s5515_s17 }
 0x327   : > { %v4856_v40 = vpop.eup %4855  ;;  %v1230_v15 = vadd.f32 %v4854_v18, %v1229_v14  ;;  %vm1251_vm4 = vcmp.eq.f32.partialorder %v1250_v4, 8.507059e+37 }
 0x328   : > { %v1242_v44 = vmul.f32 %v4856_v40, %v1155_v49  ;;  %vm1247_vm1 = vweird.f32 %v4856_v40 }
 0x329   : > { %v1234_v28 = vsel %vm1233_vm15, %v4854_v18, %v1230_v15  ;;  %vm1248_vm5 = vmor %vm1246_vm7, %vm1247_vm1  ;;  %v6570_v15 = vpop.permute.xlu2 %902 }
 0x32a   : > { %v1239_v11 = vsel %vm1236_vm0, %v1238_v26, %v1234_v28  ;;  %v1243_v8 = vsub.f32 1.0, %v1242_v44  ;;  %8874 = vst [vmem:[#allocation73_spill] sm:$0xff] %v6570_v15 }
 0x32b   : > { %v1410_v50 = vmul.f32 2.0, %v1239_v11 }
 0x32c   : > { %v1244_v33 = vmul.f32 %v4856_v40, %v1243_v8 }
 0x32d   : > { %v3919_v38 = vadd.f32 -1.0, %v1410_v50  ;;  %v8878_v50 = vld [vmem:[#allocation47_spill] sm:$0xff] }
 0x32e   : > { %v1245_v59 = vadd.f32 %v4856_v40, %v1244_v33 }
 0x32f   : > { %v6560_v31 = vsel %vm5736_vm3, %v3919_v38, %v1239_v11  ;;  %v8876_v11 = vld [vmem:[#allocation48_spill] sm:$0xff] }
 0x330   : > { %1462 = vrot.lane.b32.xlu0 %v6560_v31, %s5515_s17  ;;  %v1249_v18 = vsel %vm1248_vm5, %v4856_v40, %v1245_v59  ;;  %vm925_vm5 = vcmp.eq.s32.totalorder %v6570_v15, 1 }
 0x331   : > { %v1254_v10 = vsel %vm1251_vm4, %v1253_v16, %v1249_v18 }
 0x332   : > { %v1411_v42 = vmul.f32 2.0, %v1254_v10 }
 0x334   : > { %v3920_v14 = vadd.f32 -1.0, %v1411_v42 }
 0x336   : > { %v6566_v5 = vsel %vm5736_vm3, %v3920_v14, %v1254_v10 }
 0x337   : > { %1464 = vrot.lane.b32.xlu1 %v6566_v5, %s5515_s17 }
 0x33e   : > { %v809_v49 = vpop.permute.xlu0 %808 }
 0x33f   : > { %v828_v26 = vmul.f32 %v809_v49, %v6245_v52 }
 0x341   : > { %v6581_v8 = vsel %vm925_vm5, %v828_v26, %v8876_v11  ;;  %v8884_v11 = vld [vmem:[#allocation45_spill] sm:$0xff] }
 0x342   : > { %8877 = vst [vmem:[#allocation48_spill] sm:$0xff] %v6581_v8 }
 0x346   : > { %v6573_v44 = vpop.permute.xlu0 %905 }
 0x347   : > { %8875 = vst [vmem:[#allocation74_spill] sm:$0xff] %v6573_v44  ;;  %vm8628_vm7 = vcmp.eq.s32.totalorder %v6573_v44, 1  ;;  %v4304_v44 = vld [vmem:[%s5975_s16 + $0x68] sm:$0xff]  }
 0x34e   : > { %v6591_v59 = vpop.permute.xlu0 %908 }
 0x34f   : > { %v811_v40 = vpop.permute.xlu1 %810  ;;  %v815_v4 = vpop.permute.xlu2 %814  ;;  %8880 = vst [vmem:[#allocation75_spill] sm:$0xff] %v6591_v59  ;;  %vm8621_vm2 = vcmp.eq.s32.totalorder %v6591_v59, 1 }
 0x350   : > { %v829_v28 = vmul.f32 %v811_v40, %v6213_v17  ;;  %v4302_v17 = vld [vmem:[%s5975_s16 + $0x58] sm:$0xff]   ;;  %v831_v42 = vmul.f32 %v815_v4, %v6275_v39  ;;  %v8882_v40 = vld [vmem:[#allocation46_spill] sm:$0xff] }
 0x351   : > { %v4210_v38 = vunpack.c.l.bf16 %v4302_v17 }
 0x352   : > { %v6586_v43 = vsel %vm8628_vm7, %v829_v28, %v8878_v50 }
 0x353   : > { %8879 = vst [vmem:[#allocation47_spill] sm:$0xff] %v6586_v43  ;;  %v1003_v52 = vpack.c.bf16 %v6586_v43, %v6581_v8 }
 0x355   : > { %1043 = vmatmul.bf16.gmra.mxu1 %v1003_v52  ;;  %v4211_v52 = vunpack.c.h.bf16 %v4302_v17  ;;  %v4303_v17 = vld [vmem:[%s5975_s16 + $0x60] sm:$0xff]  }
 0x357   : > { %v813_v33 = vpop.permute.xlu1 %812 }
 0x358   : > { %v830_v16 = vmul.f32 %v813_v33, %v6239_v51 }
 0x35a   : > { %v6602_v28 = vsel %vm8621_vm2, %v830_v16, %v8882_v40 }
 0x35b   : > { %8883 = vst [vmem:[#allocation46_spill] sm:$0xff] %v6602_v28 }
 0x35d   : > { %v1029_v18 = vpop.f32.mrf.mxu1 }
 0x35e   : > { %v1060_v10 = vadd.f32 %v4210_v38, %v1029_v18 }
 0x35f   : > { %v6595_v14 = vpop.permute.xlu1 %911 }
 0x360   : > { %8881 = vst [vmem:[#allocation76_spill] sm:$0xff] %v6595_v14  ;;  %v1076_v49 = vmul.f32 2.0, %v1060_v10  ;;  %vm8626_vm15 = vcmp.eq.s32.totalorder %v6595_v14, 1 }
 0x361   : > { %v1455_v26 = vpop.permute.xlu2 %1454  ;;  %v6607_v51 = vsel %vm8626_vm15, %v831_v42, %v8884_v11 }
 0x362   : > { %8885 = vst [vmem:[#allocation45_spill] sm:$0xff] %v6607_v51  ;;  %v1092_v39 = vsel %vm5736_vm3, %v1076_v49, %v1060_v10  ;;  %v1486_v50 = vmul.f32 %v1455_v26, %v6530_v56  ;;  %v1004_v33 = vpack.c.bf16 %v6607_v51, %v6602_v28  ;;  %v4214_v26 = vunpack.c.l.bf16 %v4303_v17 }
 0x363   : > { %v3905_v4 = vmul.f32 -1.442695, %v1092_v39 }
 0x364   : > { %1518 = vrot.lane.b32.xlu2 %v1486_v50, %s5517_s18 }
 0x365   : > { %4857 = vpow2.f32 %v3905_v4  ;;  %v1031_v38 = vpop.f32.mrf.mxu1  ;;  %1048 = vmatmul.bf16.gmra.mxu1 %v1004_v33 }
 0x366   : > { %v1061_v16 = vadd.f32 %v4211_v52, %v1031_v38 }
 0x368   : > { %v1077_v18 = vmul.f32 2.0, %v1061_v16 }
 0x36a   : > { %v1093_v42 = vsel %vm5736_vm3, %v1077_v18, %v1061_v16 }
 0x36b   : > { %v4858_v40 = vpop.eup %4857  ;;  %v3906_v10 = vmul.f32 -1.442695, %v1093_v42  ;;  %v4215_v42 = vunpack.c.h.bf16 %v4303_v17 }
 0x36c   : > { %v1156_v49 = vadd.f32 1.0, %v4858_v40 }
 0x36d   : > { %4859 = vpow2.f32 %v3906_v10 }
 0x36e   : > { %4861 = vrcp.f32 %v1156_v49  ;;  %v1267_v38 = vand.u32 2147483648, %v1156_v49  ;;  %v1265_v16 = vand.u32 2147483647, %v1156_v49  ;;  %vm1261_vm1 = vweird.f32 %v1156_v49 }
 0x370   : > { %vm1266_vm2 = vcmp.eq.f32.partialorder %v1265_v16, 8.507059e+37 }
 0x373   : > { %v4860_v11 = vpop.eup %4859 }
 0x374   : > { %v4862_v51 = vpop.eup %4861  ;;  %v1157_v39 = vadd.f32 1.0, %v4860_v11  ;;  %v1268_v11 = vor.u32 1.1754944e-38, %v1267_v38 }
 0x375   : > { %v1034_v28 = vpop.f32.mrf.mxu1  ;;  %v1257_v50 = vmul.f32 %v4862_v51, %v1156_v49  ;;  %vm1262_vm0 = vweird.f32 %v4862_v51 }
 0x376   : > { %4863 = vrcp.f32 %v1157_v39  ;;  %v1062_v4 = vadd.f32 %v4214_v26, %v1034_v28  ;;  %vm1263_vm4 = vmor %vm1261_vm1, %vm1262_vm0 }
 0x377   : > { %v1258_v33 = vsub.f32 1.0, %v1257_v50 }
 0x378   : > { %v1078_v52 = vmul.f32 2.0, %v1062_v4 }
 0x379   : > { %v1259_v43 = vmul.f32 %v4862_v51, %v1258_v33 }
 0x37a   : > { %v1094_v18 = vsel %vm5736_vm3, %v1078_v52, %v1062_v4  ;;  %v1282_v4 = vand.u32 2147483648, %v1157_v39 }
 0x37b   : > { %v3907_v40 = vmul.f32 -1.442695, %v1094_v18  ;;  %v1260_v10 = vadd.f32 %v4862_v51, %v1259_v43  ;;  %v1280_v43 = vand.u32 2147483647, %v1157_v39 }
 0x37c   : > { %v4864_v8 = vpop.eup %4863 }
 0x37d   : > { %4865 = vpow2.f32 %v3907_v40  ;;  %v1036_v59 = vpop.f32.mrf.mxu1  ;;  %v1264_v28 = vsel %vm1263_vm4, %v4862_v51, %v1260_v10  ;;  %v1272_v26 = vmul.f32 %v4864_v8, %v1157_v39  ;;  %vm1277_vm15 = vweird.f32 %v4864_v8 }
 0x37e   : > { %v1063_v50 = vadd.f32 %v4215_v42, %v1036_v59  ;;  %v1269_v33 = vsel %vm1266_vm2, %v1268_v11, %v1264_v28  ;;  %v4218_v51 = vunpack.c.l.bf16 %v4304_v44  ;;  %vm1276_vm2 = vweird.f32 %v1157_v39 }
 0x37f   : > { %v1412_v14 = vmul.f32 2.0, %v1269_v33  ;;  %v1273_v15 = vsub.f32 1.0, %v1272_v26  ;;  %vm1278_vm0 = vmor %vm1276_vm2, %vm1277_vm15  ;;  %vm1281_vm1 = vcmp.eq.f32.partialorder %v1280_v43, 8.507059e+37 }
 0x380   : > { %v1079_v12 = vmul.f32 2.0, %v1063_v50  ;;  %v1461_v26 = vpop.permute.xlu2 %1460 }
 0x381   : > { %v1457_v52 = vpop.permute.xlu0 %1456  ;;  %v3921_v17 = vadd.f32 -1.0, %v1412_v14  ;;  %v1274_v18 = vmul.f32 %v4864_v8, %v1273_v15  ;;  %v1283_v15 = vor.u32 1.1754944e-38, %v1282_v4  ;;  %v1489_v39 = vmul.f32 %v1461_v26, %v6554_v0 }
 0x382   : > { %v1095_v49 = vsel %vm5736_vm3, %v1079_v12, %v1063_v50  ;;  %v1487_v38 = vmul.f32 %v1457_v52, %v6540_v54 }
 0x383   : > { %v4866_v16 = vpop.eup %4865  ;;  %v3908_v40 = vmul.f32 -1.442695, %v1095_v49  ;;  %v6626_v59 = vsel %vm5736_vm3, %v3921_v17, %v1269_v33  ;;  %v1275_v42 = vadd.f32 %v4864_v8, %v1274_v18  ;;  %v4219_v18 = vunpack.c.h.bf16 %v4304_v44 }
 0x384   : > { %v1158_v10 = vadd.f32 1.0, %v4866_v16  ;;  %1520 = vrot.lane.b32.xlu0 %v1487_v38, %s5517_s18  ;;  %1466 = vrot.lane.b32.xlu1 %v6626_v59, %s5515_s17 }
 0x385   : > { %4867 = vpow2.f32 %v3908_v40  ;;  %v1039_v12 = vpop.f32.mrf.mxu1  ;;  %v1279_v14 = vsel %vm1278_vm0, %v4864_v8, %v1275_v42 }
 0x386   : > { %4869 = vrcp.f32 %v1158_v10  ;;  %v1064_v11 = vadd.f32 %v4218_v51, %v1039_v12  ;;  %v1284_v28 = vsel %vm1281_vm1, %v1283_v15, %v1279_v14  ;;  %v1297_v15 = vand.u32 2147483648, %v1158_v10 }
 0x387   : > { %v1413_v50 = vmul.f32 2.0, %v1284_v28  ;;  %v1295_v14 = vand.u32 2147483647, %v1158_v10  ;;  %vm1291_vm4 = vweird.f32 %v1158_v10 }
 0x388   : > { %v1080_v33 = vmul.f32 2.0, %v1064_v11 }
 0x389   : > { %v3922_v52 = vadd.f32 -1.0, %v1413_v50  ;;  %vm1296_vm0 = vcmp.eq.f32.partialorder %v1295_v14, 8.507059e+37 }
 0x38a   : > { %v1096_v17 = vsel %vm5736_vm3, %v1080_v33, %v1064_v11 }
 0x38b   : > { %v4868_v49 = vpop.eup %4867  ;;  %v3909_v38 = vmul.f32 -1.442695, %v1096_v17  ;;  %v6636_v4 = vsel %vm5736_vm3, %v3922_v52, %v1284_v28 }
 0x38c   : > { %v4870_v8 = vpop.eup %4869  ;;  %v1159_v43 = vadd.f32 1.0, %v4868_v49  ;;  %1468 = vrot.lane.b32.xlu2 %v6636_v4, %s5515_s17  ;;  %1524 = vrot.lane.b32.xlu1 %v1489_v39, %s5517_s18  ;;  %v1298_v39 = vor.u32 1.1754944e-38, %v1297_v15 }
 0x38d   : > { %4871 = vpow2.f32 %v3909_v38  ;;  %v1041_v51 = vpop.f32.mrf.mxu1  ;;  %v1287_v16 = vmul.f32 %v4870_v8, %v1158_v10  ;;  %vm1292_vm15 = vweird.f32 %v4870_v8 }
 0x38e   : > { %4873 = vrcp.f32 %v1159_v43  ;;  %v1065_v40 = vadd.f32 %v4219_v18, %v1041_v51  ;;  %vm1293_vm2 = vmor %vm1291_vm4, %vm1292_vm15  ;;  %vm1306_vm15 = vweird.f32 %v1159_v43 }
 0x38f   : > { %v1288_v42 = vsub.f32 1.0, %v1287_v16  ;;  %v1312_v16 = vand.u32 2147483648, %v1159_v43 }
 0x390   : > { %v1081_v44 = vmul.f32 2.0, %v1065_v40 }
 0x391   : > { %v1289_v12 = vmul.f32 %v4870_v8, %v1288_v42  ;;  %v1313_v14 = vor.u32 1.1754944e-38, %v1312_v16 }
 0x392   : > { %v1097_v11 = vsel %vm5736_vm3, %v1081_v44, %v1065_v40  ;;  %v1310_v40 = vand.u32 2147483647, %v1159_v43 }
 0x393   : > { %v4872_v28 = vpop.eup %4871  ;;  %v3910_v26 = vmul.f32 -1.442695, %v1097_v11  ;;  %v1290_v50 = vadd.f32 %v4870_v8, %v1289_v12 }
 0x394   : > { %v4874_v33 = vpop.eup %4873  ;;  %v1160_v52 = vadd.f32 1.0, %v4872_v28 }
 0x395   : > { %4875 = vpow2.f32 %v3910_v26  ;;  %v1294_v17 = vsel %vm1293_vm2, %v4870_v8, %v1290_v50  ;;  %v1302_v18 = vmul.f32 %v4874_v33, %v1159_v43  ;;  %vm1307_vm1 = vweird.f32 %v4874_v33 }
 0x396   : > { %4877 = vrcp.f32 %v1160_v52  ;;  %v1299_v49 = vsel %vm1296_vm0, %v1298_v39, %v1294_v17  ;;  %vm1308_vm4 = vmor %vm1306_vm15, %vm1307_vm1  ;;  %vm1311_vm2 = vcmp.eq.f32.partialorder %v1310_v40, 8.507059e+37  ;;  %vm1321_vm7 = vweird.f32 %v1160_v52  ;;  %v1459_v40 = vpop.permute.xlu1 %1458 }
 0x397   : > { %v1414_v38 = vmul.f32 2.0, %v1299_v49  ;;  %v1303_v51 = vsub.f32 1.0, %v1302_v18 }
 0x399   : > { %v3923_v42 = vadd.f32 -1.0, %v1414_v38  ;;  %v1304_v57 = vmul.f32 %v4874_v33, %v1303_v51  ;;  %v1325_v38 = vand.u32 2147483647, %v1160_v52 }
 0x39b   : > { %v4876_v44 = vpop.eup %4875  ;;  %v6645_v10 = vsel %vm5736_vm3, %v3923_v42, %v1299_v49  ;;  %v1305_v12 = vadd.f32 %v4874_v33, %v1304_v57  ;;  %v1327_v49 = vand.u32 2147483648, %v1160_v52  ;;  %vm1326_vm15 = vcmp.eq.f32.partialorder %v1325_v38, 8.507059e+37 }
 0x39c   : > { %v4878_v15 = vpop.eup %4877  ;;  %v1161_v8 = vadd.f32 1.0, %v4876_v44  ;;  %1470 = vrot.lane.b32.xlu2 %v6645_v10, %s5515_s17 }
 0x39d   : > { %v1309_v11 = vsel %vm1308_vm4, %v4874_v33, %v1305_v12  ;;  %v1317_v28 = vmul.f32 %v4878_v15, %v1160_v52  ;;  %vm1322_vm0 = vweird.f32 %v4878_v15  ;;  %v1328_v42 = vor.u32 1.1754944e-38, %v1327_v49 }
 0x39e   : > { %4879 = vrcp.f32 %v1161_v8  ;;  %v1314_v26 = vsel %vm1311_vm2, %v1313_v14, %v1309_v11  ;;  %vm1323_vm1 = vmor %vm1321_vm7, %vm1322_vm0  ;;  %v1342_v14 = vand.u32 2147483648, %v1161_v8  ;;  %vm1336_vm2 = vweird.f32 %v1161_v8 }
 0x39f   : > { %v1415_v50 = vmul.f32 2.0, %v1314_v26  ;;  %v1318_v39 = vsub.f32 1.0, %v1317_v28  ;;  %v1340_v28 = vand.u32 2147483647, %v1161_v8 }
 0x3a1   : > { %v3924_v17 = vadd.f32 -1.0, %v1415_v50  ;;  %v1319_v18 = vmul.f32 %v4878_v15, %v1318_v39  ;;  %vm1341_vm0 = vcmp.eq.f32.partialorder %v1340_v28, 8.507059e+37 }
 0x3a3   : > { %v6651_v57 = vsel %vm5736_vm3, %v3924_v17, %v1314_v26  ;;  %v1320_v43 = vadd.f32 %v4878_v15, %v1319_v18  ;;  %v1488_v26 = vmul.f32 %v1459_v40, %v6548_v55 }
 0x3a4   : > { %v4880_v51 = vpop.eup %4879  ;;  %1472 = vrot.lane.b32.xlu0 %v6651_v57, %s5515_s17 }
 0x3a5   : > { %v1324_v33 = vsel %vm1323_vm1, %v4878_v15, %v1320_v43  ;;  %v1332_v16 = vmul.f32 %v4880_v51, %v1161_v8  ;;  %vm1337_vm4 = vweird.f32 %v4880_v51  ;;  %v1343_v15 = vor.u32 1.1754944e-38, %v1342_v14 }
 0x3a6   : > { %v1329_v12 = vsel %vm1326_vm15, %v1328_v42, %v1324_v33  ;;  %vm1338_vm7 = vmor %vm1336_vm2, %vm1337_vm4  ;;  %v6666_v8 = vstv %s961_s20  ;;  %v1502_v14 = vmul.f32 %v6530_v56, %v6281_v29 }
 0x3a7   : > { %v1333_v44 = vsub.f32 1.0, %v1332_v16  ;;  %v1416_v52 = vmul.f32 2.0, %v1329_v12  ;;  %v1463_v16 = vpop.permute.xlu0 %1462 }
 0x3a8   : > { %v1490_v40 = vmul.f32 %v1463_v16, %v6560_v31 }
 0x3a9   : > { %v1334_v11 = vmul.f32 %v4880_v51, %v1333_v44  ;;  %v3925_v18 = vadd.f32 -1.0, %v1416_v52  ;;  %v4305_v52 = vld [vmem:[%s5975_s16 + $0x70] sm:$0xff]  }
 0x3ab   : > { %v1335_v50 = vadd.f32 %v4880_v51, %v1334_v11  ;;  %v6660_v38 = vsel %vm5736_vm3, %v3925_v18, %v1329_v12  ;;  %v8887_v12 = vld [vmem:[#allocation21_spill] sm:$0xff] }
 0x3ac   : > { %1522 = vrot.lane.b32.xlu0 %v1488_v26, %s5517_s18  ;;  %vm1632_vm15 = vcmp.gt.s32.totalorder %v8887_v12, %v6666_v8 }
 0x3ad   : > { %v1339_v39 = vsel %vm1338_vm7, %v4880_v51, %v1335_v50  ;;  %v8886_v51 = vld [vmem:[#allocation20_spill] sm:$0xff]  ;;  %v1648_v28 = vsel %vm1632_vm15, 1, %v8816_v1  ;;  %v4222_v50 = vunpack.c.l.bf16 %v4305_v52 }
 0x3ae   : > { %v1344_v17 = vsel %vm1341_vm0, %v1343_v15, %v1339_v39  ;;  %vm1631_vm1 = vcmp.gt.s32.totalorder %v8886_v51, %v6666_v8  ;;  %v1465_v51 = vpop.permute.xlu1 %1464 }
 0x3af   : > { %v1417_v49 = vmul.f32 2.0, %v1344_v17  ;;  %v1647_v42 = vsel %vm1631_vm1, 1, %v8816_v1 }
 0x3b1   : > { %v3926_v43 = vadd.f32 -1.0, %v1417_v49  ;;  %v4223_v49 = vunpack.c.h.bf16 %v4305_v52 }
 0x3b3   : > { %v6664_v33 = vsel %vm5736_vm3, %v3926_v43, %v1344_v17 }
 0x3b4   : > { %1474 = vrot.lane.b32.xlu0 %v6660_v38, %s5515_s17  ;;  %1476 = vrot.lane.b32.xlu1 %v6664_v33, %s5515_s17 }
 0x3bc   : > { %1664 = vperm.xlu0 %4736, %v1647_v42   ;;  %1526 = vrot.lane.b32.xlu1 %v1490_v40, %s5517_s18  ;;  %v4306_v40 = vld [vmem:[%s5975_s16 + $0x78] sm:$0xff]  }
 0x3be   : > { %v1519_v44 = vpop.permute.xlu2 %1518 }
 0x3bf   : > { %v6681_v11 = vadd.f32 %v1519_v44, %v1502_v14 }
 0x3c1   : > { %8888 = vst [vmem:[#allocation77_spill] sm:$0xff] %v6681_v11  ;;  %4881 = vtanh.f32 %v6681_v11 }
 0x3c4   : > { %1667 = vperm.xlu1 %4734, %v1648_v28   ;;  %v4226_v28 = vunpack.c.l.bf16 %v4306_v40 }
 0x3c7   : > { %v4882_v26 = vpop.eup %4881 }
 0x3cc   : > { %1582 = vrot.lane.b32.xlu1 %v4882_v26, %s5515_s17 }
 0x3d2   : > { %v1044_v15 = vpop.f32.mrf.mxu1 }
 0x3d3   : > { %v1066_v39 = vadd.f32 %v4222_v50, %v1044_v15 }
 0x3d5   : > { %v1082_v17 = vmul.f32 2.0, %v1066_v39 }
 0x3d7   : > { %v1098_v18 = vsel %vm5736_vm3, %v1082_v17, %v1066_v39  ;;  %v4227_v39 = vunpack.c.h.bf16 %v4306_v40 }
 0x3d8   : > { %v3911_v43 = vmul.f32 -1.442695, %v1098_v18 }
 0x3da   : > { %4883 = vpow2.f32 %v3911_v43  ;;  %v1046_v16 = vpop.f32.mrf.mxu1 }
 0x3db   : > { %v1067_v42 = vadd.f32 %v4223_v49, %v1046_v16 }
 0x3dd   : > { %v1083_v44 = vmul.f32 2.0, %v1067_v42 }
 0x3df   : > { %v1099_v14 = vsel %vm5736_vm3, %v1083_v44, %v1067_v42 }
 0x3e0   : > { %v4884_v26 = vpop.eup %4883  ;;  %v3912_v11 = vmul.f32 -1.442695, %v1099_v14 }
 0x3e1   : > { %v1162_v29 = vadd.f32 1.0, %v4884_v26 }
 0x3e2   : > { %4885 = vpow2.f32 %v3912_v11  ;;  %v1049_v50 = vpop.f32.mrf.mxu1 }
 0x3e3   : > { %4887 = vrcp.f32 %v1162_v29  ;;  %v1068_v15 = vadd.f32 %v4226_v28, %v1049_v50  ;;  %v1357_v11 = vand.u32 2147483648, %v1162_v29  ;;  %v1355_v28 = vand.u32 2147483647, %v1162_v29 }
 0x3e4   : > { %vm1351_vm2 = vweird.f32 %v1162_v29 }
 0x3e5   : > { %v1084_v12 = vmul.f32 2.0, %v1068_v15  ;;  %vm1356_vm0 = vcmp.eq.f32.partialorder %v1355_v28, 8.507059e+37 }
 0x3e6   : > { %v6694_v50 = vpop.permute.xlu2 %1468 }
 0x3e7   : > { %v1100_v52 = vsel %vm5736_vm3, %v1084_v12, %v1068_v15 }
 0x3e8   : > { %v4886_v17 = vpop.eup %4885  ;;  %v3913_v18 = vmul.f32 -1.442695, %v1100_v52 }
 0x3e9   : > { %v4888_v49 = vpop.eup %4887  ;;  %v1163_v43 = vadd.f32 1.0, %v4886_v17 }
 0x3ea   : > { %4889 = vpow2.f32 %v3913_v18  ;;  %v1051_v16 = vpop.f32.mrf.mxu1  ;;  %v1347_v42 = vmul.f32 %v4888_v49, %v1162_v29  ;;  %vm1352_vm4 = vweird.f32 %v4888_v49 }
 0x3eb   : > { %4891 = vrcp.f32 %v1163_v43  ;;  %v1069_v44 = vadd.f32 %v4227_v39, %v1051_v16  ;;  %vm1353_vm7 = vmor %vm1351_vm2, %vm1352_vm4  ;;  %v1358_v39 = vor.u32 1.1754944e-38, %v1357_v11  ;;  %v1372_v25 = vand.u32 2147483648, %v1163_v43 }
 0x3ec   : > { %v1348_v14 = vsub.f32 1.0, %v1347_v42  ;;  %vm1366_vm15 = vweird.f32 %v1163_v43 }
 0x3ed   : > { %v1085_v26 = vmul.f32 2.0, %v1069_v44 }
 0x3ee   : > { %v1349_v27 = vmul.f32 %v4888_v49, %v1348_v14 }
 0x3ef   : > { %v1101_v12 = vsel %vm5736_vm3, %v1085_v26, %v1069_v44  ;;  %v1370_v26 = vand.u32 2147483647, %v1163_v43 }
 0x3f0   : > { %v4890_v40 = vpop.eup %4889  ;;  %v3914_v15 = vmul.f32 -1.442695, %v1101_v12  ;;  %v1350_v52 = vadd.f32 %v4888_v49, %v1349_v27 }
 0x3f1   : > { %v4892_v17 = vpop.eup %4891  ;;  %v1164_v18 = vadd.f32 1.0, %v4890_v40  ;;  %v1373_v40 = vor.u32 1.1754944e-38, %v1372_v25  ;;  %vm1371_vm2 = vcmp.eq.f32.partialorder %v1370_v26, 8.507059e+37 }
 0x3f2   : > { %4893 = vpow2.f32 %v3914_v15  ;;  %v1354_v16 = vsel %vm1353_vm7, %v4888_v49, %v1350_v52  ;;  %v1362_v42 = vmul.f32 %v4892_v17, %v1163_v43  ;;  %vm1367_vm1 = vweird.f32 %v4892_v17 }
 0x3f3   : > { %4895 = vrcp.f32 %v1164_v18  ;;  %v1359_v14 = vsel %vm1356_vm0, %v1358_v39, %v1354_v16  ;;  %vm1368_vm4 = vmor %vm1366_vm15, %vm1367_vm1 }
 0x3f4   : > { %v1418_v47 = vmul.f32 2.0, %v1359_v14  ;;  %v1363_v24 = vsub.f32 1.0, %v1362_v42 }
 0x3f6   : > { %v1467_v41 = vpop.permute.xlu1 %1466  ;;  %v3927_v2 = vadd.f32 -1.0, %v1418_v47  ;;  %v1364_v44 = vmul.f32 %v4892_v17, %v1363_v24  ;;  %v1471_v27 = vpop.permute.xlu2 %1470 }
 0x3f7   : > { %v1494_v12 = vmul.f32 %v1471_v27, %v6645_v10  ;;  %v1385_v27 = vand.u32 2147483647, %v1164_v18 }
 0x3f8   : > { %v4894_v29 = vpop.eup %4893  ;;  %v6701_v11 = vsel %vm5736_vm3, %v3927_v2, %v1359_v14  ;;  %v1365_v49 = vadd.f32 %v4892_v17, %v1364_v44  ;;  %v6710_v2 = vsel %vm916_vm10, %v6228_v3, %v5369_v63  ;;  %v1491_v44 = vmul.f32 %v1465_v51, %v6566_v5 }
 0x3f9   : > { %v4896_v28 = vpop.eup %4895  ;;  %1478 = vrot.lane.b32.xlu2 %v6701_v11, %s5515_s17  ;;  %1534 = vrot.lane.b32.xlu1 %v1494_v12, %s5517_s18  ;;  %v1165_v52 = vadd.f32 1.0, %v4894_v29  ;;  %v1505_v16 = vmul.f32 %v6554_v0, %v6710_v2  ;;  %vm1381_vm10 = vweird.f32 %v1164_v18  ;;  %v8889_v29 = vld [vmem:[#allocation44_spill] sm:$0xff]  ;;  %vm1386_vm1 = vcmp.eq.f32.partialorder %v1385_v27, 8.507059e+37 }
 0x3fa   : > { %v1369_v24 = vsel %vm1368_vm4, %v4892_v17, %v1365_v49  ;;  %v1377_v47 = vmul.f32 %v4896_v28, %v1164_v18  ;;  %vm1382_vm7 = vweird.f32 %v4896_v28  ;;  %v1387_v17 = vand.u32 2147483648, %v1164_v18  ;;  %v1521_v49 = vpop.permute.xlu0 %1520 }
 0x3fb   : > { %v1374_v15 = vsel %vm1371_vm2, %v1373_v40, %v1369_v24  ;;  %4897 = vrcp.f32 %v1165_v52  ;;  %vm1383_vm0 = vmor %vm1381_vm10, %vm1382_vm7  ;;  %v6729_v12 = vsel %vm914_vm8, %v6197_v48, %v8889_v29  ;;  %vm1634_vm8 = vcmp.gt.s32.totalorder %v8770_v21, %v6666_v8 }
 0x3fc   : > { %v1419_v43 = vmul.f32 2.0, %v1374_v15  ;;  %v1378_v39 = vsub.f32 1.0, %v1377_v47  ;;  %v1388_v51 = vor.u32 1.1754944e-38, %v1387_v17  ;;  %v1503_v18 = vmul.f32 %v6540_v54, %v6729_v12 }
 0x3fd   : > { %v1402_v27 = vand.u32 2147483648, %v1165_v52  ;;  %vm1396_vm4 = vweird.f32 %v1165_v52  ;;  %vm1633_vm7 = vcmp.gt.s32.totalorder %v8769_v20, %v6666_v8  ;;  %v6760_v29 = vsel %vm915_vm11, %v6241_v53, %v5373_v6 }
 0x3fe   : > { %v1525_v42 = vpop.permute.xlu1 %1524  ;;  %v3928_v25 = vadd.f32 -1.0, %v1419_v43  ;;  %v1379_v14 = vmul.f32 %v4896_v28, %v1378_v39  ;;  %v6733_v47 = vadd.f32 %v1521_v49, %v1503_v18  ;;  %v1492_v43 = vmul.f32 %v1467_v41, %v6626_v59 }
 0x3ff   : > { %v6715_v26 = vadd.f32 %v1525_v42, %v1505_v16  ;;  %v1650_v16 = vsel %vm1634_vm8, 1, %v8816_v1  ;;  %v1504_v49 = vmul.f32 %v6548_v55, %v6760_v29  ;;  %vm1635_vm11 = vcmp.gt.s32.totalorder %v8768_v22, %v6666_v8 }
 0x400   : > { %v6719_v63 = vsel %vm5736_vm3, %v3928_v25, %v1374_v15  ;;  %v1380_v3 = vadd.f32 %v4896_v28, %v1379_v14 }
 0x401   : > { %4899 = vtanh.f32 %v6715_v26  ;;  %1480 = vrot.lane.b32.xlu0 %v6719_v63, %s5515_s17  ;;  %1528 = vrot.lane.b32.xlu2 %v1491_v44, %s5517_s18  ;;  %v4898_v24 = vpop.eup %4897 }
 0x402   : > { %v1384_v19 = vsel %vm1383_vm0, %v4896_v28, %v1380_v3  ;;  %v1493_v28 = vmul.f32 %v6694_v50, %v6636_v4  ;;  %4901 = vtanh.f32 %v6733_v47  ;;  %v1392_v48 = vmul.f32 %v4898_v24, %v1165_v52 }
 0x403   : > { %v1389_v40 = vsel %vm1386_vm1, %v1388_v51, %v1384_v19  ;;  %vm1397_vm15 = vweird.f32 %v4898_v24  ;;  %v1400_v3 = vand.u32 2147483647, %v1165_v52  ;;  %v1403_v51 = vor.u32 1.1754944e-38, %v1402_v27 }
 0x404   : > { %v1420_v39 = vmul.f32 2.0, %v1389_v40  ;;  %v1393_v42 = vsub.f32 1.0, %v1392_v48  ;;  %vm1398_vm2 = vmor %vm1396_vm4, %vm1397_vm15  ;;  %v6783_v48 = vsel %vm917_vm13, %v6268_v46, %v5365_v62  ;;  %vm1636_vm13 = vcmp.gt.s32.totalorder %v8767_v23, %v6666_v8 }
 0x405   : > { %vm1401_vm10 = vcmp.eq.f32.partialorder %v1400_v3, 8.507059e+37  ;;  %v1652_v46 = vsel %vm1636_vm13, 1, %v8816_v1 }
 0x406   : > { %v3929_v32 = vadd.f32 -1.0, %v1420_v39  ;;  %v1394_v25 = vmul.f32 %v4898_v24, %v1393_v42 }
 0x407   : > { %v4900_v15 = vpop.eup %4899 }
 0x408   : > { %1588 = vrot.lane.b32.xlu1 %v4900_v15, %s5515_s17  ;;  %v6747_v41 = vsel %vm5736_vm3, %v3929_v32, %v1389_v40  ;;  %v4902_v50 = vpop.eup %4901  ;;  %v1395_v17 = vadd.f32 %v4898_v24, %v1394_v25  ;;  %v1649_v40 = vsel %vm1633_vm7, 1, %v8816_v1  ;;  %v1506_v32 = vmul.f32 %v6560_v31, %v6783_v48 }
 0x409   : > { %1530 = vrot.lane.b32.xlu2 %v1492_v43, %s5517_s18  ;;  %1532 = vrot.lane.b32.xlu0 %v1493_v28, %s5517_s18 }
 0x40a   : > { %v1399_v19 = vsel %vm1398_vm2, %v4898_v24, %v1395_v17 }
 0x40b   : > { %v1404_v18 = vsel %vm1401_vm10, %v1403_v51, %v1399_v19 }
 0x40c   : > { %v1421_v24 = vmul.f32 2.0, %v1404_v18 }
 0x40e   : > { %v3930_v28 = vadd.f32 -1.0, %v1421_v24  ;;  %v8890_v24 = vld [vmem:[#allocation58_spill] sm:$0xff] }
 0x410   : > { %1482 = vrot.lane.b32.xlu1 %v6747_v41, %s5515_s17  ;;  %v6772_v53 = vsel %vm5736_vm3, %v3930_v28, %v1404_v18  ;;  %v8900_v28 = vld [vmem:[#allocation31_spill] sm:$0xff] }
 0x411   : > { %1584 = vrot.lane.b32.xlu2 %v4902_v50, %s5515_s17  ;;  %1673 = vperm.xlu0 %4736, %v1650_v16   ;;  %v1651_v50 = vsel %vm1635_vm11, 1, %v8816_v1  ;;  %vm1641_vm8 = vcmp.gt.s32.totalorder %v8900_v28, %v6666_v8 }
 0x416   : > { %v1473_v14 = vpop.permute.xlu0 %1472 }
 0x417   : > { %v1495_v44 = vmul.f32 %v1473_v14, %v6651_v57 }
 0x419   : > { %1536 = vrot.lane.b32.xlu2 %v1495_v44, %s5517_s18  ;;  %v6806_v44 = vsel %vm918_vm14, %v6271_v37, %v5361_v61 }
 0x41a   : > { %v1507_v27 = vmul.f32 %v6566_v5, %v6806_v44 }
 0x41e   : > { %v1523_v52 = vpop.permute.xlu0 %1522 }
 0x41f   : > { %v6765_v15 = vadd.f32 %v1523_v52, %v1504_v49 }
 0x421   : > { %4903 = vtanh.f32 %v6765_v15  ;;  %1670 = vperm.xlu2 %4735, %v1649_v40  }
 0x426   : > { %v1477_v43 = vpop.permute.xlu1 %1476  ;;  %v1475_v36 = vpop.permute.xlu0 %1474 }
 0x427   : > { %v4904_v39 = vpop.eup %4903  ;;  %v1497_v6 = vmul.f32 %v1477_v43, %v6664_v33  ;;  %v1496_v16 = vmul.f32 %v1475_v36, %v6660_v38 }
 0x428   : > { %1586 = vrot.lane.b32.xlu0 %v4904_v39, %s5515_s17 }
 0x429   : > { %1484 = vrot.lane.b32.xlu2 %v6772_v53, %s5515_s17  ;;  %1540 = vrot.lane.b32.xlu1 %v1497_v6, %s5517_s18  ;;  %v8892_v6 = vld [vmem:[#allocation28_spill] sm:$0xff] }
 0x42e   : > { %v1527_v42 = vpop.permute.xlu1 %1526  ;;  %v6825_v49 = vpop.permute.xlu0 %1664 }
 0x42f   : > { %v6789_v25 = vadd.f32 %v1527_v42, %v1506_v32  ;;  %vm1711_vm14 = vcmp.eq.s32.totalorder %v6825_v49, 1  ;;  %v8893_v42 = vld [vmem:[#allocation27_spill] sm:$0xff] }
 0x430   : > { %1538 = vrot.lane.b32.xlu0 %v1496_v16, %s5517_s18 }
 0x431   : > { %4905 = vtanh.f32 %v6789_v25  ;;  %1676 = vperm.xlu1 %4734, %v1651_v50   ;;  %v8894_v50 = vld [vmem:[#allocation64_spill] sm:$0xff] }
 0x436   : > { %v1668_v14 = vpop.permute.xlu1 %1667 }
 0x437   : > { %v4906_v17 = vpop.eup %4905  ;;  %vm1712_vm0 = vcmp.eq.s32.totalorder %v1668_v14, 1  ;;  %v1509_v14 = vmul.f32 %v6636_v4, %v8894_v50 }
 0x438   : > { %1590 = vrot.lane.b32.xlu2 %v4906_v17, %s5515_s17  ;;  %v6797_v62 = vsel %vm1712_vm0, %v6733_v47, %v6729_v12  ;;  %v6817_v12 = vsel %vm919_vm6, %v6300_v30, %v5357_v60  ;;  %vm1638_vm6 = vcmp.gt.s32.totalorder %v8892_v6, %v6666_v8 }
 0x439   : > { %v1508_v47 = vmul.f32 %v6626_v59, %v6817_v12 }
 0x43e   : > { %v1583_v51 = vpop.permute.xlu1 %1582 }
 0x43f   : > { %v1614_v18 = vmul.f32 %v1583_v51, %v6530_v56 }
 0x440   : > { %1679 = vperm.xlu2 %4735, %v1652_v46  }
 0x441   : > { %v6836_v40 = vsel %vm1711_vm14, %v1614_v18, %v6326_v45 }
 0x453   : > { %v1479_v9 = vpop.permute.xlu2 %1478 }
 0x454   : > { %v1498_v35 = vmul.f32 %v1479_v9, %v6701_v11 }
 0x45b   : > { %v1529_v3 = vpop.permute.xlu2 %1528 }
 0x45c   : > { %v6810_v19 = vadd.f32 %v1529_v3, %v1507_v27 }
 0x45e   : > { %4907 = vtanh.f32 %v6810_v19 }
 0x463   : > { %v1531_v13 = vpop.permute.xlu2 %1530 }
 0x464   : > { %v4908_v61 = vpop.eup %4907  ;;  %v6821_v37 = vadd.f32 %v1531_v13, %v1508_v47  ;;  %v8895_v13 = vld [vmem:[#allocation30_spill] sm:$0xff] }
 0x465   : > { %1592 = vrot.lane.b32.xlu0 %v4908_v61, %s5515_s17  ;;  %vm1640_vm1 = vcmp.gt.s32.totalorder %v8895_v13, %v6666_v8 }
 0x466   : > { %4909 = vtanh.f32 %v6821_v37  ;;  %v1656_v61 = vsel %vm1640_vm1, 1, %v8816_v1 }
 0x46b   : > { %v1585_v60 = vpop.permute.xlu2 %1584  ;;  %v1535_v43 = vpop.permute.xlu1 %1534 }
 0x46c   : > { %v4910_v30 = vpop.eup %4909  ;;  %v1615_v52 = vmul.f32 %v1585_v60, %v6540_v54  ;;  %v6846_v54 = vsel %vm921_vm12, %v8890_v24, %v5349_v58  ;;  %vm1637_vm12 = vcmp.gt.s32.totalorder %v8893_v42, %v6666_v8  ;;  %v8896_v60 = vld [vmem:[#allocation43_spill] sm:$0xff] }
 0x46d   : > { %1542 = vrot.lane.b32.xlu0 %v1498_v35, %s5517_s18  ;;  %1594 = vrot.lane.b32.xlu2 %v4910_v30, %s5515_s17  ;;  %v1510_v45 = vmul.f32 %v6645_v10, %v6846_v54  ;;  %v1653_v9 = vsel %vm1637_vm12, 1, %v8816_v1  ;;  %v8897_v30 = vld [vmem:[#allocation59_spill] sm:$0xff] }
 0x46e   : > { %v6840_v56 = vsel %vm1712_vm0, %v1615_v52, %v6331_v7  ;;  %v1654_v7 = vsel %vm1638_vm6, 1, %v8816_v1  ;;  %v6881_v24 = vsel %vm922_vm9, %v8897_v30, %v8896_v60 }
 0x46f   : > { %v1795_v39 = vpack.c.bf16 %v6840_v56, %v6836_v40  ;;  %v6854_v36 = vadd.f32 %v1535_v43, %v1510_v45  ;;  %8899 = vst [vmem:[#allocation44_spill] sm:$0xff] %v6881_v24  ;;  %v1511_v43 = vmul.f32 %v6651_v57, %v6881_v24  ;;  %v8901_v45 = vld [vmem:[#allocation29_spill] sm:$0xff] }
 0x470   : > { %vm1639_vm15 = vcmp.gt.s32.totalorder %v8901_v45, %v6666_v8 }
 0x471   : > { %1811 = vmatmul.bf16.vlgmr.msra.gmra.mxu2 %v1795_v39  ;;  %4911 = vtanh.f32 %v6854_v36 }
 0x473   : > { %v1481_v32 = vpop.permute.xlu0 %1480  ;;  %v1537_v16 = vpop.permute.xlu2 %1536 }
 0x474   : > { %v1499_v58 = vmul.f32 %v1481_v32, %v6719_v63  ;;  %v6889_v32 = vadd.f32 %v1537_v16, %v1511_v43  ;;  %v8903_v16 = vld [vmem:[#allocation41_spill] sm:$0xff] }
 0x475   : > { %1685 = vperm.xlu2 %4735, %v1654_v7  }
 0x476   : > { %1544 = vrot.lane.b32.xlu1 %v1499_v58, %s5517_s18  ;;  %8902 = vst [vmem:[#allocation58_spill] sm:$0xff] %v6889_v32  ;;  %v1657_v58 = vsel %vm1641_vm8, 1, %v8816_v1 }
 0x477   : > { %v4912_v27 = vpop.eup %4911 }
 0x47a   : > { %v1589_v47 = vpop.permute.xlu1 %1588 }
 0x47b   : > { %v1533_v17 = vpop.permute.xlu0 %1532  ;;  %v6864_v46 = vpop.permute.xlu2 %1670  ;;  %v1617_v43 = vmul.f32 %v1589_v47, %v6554_v0  ;;  %v8914_v47 = vld [vmem:[#allocation42_spill] sm:$0xff] }
 0x47c   : > { %v6867_v3 = vadd.f32 %v1533_v17, %v1509_v14  ;;  %v1655_v17 = vsel %vm1639_vm15, 1, %v8816_v1  ;;  %vm1713_vm7 = vcmp.eq.s32.totalorder %v6864_v46, 1 }
 0x47d   : > { %1598 = vrot.lane.b32.xlu2 %v4912_v27, %s5515_s17 }
 0x47e   : > { %4913 = vtanh.f32 %v6867_v3  ;;  %1682 = vperm.xlu1 %4734, %v1653_v9  }
 0x47f   : > { %4915 = vtanh.f32 %v6889_v32 }
 0x482   : > { %v1483_v39 = vpop.permute.xlu1 %1482 }
 0x483   : > { %v1485_v51 = vpop.permute.xlu2 %1484  ;;  %v1500_v14 = vmul.f32 %v1483_v39, %v6747_v41  ;;  %v6896_v9 = vpop.permute.xlu0 %1673 }
 0x484   : > { %v4914_v18 = vpop.eup %4913  ;;  %v1501_v35 = vmul.f32 %v1485_v51, %v6772_v53  ;;  %v8904_v51 = vld [vmem:[#allocation63_spill] sm:$0xff]  ;;  %vm1714_vm4 = vcmp.eq.s32.totalorder %v6896_v9, 1 }
 0x485   : > { %1596 = vrot.lane.b32.xlu0 %v4914_v18, %s5515_s17  ;;  %1691 = vperm.xlu2 %4735, %v1656_v61   ;;  %v4916_v61 = vpop.eup %4915  ;;  %v8905_v18 = vld [vmem:[#allocation71_spill] sm:$0xff] }
 0x486   : > { %1548 = vrot.lane.b32.xlu1 %v1501_v35, %s5517_s18  ;;  %vm8906_vm9 = vcmp.eq.s32.totalorder %v8905_v18, 1  ;;  %v8916_v18 = vld [vmem:[#allocation72_spill] sm:$0xff] }
 0x487   : > { %v6903_v35 = vsel %vm8906_vm9, %v8904_v51, %v8903_v16  ;;  %v8912_v16 = vld [vmem:[#allocation61_spill] sm:$0xff]  ;;  %v8915_v51 = vld [vmem:[#allocation62_spill] sm:$0xff]  ;;  %vm8917_vm10 = vcmp.eq.s32.totalorder %v8916_v18, 1 }
 0x488   : > { %8907 = vst [vmem:[#allocation70_spill] sm:$0xff] %v6903_v35  ;;  %v1513_v52 = vmul.f32 %v6664_v33, %v6903_v35 }
 0x48d   : > { %1546 = vrot.lane.b32.xlu0 %v1500_v14, %s5517_s18  ;;  %1694 = vperm.xlu2 %4735, %v1657_v58  }
 0x48e   : > { %1688 = vperm.xlu1 %4734, %v1655_v17   ;;  %v8910_v17 = vld [vmem:[#allocation60_spill] sm:$0xff] }
 0x492   : > { %v1591_v27 = vpop.permute.xlu2 %1590 }
 0x495   : > { %1600 = vrot.lane.b32.xlu0 %v4916_v61, %s5515_s17 }
 0x49a   : > { %v1587_v60 = vpop.permute.xlu0 %1586  ;;  %v1680_v30 = vpop.permute.xlu2 %1679 }
 0x49b   : > { %v1616_v39 = vmul.f32 %v1587_v60, %v6548_v55  ;;  %vm1716_vm2 = vcmp.eq.s32.totalorder %v1680_v30, 1  ;;  %v1541_v45 = vpop.permute.xlu1 %1540  ;;  %v6926_v55 = vsel %vm1714_vm4, %v1617_v43, %v8912_v16  ;;  %v8931_v30 = vld [vmem:[#allocation39_spill] sm:$0xff] }
 0x49c   : > { %v6911_v58 = vadd.f32 %v1541_v45, %v1513_v52  ;;  %v6916_v14 = vsel %vm1716_vm2, %v6810_v19, %v6806_v44  ;;  %8913 = vst [vmem:[#allocation69_spill] sm:$0xff] %v6926_v55  ;;  %v6935_v44 = vsel %vm8917_vm10, %v8915_v51, %v8914_v47  ;;  %v8920_v45 = vld [vmem:[#allocation32_spill] sm:$0xff] }
 0x49d   : > { %8909 = vst [vmem:[#allocation43_spill] sm:$0xff] %v6916_v14  ;;  %v6921_v61 = vsel %vm1713_vm7, %v1616_v39, %v8910_v17  ;;  %v1512_v19 = vmul.f32 %v6660_v38, %v6935_v44  ;;  %vm1642_vm11 = vcmp.gt.s32.totalorder %v8920_v45, %v6666_v8  ;;  %v8924_v45 = vld [vmem:[#allocation55_spill] sm:$0xff]  ;;  %v8927_v17 = vld [vmem:[#allocation65_spill] sm:$0xff] }
 0x49e   : > { %8908 = vst [vmem:[#allocation64_spill] sm:$0xff] %v6911_v58  ;;  %4917 = vtanh.f32 %v6911_v58  ;;  %v1796_v0 = vpack.c.bf16 %v6926_v55, %v6921_v61  ;;  %v1658_v16 = vsel %vm1642_vm11, 1, %v8816_v1 }
 0x49f   : > { %8911 = vst [vmem:[#allocation59_spill] sm:$0xff] %v6921_v61 }
 0x4a0   : > { %8918 = vst [vmem:[#allocation41_spill] sm:$0xff] %v6935_v44  ;;  %1816 = vmatmul.bf16.gmra.mxu2 %v1796_v0  ;;  %v8921_v0 = vld [vmem:[#allocation33_spill] sm:$0xff] }
 0x4a1   : > { %vm1643_vm0 = vcmp.gt.s32.totalorder %v8921_v0, %v6666_v8  ;;  %v8926_v0 = vld [vmem:[#allocation40_spill] sm:$0xff] }
 0x4a2   : > { %v1539_v60 = vpop.permute.xlu0 %1538  ;;  %v1659_v47 = vsel %vm1643_vm0, 1, %v8816_v1  ;;  %v6970_v58 = vsel %vm925_vm5, %v8927_v17, %v8926_v0 }
 0x4a3   : > { %v6939_v52 = vadd.f32 %v1539_v60, %v1512_v19  ;;  %v6950_v51 = vpop.permute.xlu1 %1676  ;;  %v1618_v19 = vmul.f32 %v1591_v27, %v6560_v31  ;;  %8929 = vst [vmem:[#allocation61_spill] sm:$0xff] %v6970_v58  ;;  %v1514_v31 = vmul.f32 %v6701_v11, %v6970_v58 }
 0x4a4   : > { %v4918_v43 = vpop.eup %4917  ;;  %vm1715_vm13 = vcmp.eq.s32.totalorder %v6950_v51, 1 }
 0x4a5   : > { %8919 = vst [vmem:[#allocation63_spill] sm:$0xff] %v6939_v52  ;;  %4919 = vtanh.f32 %v6939_v52  ;;  %1604 = vrot.lane.b32.xlu1 %v4918_v43, %s5515_s17  ;;  %v8922_v43 = vld [vmem:[#allocation56_spill] sm:$0xff]  ;;  %v8945_v52 = vld [vmem:[#allocation54_spill] sm:$0xff] }
 0x4ab   : > { %v4920_v39 = vpop.eup %4919 }
 0x4ac   : > { %1602 = vrot.lane.b32.xlu0 %v4920_v39, %s5515_s17  ;;  %v6958_v39 = vsel %vm1715_vm13, %v1618_v19, %v8922_v43  ;;  %v8933_v19 = vld [vmem:[#allocation74_spill] sm:$0xff] }
 0x4ad   : > { %8923 = vst [vmem:[#allocation71_spill] sm:$0xff] %v6958_v39  ;;  %vm8934_vm6 = vcmp.eq.s32.totalorder %v8933_v19, 1  ;;  %v4307_v19 = vld [vmem:[%s5975_s16 + $0x80] sm:$0xff]  }
 0x4b4   : > { %1697 = vperm.xlu0 %4736, %v1658_v16  }
 0x4bc   : > { %1700 = vperm.xlu0 %4736, %v1659_v47  }
 0x4c7   : > { %v1595_v0 = vpop.permute.xlu2 %1594 }
 0x4c8   : > { %v1620_v35 = vmul.f32 %v1595_v0, %v6626_v59 }
 0x4cf   : > { %v6995_v58 = vpop.permute.xlu2 %1685 }
 0x4d0   : > { %vm1718_vm15 = vcmp.eq.s32.totalorder %v6995_v58, 1 }
 0x4d7   : > { %v1593_v18 = vpop.permute.xlu0 %1592 }
 0x4d8   : > { %v1619_v60 = vmul.f32 %v1593_v18, %v6566_v5  ;;  %v8932_v18 = vld [vmem:[#allocation66_spill] sm:$0xff] }
 0x4da   : > { %v6962_v16 = vsel %vm1716_vm2, %v1619_v60, %v8924_v45  ;;  %v6981_v60 = vsel %vm8934_vm6, %v8932_v18, %v8931_v30 }
 0x4db   : > { %8925 = vst [vmem:[#allocation60_spill] sm:$0xff] %v6962_v16  ;;  %v1797_v47 = vpack.c.bf16 %v6962_v16, %v6958_v39  ;;  %v1515_v7 = vmul.f32 %v6719_v63, %v6981_v60  ;;  %v8939_v16 = vld [vmem:[#allocation37_spill] sm:$0xff] }
 0x4dc   : > { %8935 = vst [vmem:[#allocation62_spill] sm:$0xff] %v6981_v60 }
 0x4dd   : > { %1821 = vmatmul.bf16.gmra.mxu2 %v1797_v47  ;;  %v8937_v47 = vld [vmem:[#allocation34_spill] sm:$0xff] }
 0x4de   : > { %vm1644_vm5 = vcmp.gt.s32.totalorder %v8937_v47, %v6666_v8  ;;  %v8941_v47 = vld [vmem:[#allocation76_spill] sm:$0xff] }
 0x4df   : > { %v1543_v5 = vpop.permute.xlu0 %1542  ;;  %vm8942_vm1 = vcmp.eq.s32.totalorder %v8941_v47, 1 }
 0x4e0   : > { %v6974_v27 = vadd.f32 %v1543_v5, %v1514_v31  ;;  %v1660_v5 = vsel %vm1644_vm5, 1, %v8816_v1  ;;  %v8940_v31 = vld [vmem:[#allocation68_spill] sm:$0xff] }
 0x4e1   : > { %v7004_v39 = vsel %vm8942_vm1, %v8940_v31, %v8939_v16 }
 0x4e2   : > { %8930 = vst [vmem:[#allocation42_spill] sm:$0xff] %v6974_v27  ;;  %4921 = vtanh.f32 %v6974_v27  ;;  %v4230_v27 = vunpack.c.l.bf16 %v4307_v19 }
 0x4e3   : > { %8943 = vst [vmem:[#allocation56_spill] sm:$0xff] %v7004_v39 }
 0x4e8   : > { %v4922_v17 = vpop.eup %4921  ;;  %v1545_v43 = vpop.permute.xlu1 %1544 }
 0x4e9   : > { %v6985_v45 = vadd.f32 %v1545_v43, %v1515_v7  ;;  %1606 = vrot.lane.b32.xlu1 %v4922_v17, %s5515_s17  ;;  %v8938_v7 = vld [vmem:[#allocation35_spill] sm:$0xff] }
 0x4ea   : > { %vm1645_vm12 = vcmp.gt.s32.totalorder %v8938_v7, %v6666_v8 }
 0x4eb   : > { %8936 = vst [vmem:[#allocation72_spill] sm:$0xff] %v6985_v45  ;;  %4923 = vtanh.f32 %v6985_v45  ;;  %v1661_v45 = vsel %vm1645_vm12, 1, %v8816_v1 }
 0x4f0   : > { %v6993_v30 = vpop.permute.xlu1 %1682 }
 0x4f1   : > { %v4924_v18 = vpop.eup %4923  ;;  %1703 = vperm.xlu1 %4734, %v1660_v5   ;;  %vm1717_vm8 = vcmp.eq.s32.totalorder %v6993_v30, 1 }
 0x4f2   : > { %1608 = vrot.lane.b32.xlu2 %v4924_v18, %s5515_s17  ;;  %v1517_v18 = vmul.f32 %v6772_v53, %v7004_v39  ;;  %v7020_v44 = vsel %vm1717_vm8, %v1620_v35, %v8945_v52  ;;  %v8947_v39 = vld [vmem:[#allocation53_spill] sm:$0xff] }
 0x4f3   : > { %8946 = vst [vmem:[#allocation40_spill] sm:$0xff] %v7020_v44 }
 0x4f4   : > { %v1812_v17 = vpop.f32.mrf.mxu2 }
 0x4f5   : > { %v1852_v43 = vadd.f32 %v4230_v27, %v1812_v17  ;;  %v4231_v17 = vunpack.c.h.bf16 %v4307_v19  ;;  %v8949_v19 = vld [vmem:[#allocation38_spill] sm:$0xff] }
 0x4f7   : > { %v1868_v5 = vmul.f32 2.0, %v1852_v43  ;;  %v1597_v60 = vpop.permute.xlu0 %1596 }
 0x4f8   : > { %v1621_v7 = vmul.f32 %v1597_v60, %v6636_v4  ;;  %v1549_v27 = vpop.permute.xlu1 %1548  ;;  %v1599_v60 = vpop.permute.xlu2 %1598 }
 0x4f9   : > { %v1884_v16 = vsel %vm5736_vm3, %v1868_v5, %v1852_v43  ;;  %v7015_v31 = vadd.f32 %v1549_v27, %v1517_v18  ;;  %1706 = vperm.xlu1 %4734, %v1661_v45   ;;  %v8950_v43 = vld [vmem:[#allocation67_spill] sm:$0xff] }
 0x4fa   : > { %v3949_v47 = vmul.f32 -1.442695, %v1884_v16  ;;  %v7025_v59 = vsel %vm1718_vm15, %v1621_v7, %v8947_v39  ;;  %v8951_v5 = vld [vmem:[#allocation75_spill] sm:$0xff] }
 0x4fb   : > { %8944 = vst [vmem:[#allocation55_spill] sm:$0xff] %v7015_v31  ;;  %4925 = vtanh.f32 %v7015_v31  ;;  %v1798_v4 = vpack.c.bf16 %v7025_v59, %v7020_v44  ;;  %vm8952_vm9 = vcmp.eq.s32.totalorder %v8951_v5, 1 }
 0x4fc   : > { %8948 = vst [vmem:[#allocation65_spill] sm:$0xff] %v7025_v59  ;;  %4927 = vpow2.f32 %v3949_v47  ;;  %v1814_v0 = vpop.f32.mrf.mxu2  ;;  %v7034_v35 = vsel %vm8952_vm9, %v8950_v43, %v8949_v19 }
 0x4fd   : > { %v1853_v45 = vadd.f32 %v4231_v17, %v1814_v0  ;;  %1826 = vmatmul.bf16.gmra.mxu2 %v1798_v4  ;;  %8953 = vst [vmem:[#allocation73_spill] sm:$0xff] %v7034_v35  ;;  %v1516_v52 = vmul.f32 %v6747_v41, %v7034_v35 }
 0x4ff   : > { %v1869_v39 = vmul.f32 2.0, %v1853_v45  ;;  %v1547_v7 = vpop.permute.xlu0 %1546 }
 0x500   : > { %v7038_v18 = vadd.f32 %v1547_v7, %v1516_v52  ;;  %v7044_v0 = vpop.permute.xlu1 %1688  ;;  %v7046_v19 = vpop.permute.xlu2 %1691  ;;  %v1622_v52 = vmul.f32 %v1599_v60, %v6645_v10  ;;  %v8956_v7 = vld [vmem:[#allocation52_spill] sm:$0xff] }
 0x501   : > { %v4926_v27 = vpop.eup %4925  ;;  %v1885_v16 = vsel %vm5736_vm3, %v1869_v39, %v1853_v45  ;;  %8955 = vst [vmem:[#allocation66_spill] sm:$0xff] %v7046_v19  ;;  %vm1719_vm2 = vcmp.eq.s32.totalorder %v7044_v0, 1  ;;  %vm1720_vm10 = vcmp.eq.s32.totalorder %v7046_v19, 1 }
 0x502   : > { %8954 = vst [vmem:[#allocation39_spill] sm:$0xff] %v7038_v18  ;;  %v4928_v47 = vpop.eup %4927  ;;  %v3950_v17 = vmul.f32 -1.442695, %v1885_v16  ;;  %4929 = vtanh.f32 %v7038_v18  ;;  %1612 = vrot.lane.b32.xlu0 %v4926_v27, %s5515_s17  ;;  %v7056_v27 = vsel %vm1719_vm2, %v1622_v52, %v8956_v7  ;;  %v8958_v16 = vld [vmem:[#allocation51_spill] sm:$0xff] }
 0x503   : > { %v1948_v4 = vadd.f32 1.0, %v4928_v47  ;;  %8957 = vst [vmem:[#allocation74_spill] sm:$0xff] %v7056_v27 }
 0x504   : > { %4931 = vpow2.f32 %v3950_v17 }
 0x505   : > { %4933 = vrcp.f32 %v1948_v4  ;;  %v1975_v52 = vand.u32 2147483648, %v1948_v4  ;;  %v1973_v35 = vand.u32 2147483647, %v1948_v4  ;;  %vm1969_vm6 = vweird.f32 %v1948_v4 }
 0x507   : > { %v1601_v43 = vpop.permute.xlu0 %1600  ;;  %vm1974_vm12 = vcmp.eq.f32.partialorder %v1973_v35, 8.507059e+37 }
 0x508   : > { %v4930_v5 = vpop.eup %4929  ;;  %v1623_v45 = vmul.f32 %v1601_v43, %v6651_v57  ;;  %v8960_v57 = vld [vmem:[#allocation36_spill] sm:$0xff] }
 0x509   : > { %1610 = vrot.lane.b32.xlu2 %v4930_v5, %s5515_s17  ;;  %vm1646_vm11 = vcmp.gt.s32.totalorder %v8960_v57, %v6666_v8 }
 0x50a   : > { %v4932_v39 = vpop.eup %4931  ;;  %v7061_v47 = vsel %vm1720_vm10, %v1623_v45, %v8958_v16  ;;  %v1662_v43 = vsel %vm1646_vm11, 1, %v8816_v1  ;;  %v1976_v16 = vor.u32 1.1754944e-38, %v1975_v52 }
 0x50b   : > { %8959 = vst [vmem:[#allocation37_spill] sm:$0xff] %v7061_v47  ;;  %v4934_v17 = vpop.eup %4933  ;;  %v1949_v18 = vadd.f32 1.0, %v4932_v39  ;;  %v1799_v10 = vpack.c.bf16 %v7061_v47, %v7056_v27 }
 0x50c   : > { %v1965_v60 = vmul.f32 %v4934_v17, %v1948_v4  ;;  %vm1970_vm0 = vweird.f32 %v4934_v17 }
 0x50d   : > { %4935 = vrcp.f32 %v1949_v18  ;;  %1831 = vmatmul.bf16.gmra.mxu2 %v1799_v10  ;;  %vm1971_vm5 = vmor %vm1969_vm6, %vm1970_vm0  ;;  %v1990_v27 = vand.u32 2147483648, %v1949_v18  ;;  %vm1984_vm9 = vweird.f32 %v1949_v18 }
 0x50e   : > { %v1966_v5 = vsub.f32 1.0, %v1965_v60 }
 0x50f   : > { %v1991_v35 = vor.u32 1.1754944e-38, %v1990_v27 }
 0x510   : > { %v1967_v7 = vmul.f32 %v4934_v17, %v1966_v5  ;;  %v1988_v5 = vand.u32 2147483647, %v1949_v18 }
 0x511   : > { %1709 = vperm.xlu2 %4735, %v1662_v43  }
 0x512   : > { %v1968_v45 = vadd.f32 %v4934_v17, %v1967_v7  ;;  %vm1989_vm0 = vcmp.eq.f32.partialorder %v1988_v5, 8.507059e+37 }
 0x513   : > { %v4936_v39 = vpop.eup %4935 }
 0x514   : > { %v1972_v47 = vsel %vm1971_vm5, %v4934_v17, %v1968_v45  ;;  %v1980_v31 = vmul.f32 %v4936_v39, %v1949_v18  ;;  %vm1985_vm1 = vweird.f32 %v4936_v39  ;;  %v4308_v17 = vld [vmem:[%s5975_s16 + $0x88] sm:$0xff]   ;;  %v7081_v18 = vpop.permute.xlu2 %1694 }
 0x515   : > { %v1977_v8 = vsel %vm1974_vm12, %v1976_v16, %v1972_v47  ;;  %vm1986_vm11 = vmor %vm1984_vm9, %vm1985_vm1  ;;  %v4234_v45 = vunpack.c.l.bf16 %v4308_v17  ;;  %8961 = vst [vmem:[#allocation68_spill] sm:$0xff] %v7081_v18  ;;  %vm1721_vm6 = vcmp.eq.s32.totalorder %v7081_v18, 1 }
 0x516   : > { %v2204_v57 = vmul.f32 2.0, %v1977_v8  ;;  %v1981_v10 = vsub.f32 1.0, %v1980_v31 }
 0x518   : > { %v3965_v59 = vadd.f32 -1.0, %v2204_v57  ;;  %v1982_v60 = vmul.f32 %v4936_v39, %v1981_v10 }
 0x51a   : > { %v7070_v43 = vsel %vm5736_vm3, %v3965_v59, %v1977_v8  ;;  %v1983_v4 = vadd.f32 %v4936_v39, %v1982_v60  ;;  %v1605_v59 = vpop.permute.xlu1 %1604 }
 0x51b   : > { %2252 = vrot.lane.b32.xlu0 %v7070_v43, %s5515_s17  ;;  %v1625_v10 = vmul.f32 %v1605_v59, %v6664_v33 }
 0x51c   : > { %v1987_v47 = vsel %vm1986_vm11, %v4936_v39, %v1983_v4 }
 0x51d   : > { %v1992_v31 = vsel %vm1989_vm0, %v1991_v35, %v1987_v47  ;;  %v4235_v35 = vunpack.c.h.bf16 %v4308_v17  ;;  %v8963_v47 = vld [vmem:[#allocation50_spill] sm:$0xff] }
 0x51e   : > { %v1603_v52 = vpop.permute.xlu0 %1602  ;;  %v2205_v7 = vmul.f32 2.0, %v1992_v31 }
 0x51f   : > { %v1624_v27 = vmul.f32 %v1603_v52, %v6660_v38  ;;  %v8965_v38 = vld [vmem:[#allocation49_spill] sm:$0xff] }
 0x520   : > { %v3966_v16 = vadd.f32 -1.0, %v2205_v7 }
 0x522   : > { %v7077_v57 = vsel %vm5736_vm3, %v3966_v16, %v1992_v31  ;;  %v7094_v31 = vsel %vm1721_vm6, %v1624_v27, %v8963_v47 }
 0x523   : > { %v1817_v8 = vpop.f32.mrf.mxu2  ;;  %2254 = vrot.lane.b32.xlu1 %v7077_v57, %s5515_s17  ;;  %8964 = vst [vmem:[#allocation54_spill] sm:$0xff] %v7094_v31 }
 0x524   : > { %v1854_v39 = vadd.f32 %v4234_v45, %v1817_v8 }
 0x526   : > { %v1870_v60 = vmul.f32 2.0, %v1854_v39  ;;  %v7085_v5 = vpop.permute.xlu0 %1697 }
 0x527   : > { %8962 = vst [vmem:[#allocation76_spill] sm:$0xff] %v7085_v5  ;;  %vm8658_vm5 = vcmp.eq.s32.totalorder %v7085_v5, 1 }
 0x528   : > { %v1886_v4 = vsel %vm5736_vm3, %v1870_v60, %v1854_v39  ;;  %v7099_v33 = vsel %vm8658_vm5, %v1625_v10, %v8965_v38 }
 0x529   : > { %8966 = vst [vmem:[#allocation53_spill] sm:$0xff] %v7099_v33  ;;  %v3951_v52 = vmul.f32 -1.442695, %v1886_v4  ;;  %v1800_v7 = vpack.c.bf16 %v7099_v33, %v7094_v31 }
 0x52b   : > { %4937 = vpow2.f32 %v3951_v52  ;;  %v1819_v45 = vpop.f32.mrf.mxu2  ;;  %1836 = vmatmul.bf16.gmra.mxu2 %v1800_v7 }
 0x52c   : > { %v1855_v16 = vadd.f32 %v4235_v35, %v1819_v45 }
 0x52e   : > { %v1871_v59 = vmul.f32 2.0, %v1855_v16 }
 0x530   : > { %v1887_v17 = vsel %vm5736_vm3, %v1871_v59, %v1855_v16 }
 0x531   : > { %v4938_v8 = vpop.eup %4937  ;;  %v3952_v27 = vmul.f32 -1.442695, %v1887_v17 }
 0x532   : > { %v1950_v39 = vadd.f32 1.0, %v4938_v8 }
 0x533   : > { %4939 = vpow2.f32 %v3952_v27 }
 0x534   : > { %4941 = vrcp.f32 %v1950_v39  ;;  %v2005_v33 = vand.u32 2147483648, %v1950_v39  ;;  %v2003_v7 = vand.u32 2147483647, %v1950_v39  ;;  %vm1999_vm1 = vweird.f32 %v1950_v39 }
 0x536   : > { %v2006_v16 = vor.u32 1.1754944e-38, %v2005_v33  ;;  %vm2004_vm11 = vcmp.eq.f32.partialorder %v2003_v7, 8.507059e+37 }
 0x539   : > { %v4940_v60 = vpop.eup %4939 }
 0x53a   : > { %v4942_v10 = vpop.eup %4941  ;;  %v1951_v47 = vadd.f32 1.0, %v4940_v60 }
 0x53b   : > { %v1995_v4 = vmul.f32 %v4942_v10, %v1950_v39  ;;  %vm2000_vm12 = vweird.f32 %v4942_v10 }
 0x53c   : > { %4943 = vrcp.f32 %v1951_v47  ;;  %vm2001_vm9 = vmor %vm1999_vm1, %vm2000_vm12  ;;  %v2020_v44 = vand.u32 2147483648, %v1951_v47  ;;  %vm2014_vm5 = vweird.f32 %v1951_v47 }
 0x53d   : > { %v1996_v38 = vsub.f32 1.0, %v1995_v4  ;;  %v2018_v4 = vand.u32 2147483647, %v1951_v47 }
 0x53e   : > { %v2021_v33 = vor.u32 1.1754944e-38, %v2020_v44 }
 0x53f   : > { %v1997_v52 = vmul.f32 %v4942_v10, %v1996_v38  ;;  %vm2019_vm1 = vcmp.eq.f32.partialorder %v2018_v4, 8.507059e+37 }
 0x541   : > { %v1998_v35 = vadd.f32 %v4942_v10, %v1997_v52 }
 0x542   : > { %v4944_v45 = vpop.eup %4943 }
 0x543   : > { %v2002_v59 = vsel %vm2001_vm9, %v4942_v10, %v1998_v35  ;;  %v2010_v17 = vmul.f32 %v4944_v45, %v1951_v47  ;;  %vm2015_vm0 = vweird.f32 %v4944_v45 }
 0x544   : > { %v2007_v8 = vsel %vm2004_vm11, %v2006_v16, %v2002_v59  ;;  %vm2016_vm12 = vmor %vm2014_vm5, %vm2015_vm0  ;;  %v4309_v16 = vld [vmem:[%s5975_s16 + $0x90] sm:$0xff]  }
 0x545   : > { %v2206_v27 = vmul.f32 2.0, %v2007_v8  ;;  %v2011_v31 = vsub.f32 1.0, %v2010_v17  ;;  %v4238_v47 = vunpack.c.l.bf16 %v4309_v16 }
 0x547   : > { %v3967_v60 = vadd.f32 -1.0, %v2206_v27  ;;  %v2012_v5 = vmul.f32 %v4944_v45, %v2011_v31 }
 0x549   : > { %v7107_v38 = vsel %vm5736_vm3, %v3967_v60, %v2007_v8  ;;  %v2013_v39 = vadd.f32 %v4944_v45, %v2012_v5  ;;  %v7118_v8 = vpop.permute.xlu0 %1700 }
 0x54a   : > { %2256 = vrot.lane.b32.xlu2 %v7107_v38, %s5515_s17  ;;  %8967 = vst [vmem:[#allocation38_spill] sm:$0xff] %v7118_v8  ;;  %vm8670_vm5 = vcmp.eq.s32.totalorder %v7118_v8, 1 }
 0x54b   : > { %v2017_v10 = vsel %vm2016_vm12, %v4944_v45, %v2013_v39 }
 0x54c   : > { %v2022_v52 = vsel %vm2019_vm1, %v2021_v33, %v2017_v10  ;;  %v1609_v59 = vpop.permute.xlu2 %1608  ;;  %v4239_v33 = vunpack.c.h.bf16 %v4309_v16  ;;  %v8969_v10 = vld [vmem:[#allocation48_spill] sm:$0xff] }
 0x54d   : > { %v2207_v7 = vmul.f32 2.0, %v2022_v52  ;;  %v1627_v27 = vmul.f32 %v1609_v59, %v6719_v63 }
 0x54f   : > { %v3968_v35 = vadd.f32 -1.0, %v2207_v7 }
 0x551   : > { %v7113_v31 = vsel %vm5736_vm3, %v3968_v35, %v2022_v52 }
 0x552   : > { %2258 = vrot.lane.b32.xlu0 %v7113_v31, %s5515_s17 }
 0x55b   : > { %v1607_v5 = vpop.permute.xlu1 %1606 }
 0x55c   : > { %v1626_v44 = vmul.f32 %v1607_v5, %v6701_v11  ;;  %v8971_v11 = vld [vmem:[#allocation47_spill] sm:$0xff] }
 0x55e   : > { %v7131_v52 = vsel %vm8670_vm5, %v1626_v44, %v8969_v10 }
 0x55f   : > { %8970 = vst [vmem:[#allocation75_spill] sm:$0xff] %v7131_v52 }
 0x560   : > { %v1822_v17 = vpop.f32.mrf.mxu2 }
 0x561   : > { %v1856_v45 = vadd.f32 %v4238_v47, %v1822_v17 }
 0x563   : > { %v1872_v60 = vmul.f32 2.0, %v1856_v45  ;;  %v7122_v4 = vpop.permute.xlu1 %1703  ;;  %v1611_v47 = vpop.permute.xlu2 %1610 }
 0x564   : > { %8968 = vst [vmem:[#allocation67_spill] sm:$0xff] %v7122_v4  ;;  %vm1724_vm9 = vcmp.eq.s32.totalorder %v7122_v4, 1 }
 0x565   : > { %v1888_v39 = vsel %vm5736_vm3, %v1872_v60, %v1856_v45  ;;  %v7136_v63 = vsel %vm1724_vm9, %v1627_v27, %v8971_v11  ;;  %v1628_v11 = vmul.f32 %v1611_v47, %v6747_v41 }
 0x566   : > { %8972 = vst [vmem:[#allocation52_spill] sm:$0xff] %v7136_v63  ;;  %v3953_v7 = vmul.f32 -1.442695, %v1888_v39  ;;  %v1801_v35 = vpack.c.bf16 %v7136_v63, %v7131_v52 }
 0x568   : > { %4945 = vpow2.f32 %v3953_v7  ;;  %v1824_v5 = vpop.f32.mrf.mxu2  ;;  %1841 = vmatmul.bf16.gmra.mxu2 %v1801_v35 }
 0x569   : > { %v1857_v59 = vadd.f32 %v4239_v33, %v1824_v5 }
 0x56b   : > { %v1873_v16 = vmul.f32 2.0, %v1857_v59  ;;  %v7142_v27 = vpop.permute.xlu1 %1706  ;;  %v7144_v39 = vpop.permute.xlu2 %1709 }
 0x56c   : > { %8973 = vst [vmem:[#allocation51_spill] sm:$0xff] %v7142_v27  ;;  %vm8661_vm11 = vcmp.eq.s32.totalorder %v7142_v27, 1  ;;  %vm8663_vm0 = vcmp.eq.s32.totalorder %v7144_v39, 1 }
 0x56d   : > { %v1889_v17 = vsel %vm5736_vm3, %v1873_v16, %v1857_v59  ;;  %8974 = vst [vmem:[#allocation50_spill] sm:$0xff] %v7144_v39  ;;  %v8975_v59 = vld [vmem:[#allocation46_spill] sm:$0xff] }
 0x56e   : > { %v4946_v44 = vpop.eup %4945  ;;  %v3954_v45 = vmul.f32 -1.442695, %v1889_v17  ;;  %v7153_v16 = vsel %vm8661_vm11, %v1628_v11, %v8975_v59  ;;  %v8977_v17 = vld [vmem:[#allocation45_spill] sm:$0xff] }
 0x56f   : > { %v1952_v60 = vadd.f32 1.0, %v4946_v44  ;;  %8976 = vst [vmem:[#allocation49_spill] sm:$0xff] %v7153_v16 }
 0x570   : > { %4947 = vpow2.f32 %v3954_v45 }
 0x571   : > { %4949 = vrcp.f32 %v1952_v60  ;;  %v2033_v63 = vand.u32 2147483647, %v1952_v60  ;;  %vm2029_vm1 = vweird.f32 %v1952_v60 }
 0x574   : > { %v1613_v10 = vpop.permute.xlu0 %1612 }
 0x575   : > { %v1629_v33 = vmul.f32 %v1613_v10, %v6772_v53  ;;  %v4310_v53 = vld [vmem:[%s5975_s16 + $0x98] sm:$0xff]   ;;  %v2035_v10 = vand.u32 2147483648, %v1952_v60 }
 0x576   : > { %v4948_v7 = vpop.eup %4947  ;;  %v4242_v52 = vunpack.c.l.bf16 %v4310_v53 }
 0x577   : > { %v4950_v35 = vpop.eup %4949  ;;  %v1953_v5 = vadd.f32 1.0, %v4948_v7  ;;  %v7158_v44 = vsel %vm8663_vm0, %v1629_v33, %v8977_v17  ;;  %v2036_v27 = vor.u32 1.1754944e-38, %v2035_v10  ;;  %vm2034_vm0 = vcmp.eq.f32.partialorder %v2033_v63, 8.507059e+37 }
 0x578   : > { %8978 = vst [vmem:[#allocation48_spill] sm:$0xff] %v7158_v44  ;;  %v1802_v41 = vpack.c.bf16 %v7158_v44, %v7153_v16  ;;  %v2025_v47 = vmul.f32 %v4950_v35, %v1952_v60  ;;  %vm2030_vm12 = vweird.f32 %v4950_v35 }
 0x579   : > { %4951 = vrcp.f32 %v1953_v5  ;;  %vm2031_vm11 = vmor %vm2029_vm1, %vm2030_vm12  ;;  %v2048_v28 = vand.u32 2147483647, %v1953_v5 }
 0x57a   : > { %1846 = vmatmul.bf16.gmra.mxu2 %v1802_v41  ;;  %v2026_v45 = vsub.f32 1.0, %v2025_v47  ;;  %v2050_v47 = vand.u32 2147483648, %v1953_v5 }
 0x57b   : > { %vm2049_vm12 = vcmp.eq.f32.partialorder %v2048_v28, 8.507059e+37 }
 0x57c   : > { %v2027_v7 = vmul.f32 %v4950_v35, %v2026_v45 }
 0x57e   : > { %v2028_v11 = vadd.f32 %v4950_v35, %v2027_v7  ;;  %v4243_v7 = vunpack.c.h.bf16 %v4310_v53  ;;  %v4311_v53 = vld [vmem:[%s5975_s16 + $0xa0] sm:$0xff]  }
 0x57f   : > { %v4952_v59 = vpop.eup %4951 }
 0x580   : > { %v1827_v33 = vpop.f32.mrf.mxu2  ;;  %v2032_v17 = vsel %vm2031_vm11, %v4950_v35, %v2028_v11  ;;  %v2040_v39 = vmul.f32 %v4952_v59, %v1953_v5  ;;  %vm2045_vm5 = vweird.f32 %v4952_v59  ;;  %vm2044_vm11 = vweird.f32 %v1953_v5 }
 0x581   : > { %v1858_v44 = vadd.f32 %v4242_v52, %v1827_v33  ;;  %v2037_v16 = vsel %vm2034_vm0, %v2036_v27, %v2032_v17  ;;  %vm2046_vm0 = vmor %vm2044_vm11, %vm2045_vm5  ;;  %v4246_v5 = vunpack.c.l.bf16 %v4311_v53 }
 0x582   : > { %v2208_v8 = vmul.f32 2.0, %v2037_v16  ;;  %v2041_v41 = vsub.f32 1.0, %v2040_v39 }
 0x583   : > { %v1874_v4 = vmul.f32 2.0, %v1858_v44 }
 0x584   : > { %v3969_v18 = vadd.f32 -1.0, %v2208_v8  ;;  %v2042_v45 = vmul.f32 %v4952_v59, %v2041_v41  ;;  %v2051_v8 = vor.u32 1.1754944e-38, %v2050_v47 }
 0x585   : > { %v1890_v60 = vsel %vm5736_vm3, %v1874_v4, %v1858_v44 }
 0x586   : > { %v3955_v10 = vmul.f32 -1.442695, %v1890_v60  ;;  %v7167_v63 = vsel %vm5736_vm3, %v3969_v18, %v2037_v16  ;;  %v2043_v52 = vadd.f32 %v4952_v59, %v2042_v45 }
 0x587   : > { %2260 = vrot.lane.b32.xlu1 %v7167_v63, %s5515_s17 }
 0x588   : > { %4953 = vpow2.f32 %v3955_v10  ;;  %v1829_v27 = vpop.f32.mrf.mxu2  ;;  %v2047_v39 = vsel %vm2046_vm0, %v4952_v59, %v2043_v52 }
 0x589   : > { %v1859_v35 = vadd.f32 %v4243_v7, %v1829_v27  ;;  %v2052_v4 = vsel %vm2049_vm12, %v2051_v8, %v2047_v39  ;;  %v4247_v8 = vunpack.c.h.bf16 %v4311_v53 }
 0x58a   : > { %v2209_v44 = vmul.f32 2.0, %v2052_v4 }
 0x58b   : > { %v1875_v11 = vmul.f32 2.0, %v1859_v35 }
 0x58c   : > { %v3970_v33 = vadd.f32 -1.0, %v2209_v44 }
 0x58d   : > { %v1891_v18 = vsel %vm5736_vm3, %v1875_v11, %v1859_v35  ;;  %v2253_v16 = vpop.permute.xlu0 %2252 }
 0x58e   : > { %v4954_v17 = vpop.eup %4953  ;;  %v3956_v41 = vmul.f32 -1.442695, %v1891_v18  ;;  %v2284_v45 = vmul.f32 %v2253_v16, %v7070_v43  ;;  %v7177_v47 = vsel %vm5736_vm3, %v3970_v33, %v2052_v4 }
 0x58f   : > { %v1954_v28 = vadd.f32 1.0, %v4954_v17  ;;  %2262 = vrot.lane.b32.xlu2 %v7177_v47, %s5515_s17 }
 0x590   : > { %4955 = vpow2.f32 %v3956_v41  ;;  %2316 = vrot.lane.b32.xlu0 %v2284_v45, %s5517_s18  ;;  %v1832_v59 = vpop.f32.mrf.mxu2 }
 0x591   : > { %4957 = vrcp.f32 %v1954_v28  ;;  %v1860_v60 = vadd.f32 %v4246_v5, %v1832_v59  ;;  %v2065_v17 = vand.u32 2147483648, %v1954_v28  ;;  %v2063_v45 = vand.u32 2147483647, %v1954_v28 }
 0x592   : > { %vm2059_vm1 = vweird.f32 %v1954_v28 }
 0x593   : > { %v1876_v7 = vmul.f32 2.0, %v1860_v60  ;;  %vm2064_vm0 = vcmp.eq.f32.partialorder %v2063_v45, 8.507059e+37 }
 0x595   : > { %v1892_v10 = vsel %vm5736_vm3, %v1876_v7, %v1860_v60  ;;  %v2255_v52 = vpop.permute.xlu1 %2254 }
 0x596   : > { %v4956_v27 = vpop.eup %4955  ;;  %v3957_v39 = vmul.f32 -1.442695, %v1892_v10  ;;  %v2285_v35 = vmul.f32 %v2255_v52, %v7077_v57 }
 0x597   : > { %v4958_v4 = vpop.eup %4957  ;;  %v1955_v44 = vadd.f32 1.0, %v4956_v27  ;;  %v2066_v27 = vor.u32 1.1754944e-38, %v2065_v17 }
 0x598   : > { %4959 = vpow2.f32 %v3957_v39  ;;  %2318 = vrot.lane.b32.xlu1 %v2285_v35, %s5517_s18  ;;  %v1834_v11 = vpop.f32.mrf.mxu2  ;;  %v2055_v33 = vmul.f32 %v4958_v4, %v1954_v28  ;;  %vm2060_vm5 = vweird.f32 %v4958_v4 }
 0x599   : > { %4961 = vrcp.f32 %v1955_v44  ;;  %v1861_v18 = vadd.f32 %v4247_v8, %v1834_v11  ;;  %vm2061_vm11 = vmor %vm2059_vm1, %vm2060_vm5  ;;  %vm2074_vm5 = vweird.f32 %v1955_v44 }
 0x59a   : > { %v2056_v16 = vsub.f32 1.0, %v2055_v33 }
 0x59b   : > { %v1877_v5 = vmul.f32 2.0, %v1861_v18 }
 0x59c   : > { %v2057_v41 = vmul.f32 %v4958_v4, %v2056_v16  ;;  %v2080_v16 = vand.u32 2147483648, %v1955_v44 }
 0x59d   : > { %v1893_v53 = vsel %vm5736_vm3, %v1877_v5, %v1861_v18  ;;  %v2078_v5 = vand.u32 2147483647, %v1955_v44 }
 0x59e   : > { %v4960_v59 = vpop.eup %4959  ;;  %v3958_v60 = vmul.f32 -1.442695, %v1893_v53  ;;  %v2058_v7 = vadd.f32 %v4958_v4, %v2057_v41  ;;  %v2081_v53 = vor.u32 1.1754944e-38, %v2080_v16 }
 0x59f   : > { %v4962_v10 = vpop.eup %4961  ;;  %v1956_v52 = vadd.f32 1.0, %v4960_v59  ;;  %v4312_v59 = vld [vmem:[%s5975_s16 + $0xa8] sm:$0xff]  }
 0x5a0   : > { %4963 = vpow2.f32 %v3958_v60  ;;  %v2062_v39 = vsel %vm2061_vm11, %v4958_v4, %v2058_v7  ;;  %v2070_v8 = vmul.f32 %v4962_v10, %v1955_v44  ;;  %vm2075_vm12 = vweird.f32 %v4962_v10 }
 0x5a1   : > { %4965 = vrcp.f32 %v1956_v52  ;;  %v2067_v35 = vsel %vm2064_vm0, %v2066_v27, %v2062_v39  ;;  %vm2076_vm1 = vmor %vm2074_vm5, %vm2075_vm12  ;;  %vm2079_vm11 = vcmp.eq.f32.partialorder %v2078_v5, 8.507059e+37  ;;  %v2093_v44 = vand.u32 2147483647, %v1956_v52 }
 0x5a2   : > { %v2210_v11 = vmul.f32 2.0, %v2067_v35  ;;  %v2071_v33 = vsub.f32 1.0, %v2070_v8  ;;  %vm2089_vm12 = vweird.f32 %v1956_v52 }
 0x5a4   : > { %v3971_v55 = vadd.f32 -1.0, %v2210_v11  ;;  %v2072_v18 = vmul.f32 %v4962_v10, %v2071_v33  ;;  %v4250_v11 = vunpack.c.l.bf16 %v4312_v59 }
 0x5a6   : > { %v4964_v41 = vpop.eup %4963  ;;  %v7190_v28 = vsel %vm5736_vm3, %v3971_v55, %v2067_v35  ;;  %v2073_v17 = vadd.f32 %v4962_v10, %v2072_v18  ;;  %v2095_v55 = vand.u32 2147483648, %v1956_v52 }
 0x5a7   : > { %v4966_v4 = vpop.eup %4965  ;;  %v1957_v45 = vadd.f32 1.0, %v4964_v41  ;;  %2264 = vrot.lane.b32.xlu2 %v7190_v28, %s5515_s17 }
 0x5a8   : > { %v2077_v60 = vsel %vm2076_vm1, %v4962_v10, %v2073_v17  ;;  %v2085_v7 = vmul.f32 %v4966_v4, %v1956_v52  ;;  %vm2090_vm0 = vweird.f32 %v4966_v4  ;;  %v2096_v17 = vor.u32 1.1754944e-38, %v2095_v55 }
 0x5a9   : > { %4967 = vrcp.f32 %v1957_v45  ;;  %v2082_v27 = vsel %vm2079_vm11, %v2081_v53, %v2077_v60  ;;  %vm2091_vm5 = vmor %vm2089_vm12, %vm2090_vm0  ;;  %vm2094_vm1 = vcmp.eq.f32.partialorder %v2093_v44, 8.507059e+37  ;;  %v2110_v52 = vand.u32 2147483648, %v1957_v45 }
 0x5aa   : > { %v2211_v39 = vmul.f32 2.0, %v2082_v27  ;;  %v2086_v8 = vsub.f32 1.0, %v2085_v7  ;;  %vm2104_vm0 = vweird.f32 %v1957_v45 }
 0x5ac   : > { %v3972_v35 = vadd.f32 -1.0, %v2211_v39  ;;  %v2087_v33 = vmul.f32 %v4966_v4, %v2086_v8 }
 0x5ae   : > { %v1837_v18 = vpop.f32.mrf.mxu2  ;;  %v7197_v41 = vsel %vm5736_vm3, %v3972_v35, %v2082_v27  ;;  %v2088_v16 = vadd.f32 %v4966_v4, %v2087_v33  ;;  %v4251_v35 = vunpack.c.h.bf16 %v4312_v59  ;;  %v2108_v33 = vand.u32 2147483647, %v1957_v45 }
 0x5af   : > { %v4968_v10 = vpop.eup %4967  ;;  %v1862_v5 = vadd.f32 %v4250_v11, %v1837_v18  ;;  %2266 = vrot.lane.b32.xlu0 %v7197_v41, %s5515_s17  ;;  %v2111_v59 = vor.u32 1.1754944e-38, %v2110_v52 }
 0x5b0   : > { %v2092_v53 = vsel %vm2091_vm5, %v4966_v4, %v2088_v16  ;;  %v2100_v60 = vmul.f32 %v4968_v10, %v1957_v45  ;;  %vm2105_vm11 = vweird.f32 %v4968_v10  ;;  %vm2109_vm5 = vcmp.eq.f32.partialorder %v2108_v33, 8.507059e+37  ;;  %v2257_v45 = vpop.permute.xlu2 %2256 }
 0x5b1   : > { %v1878_v7 = vmul.f32 2.0, %v1862_v5  ;;  %v2097_v39 = vsel %vm2094_vm1, %v2096_v17, %v2092_v53  ;;  %vm2106_vm12 = vmor %vm2104_vm0, %vm2105_vm11 }
 0x5b2   : > { %v2212_v8 = vmul.f32 2.0, %v2097_v39  ;;  %v2101_v61 = vsub.f32 1.0, %v2100_v60 }
 0x5b3   : > { %v1894_v27 = vsel %vm5736_vm3, %v1878_v7, %v1862_v5 }
 0x5b4   : > { %v3959_v13 = vmul.f32 -1.442695, %v1894_v27  ;;  %v3973_v11 = vadd.f32 -1.0, %v2212_v8  ;;  %v2102_v18 = vmul.f32 %v4968_v10, %v2101_v61 }
 0x5b6   : > { %4969 = vpow2.f32 %v3959_v13  ;;  %v1839_v19 = vpop.f32.mrf.mxu2  ;;  %v7205_v4 = vsel %vm5736_vm3, %v3973_v11, %v2097_v39  ;;  %v2103_v55 = vadd.f32 %v4968_v10, %v2102_v18 }
 0x5b7   : > { %v1863_v44 = vadd.f32 %v4251_v35, %v1839_v19  ;;  %2268 = vrot.lane.b32.xlu0 %v7205_v4, %s5515_s17  ;;  %v2286_v35 = vmul.f32 %v2257_v45, %v7107_v38 }
 0x5b8   : > { %v2107_v16 = vsel %vm2106_vm12, %v4968_v10, %v2103_v55 }
 0x5b9   : > { %v1879_v5 = vmul.f32 2.0, %v1863_v44  ;;  %v2112_v17 = vsel %vm2109_vm5, %v2111_v59, %v2107_v16 }
 0x5ba   : > { %v2213_v61 = vmul.f32 2.0, %v2112_v17 }
 0x5bb   : > { %v1895_v13 = vsel %vm5736_vm3, %v1879_v5, %v1863_v44 }
 0x5bc   : > { %v4970_v53 = vpop.eup %4969  ;;  %v3960_v60 = vmul.f32 -1.442695, %v1895_v13  ;;  %v3974_v7 = vadd.f32 -1.0, %v2213_v61 }
 0x5bd   : > { %v1958_v39 = vadd.f32 1.0, %v4970_v53 }
 0x5be   : > { %4971 = vpow2.f32 %v3960_v60  ;;  %v7213_v19 = vsel %vm5736_vm3, %v3974_v7, %v2112_v17 }
 0x5bf   : > { %4973 = vrcp.f32 %v1958_v39  ;;  %2270 = vrot.lane.b32.xlu1 %v7213_v19, %s5515_s17  ;;  %v2125_v55 = vand.u32 2147483648, %v1958_v39  ;;  %v2123_v59 = vand.u32 2147483647, %v1958_v39  ;;  %vm2119_vm11 = vweird.f32 %v1958_v39 }
 0x5c1   : > { %v2126_v17 = vor.u32 1.1754944e-38, %v2125_v55  ;;  %vm2124_vm12 = vcmp.eq.f32.partialorder %v2123_v59, 8.507059e+37 }
 0x5c4   : > { %v4972_v10 = vpop.eup %4971  ;;  %v2259_v8 = vpop.permute.xlu0 %2258 }
 0x5c5   : > { %v4974_v27 = vpop.eup %4973  ;;  %v1959_v33 = vadd.f32 1.0, %v4972_v10  ;;  %v2287_v52 = vmul.f32 %v2259_v8, %v7113_v31 }
 0x5c6   : > { %v2115_v11 = vmul.f32 %v4974_v27, %v1958_v39  ;;  %vm2120_vm1 = vweird.f32 %v4974_v27 }
 0x5c7   : > { %4975 = vrcp.f32 %v1959_v33  ;;  %2322 = vrot.lane.b32.xlu2 %v2287_v52, %s5517_s18  ;;  %2320 = vrot.lane.b32.xlu1 %v2286_v35, %s5517_s18  ;;  %vm2121_vm0 = vmor %vm2119_vm11, %vm2120_vm1  ;;  %v2140_v45 = vand.u32 2147483648, %v1959_v33  ;;  %v2138_v35 = vand.u32 2147483647, %v1959_v33  ;;  %vm2134_vm1 = vweird.f32 %v1959_v33 }
 0x5c8   : > { %v2116_v18 = vsub.f32 1.0, %v2115_v11  ;;  %v7226_v11 = vstv %s1759_s21 }
 0x5ca   : > { %v2117_v44 = vmul.f32 %v4974_v27, %v2116_v18 }
 0x5cc   : > { %v2118_v16 = vadd.f32 %v4974_v27, %v2117_v44  ;;  %v8979_v44 = vld [vmem:[#allocation20_spill] sm:$0xff] }
 0x5cd   : > { %v4976_v5 = vpop.eup %4975 }
 0x5ce   : > { %v2122_v61 = vsel %vm2121_vm0, %v4974_v27, %v2118_v16  ;;  %v2130_v13 = vmul.f32 %v4976_v5, %v1959_v33  ;;  %vm2135_vm5 = vweird.f32 %v4976_v5  ;;  %v2141_v27 = vor.u32 1.1754944e-38, %v2140_v45 }
 0x5cf   : > { %v2127_v53 = vsel %vm2124_vm12, %v2126_v17, %v2122_v61  ;;  %vm2136_vm11 = vmor %vm2134_vm1, %vm2135_vm5  ;;  %vm2139_vm0 = vcmp.eq.f32.partialorder %v2138_v35, 8.507059e+37  ;;  %vm2429_vm12 = vcmp.gt.s32.totalorder %v8979_v44, %v7226_v11  ;;  %v4313_v61 = vld [vmem:[%s5975_s16 + $0xb0] sm:$0xff]  }
 0x5d0   : > { %v2214_v60 = vmul.f32 2.0, %v2127_v53  ;;  %v2131_v7 = vsub.f32 1.0, %v2130_v13  ;;  %v2445_v17 = vsel %vm2429_vm12, 1, %v8816_v1  ;;  %v4255_v45 = vunpack.c.h.bf16 %v4313_v61 }
 0x5d2   : > { %v3975_v10 = vadd.f32 -1.0, %v2214_v60  ;;  %v2132_v8 = vmul.f32 %v4976_v5, %v2131_v7 }
 0x5d4   : > { %v7224_v52 = vsel %vm5736_vm3, %v3975_v10, %v2127_v53  ;;  %v2133_v39 = vadd.f32 %v4976_v5, %v2132_v8 }
 0x5d5   : > { %2272 = vrot.lane.b32.xlu1 %v7224_v52, %s5515_s17 }
 0x5d6   : > { %v2137_v18 = vsel %vm2136_vm11, %v4976_v5, %v2133_v39  ;;  %v4254_v5 = vunpack.c.l.bf16 %v4313_v61 }
 0x5d7   : > { %v2142_v55 = vsel %vm2139_vm0, %v2141_v27, %v2137_v18  ;;  %v4314_v27 = vld [vmem:[%s5975_s16 + $0xb8] sm:$0xff]  }
 0x5d8   : > { %v2215_v59 = vmul.f32 2.0, %v2142_v55 }
 0x5da   : > { %v3976_v16 = vadd.f32 -1.0, %v2215_v59 }
 0x5dc   : > { %v7235_v33 = vsel %vm5736_vm3, %v3976_v16, %v2142_v55 }
 0x5dd   : > { %2274 = vrot.lane.b32.xlu2 %v7235_v33, %s5515_s17  ;;  %2462 = vperm.xlu1 %4734, %v2445_v17  }
 0x5eb   : > { %v1842_v13 = vpop.f32.mrf.mxu2 }
 0x5ec   : > { %v1864_v53 = vadd.f32 %v4254_v5, %v1842_v13  ;;  %v4258_v13 = vunpack.c.l.bf16 %v4314_v27 }
 0x5ee   : > { %v1880_v60 = vmul.f32 2.0, %v1864_v53 }
 0x5f0   : > { %v1896_v7 = vsel %vm5736_vm3, %v1880_v60, %v1864_v53  ;;  %v8980_v60 = vld [vmem:[#allocation21_spill] sm:$0xff] }
 0x5f1   : > { %v3961_v10 = vmul.f32 -1.442695, %v1896_v7  ;;  %vm2430_vm5 = vcmp.gt.s32.totalorder %v8980_v60, %v7226_v11 }
 0x5f3   : > { %4977 = vpow2.f32 %v3961_v10  ;;  %v1844_v8 = vpop.f32.mrf.mxu2  ;;  %v8982_v10 = vld [vmem:[#allocation77_spill] sm:$0xff] }
 0x5f4   : > { %v1865_v35 = vadd.f32 %v4255_v45, %v1844_v8  ;;  %v8981_v45 = vld [vmem:[#allocation57_spill] sm:$0xff] }
 0x5f5   : > { %v7253_v8 = vsel %vm1711_vm14, %v8982_v10, %v8981_v45 }
 0x5f6   : > { %v1881_v39 = vmul.f32 2.0, %v1865_v35  ;;  %8983 = vst [vmem:[#allocation47_spill] sm:$0xff] %v7253_v8 }
 0x5f8   : > { %v1897_v18 = vsel %vm5736_vm3, %v1881_v39, %v1865_v35  ;;  %v2300_v39 = vmul.f32 %v7070_v43, %v7253_v8 }
 0x5f9   : > { %v4978_v55 = vpop.eup %4977  ;;  %v3962_v59 = vmul.f32 -1.442695, %v1897_v18  ;;  %v2261_v16 = vpop.permute.xlu1 %2260  ;;  %v2446_v18 = vsel %vm2430_vm5, 1, %v8816_v1 }
 0x5fa   : > { %v1960_v17 = vadd.f32 1.0, %v4978_v55  ;;  %v2288_v5 = vmul.f32 %v2261_v16, %v7167_v63 }
 0x5fb   : > { %4979 = vpow2.f32 %v3962_v59 }
 0x5fc   : > { %4981 = vrcp.f32 %v1960_v17  ;;  %2324 = vrot.lane.b32.xlu2 %v2288_v5, %s5517_s18  ;;  %v2155_v8 = vand.u32 2147483648, %v1960_v17  ;;  %vm2149_vm1 = vweird.f32 %v1960_v17 }
 0x5fd   : > { %v1847_v61 = vpop.f32.mrf.mxu2 }
 0x5fe   : > { %v1866_v53 = vadd.f32 %v4258_v13, %v1847_v61  ;;  %v4259_v13 = vunpack.c.h.bf16 %v4314_v27 }
 0x600   : > { %v1882_v7 = vmul.f32 2.0, %v1866_v53 }
 0x601   : > { %v4980_v35 = vpop.eup %4979 }
 0x602   : > { %v4982_v55 = vpop.eup %4981  ;;  %v1961_v59 = vadd.f32 1.0, %v4980_v35  ;;  %v1898_v16 = vsel %vm5736_vm3, %v1882_v7, %v1866_v53  ;;  %v2317_v5 = vpop.permute.xlu0 %2316  ;;  %v2153_v35 = vand.u32 2147483647, %v1960_v17 }
 0x603   : > { %v3963_v61 = vmul.f32 -1.442695, %v1898_v16  ;;  %v7260_v60 = vadd.f32 %v2317_v5, %v2300_v39  ;;  %v2145_v44 = vmul.f32 %v4982_v55, %v1960_v17  ;;  %vm2150_vm14 = vweird.f32 %v4982_v55 }
 0x604   : > { %4983 = vrcp.f32 %v1961_v59  ;;  %2465 = vperm.xlu2 %4735, %v2446_v18   ;;  %vm2151_vm11 = vmor %vm2149_vm1, %vm2150_vm14  ;;  %v2156_v39 = vor.u32 1.1754944e-38, %v2155_v8  ;;  %vm2154_vm0 = vcmp.eq.f32.partialorder %v2153_v35, 8.507059e+37  ;;  %vm2164_vm5 = vweird.f32 %v1961_v59 }
 0x605   : > { %8984 = vst [vmem:[#allocation46_spill] sm:$0xff] %v7260_v60  ;;  %v1849_v49 = vpop.f32.mrf.mxu2  ;;  %v2146_v45 = vsub.f32 1.0, %v2145_v44  ;;  %4985 = vtanh.f32 %v7260_v60  ;;  %v2168_v60 = vand.u32 2147483647, %v1961_v59 }
 0x606   : > { %v1867_v10 = vadd.f32 %v4259_v13, %v1849_v49  ;;  %4987 = vpow2.f32 %v3963_v61 }
 0x607   : > { %v2147_v32 = vmul.f32 %v4982_v55, %v2146_v45  ;;  %vm2169_vm1 = vcmp.eq.f32.partialorder %v2168_v60, 8.507059e+37 }
 0x608   : > { %v1883_v24 = vmul.f32 2.0, %v1867_v10 }
 0x609   : > { %v2148_v53 = vadd.f32 %v4982_v55, %v2147_v32  ;;  %v2170_v32 = vand.u32 2147483648, %v1961_v59 }
 0x60a   : > { %v4984_v27 = vpop.eup %4983  ;;  %v1899_v7 = vsel %vm5736_vm3, %v1883_v24, %v1867_v10  ;;  %v2319_v60 = vpop.permute.xlu1 %2318 }
 0x60b   : > { %v3964_v18 = vmul.f32 -1.442695, %v1899_v7  ;;  %v2152_v16 = vsel %vm2151_vm11, %v4982_v55, %v2148_v53  ;;  %v2160_v44 = vmul.f32 %v4984_v27, %v1961_v59  ;;  %v4986_v5 = vpop.eup %4985  ;;  %vm2165_vm12 = vweird.f32 %v4984_v27 }
 0x60c   : > { %v2157_v13 = vsel %vm2154_vm0, %v2156_v39, %v2152_v16  ;;  %v4988_v49 = vpop.eup %4987  ;;  %2380 = vrot.lane.b32.xlu2 %v4986_v5, %s5515_s17  ;;  %vm2166_vm14 = vmor %vm2164_vm5, %vm2165_vm12  ;;  %v2171_v10 = vor.u32 1.1754944e-38, %v2170_v32  ;;  %v2263_v39 = vpop.permute.xlu2 %2262  ;;  %vm2432_vm11 = vcmp.gt.s32.totalorder %v8770_v21, %v7226_v11 }
 0x60d   : > { %v2216_v61 = vmul.f32 2.0, %v2157_v13  ;;  %v2161_v45 = vsub.f32 1.0, %v2160_v44  ;;  %4989 = vpow2.f32 %v3964_v18  ;;  %v1962_v24 = vadd.f32 1.0, %v4988_v49 }
 0x60e   : > { %v2289_v44 = vmul.f32 %v2263_v39, %v7177_v47 }
 0x60f   : > { %v3977_v17 = vadd.f32 -1.0, %v2216_v61  ;;  %v2162_v6 = vmul.f32 %v4984_v27, %v2161_v45  ;;  %4991 = vrcp.f32 %v1962_v24  ;;  %v2185_v9 = vand.u32 2147483648, %v1962_v24 }
 0x611   : > { %v7268_v8 = vsel %vm5736_vm3, %v3977_v17, %v2157_v13  ;;  %v2163_v55 = vadd.f32 %v4984_v27, %v2162_v6  ;;  %v2301_v13 = vmul.f32 %v7077_v57, %v6797_v62 }
 0x612   : > { %2276 = vrot.lane.b32.xlu0 %v7268_v8, %s5515_s17 }
 0x613   : > { %v2167_v35 = vsel %vm2166_vm14, %v4984_v27, %v2163_v55  ;;  %v4990_v7 = vpop.eup %4989  ;;  %v7285_v61 = vadd.f32 %v2319_v60, %v2301_v13 }
 0x614   : > { %v2172_v53 = vsel %vm2169_vm1, %v2171_v10, %v2167_v35  ;;  %v7273_v5 = vadd.f32 1.0, %v4990_v7  ;;  %v2265_v27 = vpop.permute.xlu2 %2264  ;;  %v7299_v7 = vsel %vm1714_vm4, %v6715_v26, %v6710_v2  ;;  %vm2179_vm4 = vweird.f32 %v1962_v24 }
 0x615   : > { %v2217_v18 = vmul.f32 2.0, %v2172_v53  ;;  %v4992_v59 = vpop.eup %4991  ;;  %v2290_v45 = vmul.f32 %v2265_v27, %v7190_v28  ;;  %v2183_v2 = vand.u32 2147483647, %v1962_v24 }
 0x616   : > { %4993 = vrcp.f32 %v7273_v5  ;;  %v2175_v49 = vmul.f32 %v4992_v59, %v1962_v24  ;;  %vm2180_vm0 = vweird.f32 %v4992_v59  ;;  %vm2194_vm1 = vweird.f32 %v7273_v5 }
 0x617   : > { %v3978_v16 = vadd.f32 -1.0, %v2217_v18  ;;  %4995 = vtanh.f32 %v7285_v61  ;;  %v2303_v18 = vmul.f32 %v7113_v31, %v7299_v7  ;;  %vm2181_vm12 = vmor %vm2179_vm4, %vm2180_vm0  ;;  %vm2184_vm5 = vcmp.eq.f32.partialorder %v2183_v2, 8.507059e+37 }
 0x618   : > { %v2176_v17 = vsub.f32 1.0, %v2175_v49  ;;  %vm2431_vm0 = vcmp.gt.s32.totalorder %v8769_v20, %v7226_v11 }
 0x619   : > { %v7277_v6 = vsel %vm5736_vm3, %v3978_v16, %v2172_v53  ;;  %v2448_v16 = vsel %vm2432_vm11, 1, %v8816_v1  ;;  %v2447_v2 = vsel %vm2431_vm0, 1, %v8816_v1 }
 0x61a   : > { %2278 = vrot.lane.b32.xlu1 %v7277_v6, %s5515_s17  ;;  %2326 = vrot.lane.b32.xlu0 %v2289_v44, %s5517_s18  ;;  %v2177_v35 = vmul.f32 %v4992_v59, %v2176_v17  ;;  %v2186_v17 = vor.u32 1.1754944e-38, %v2185_v9 }
 0x61c   : > { %v4994_v55 = vpop.eup %4993  ;;  %v2178_v13 = vadd.f32 %v4992_v59, %v2177_v35 }
 0x61d   : > { %v2190_v53 = vmul.f32 %v4994_v55, %v7273_v5  ;;  %v4996_v44 = vpop.eup %4995  ;;  %vm2195_vm14 = vweird.f32 %v4994_v55 }
 0x61e   : > { %v2182_v26 = vsel %vm2181_vm12, %v4992_v59, %v2178_v13  ;;  %vm2196_vm11 = vmor %vm2194_vm1, %vm2195_vm14  ;;  %v7322_v13 = vsel %vm1713_vm7, %v6765_v15, %v6760_v29  ;;  %vm2433_vm7 = vcmp.gt.s32.totalorder %v8768_v22, %v7226_v11  ;;  %vm2434_vm12 = vcmp.gt.s32.totalorder %v8767_v23, %v7226_v11 }
 0x61f   : > { %v2191_v49 = vsub.f32 1.0, %v2190_v53 }
 0x621   : > { %v2267_v32 = vpop.permute.xlu0 %2266  ;;  %v2323_v39 = vpop.permute.xlu2 %2322 }
 0x622   : > { %v2291_v10 = vmul.f32 %v2267_v32, %v7197_v41  ;;  %2328 = vrot.lane.b32.xlu0 %v2290_v45, %s5517_s18  ;;  %v7304_v60 = vadd.f32 %v2323_v39, %v2303_v18  ;;  %v2192_v32 = vmul.f32 %v4994_v55, %v2191_v49  ;;  %v2200_v18 = vand.u32 2147483648, %v7273_v5 }
 0x624   : > { %2330 = vrot.lane.b32.xlu1 %v2291_v10, %s5517_s18  ;;  %4997 = vtanh.f32 %v7304_v60  ;;  %v2187_v10 = vsel %vm2184_vm5, %v2186_v17, %v2182_v26  ;;  %v2193_v53 = vadd.f32 %v4994_v55, %v2192_v32 }
 0x625   : > { %v2218_v24 = vmul.f32 2.0, %v2187_v10 }
 0x626   : > { %v2197_v59 = vsel %vm2196_vm11, %v4994_v55, %v2193_v53 }
 0x627   : > { %v3979_v49 = vadd.f32 -1.0, %v2218_v24 }
 0x629   : > { %v2269_v27 = vpop.permute.xlu0 %2268  ;;  %v7331_v26 = vsel %vm5736_vm3, %v3979_v49, %v2187_v10  ;;  %v2305_v49 = vmul.f32 %v7177_v47, %v6916_v14 }
 0x62a   : > { %v2292_v45 = vmul.f32 %v2269_v27, %v7205_v4  ;;  %2382 = vrot.lane.b32.xlu0 %v4996_v44, %s5515_s17  ;;  %v4998_v44 = vpop.eup %4997  ;;  %v2201_v27 = vor.u32 1.1754944e-38, %v2200_v18  ;;  %v7354_v18 = vsel %vm1715_vm13, %v6789_v25, %v6783_v48  ;;  %vm2435_vm13 = vcmp.gt.s32.totalorder %v8893_v42, %v7226_v11 }
 0x62c   : > { %2332 = vrot.lane.b32.xlu2 %v2292_v45, %s5517_s18  ;;  %2471 = vperm.xlu1 %4734, %v2448_v16   ;;  %v2198_v16 = vand.u32 2147483647, %v7273_v5  ;;  %v2302_v5 = vmul.f32 %v7107_v38, %v7322_v13 }
 0x62e   : > { %vm2199_vm4 = vcmp.eq.f32.partialorder %v2198_v16, 8.507059e+37 }
 0x62f   : > { %v2202_v45 = vsel %vm2199_vm4, %v2201_v27, %v2197_v59  ;;  %v2450_v27 = vsel %vm2434_vm12, 1, %v8816_v1 }
 0x630   : > { %v2219_v32 = vmul.f32 2.0, %v2202_v45 }
 0x631   : > { %v2271_v35 = vpop.permute.xlu1 %2270 }
 0x632   : > { %v2293_v39 = vmul.f32 %v2271_v35, %v7213_v19  ;;  %v3980_v15 = vadd.f32 -1.0, %v2219_v32 }
 0x634   : > { %2334 = vrot.lane.b32.xlu0 %v2293_v39, %s5517_s18  ;;  %2386 = vrot.lane.b32.xlu2 %v4998_v44, %s5515_s17  ;;  %v7340_v35 = vsel %vm5736_vm3, %v3980_v15, %v2202_v45  ;;  %v2449_v39 = vsel %vm2433_vm7, 1, %v8816_v1  ;;  %v2304_v44 = vmul.f32 %v7167_v63, %v7354_v18 }
 0x637   : > { %v2275_v29 = vpop.permute.xlu2 %2274 }
 0x638   : > { %v2295_v17 = vmul.f32 %v2275_v29, %v7235_v33  ;;  %v7382_v29 = vsel %vm1717_vm8, %v6821_v37, %v6817_v12  ;;  %v7395_v12 = vsel %vm1718_vm15, %v6867_v3, %v8894_v50 }
 0x639   : > { %v2321_v9 = vpop.permute.xlu1 %2320  ;;  %v2306_v15 = vmul.f32 %v7190_v28, %v7382_v29  ;;  %8986 = vst [vmem:[#allocation57_spill] sm:$0xff] %v7395_v12  ;;  %v2307_v30 = vmul.f32 %v7197_v41, %v7395_v12 }
 0x63a   : > { %v7327_v55 = vadd.f32 %v2321_v9, %v2302_v5 }
 0x63c   : > { %4999 = vtanh.f32 %v7327_v55  ;;  %2468 = vperm.xlu0 %4736, %v2447_v2   ;;  %2280 = vrot.lane.b32.xlu2 %v7331_v26, %s5515_s17 }
 0x642   : > { %v5000_v46 = vpop.eup %4999 }
 0x643   : > { %2384 = vrot.lane.b32.xlu1 %v5000_v46, %s5515_s17 }
 0x644   : > { %2282 = vrot.lane.b32.xlu0 %v7340_v35, %s5515_s17  ;;  %2338 = vrot.lane.b32.xlu2 %v2295_v17, %s5517_s18  ;;  %v2451_v17 = vsel %vm2435_vm13, 1, %v8816_v1 }
 0x647   : > { %v2273_v10 = vpop.permute.xlu1 %2272 }
 0x648   : > { %v2294_v53 = vmul.f32 %v2273_v10, %v7224_v52 }
 0x64b   : > { %2336 = vrot.lane.b32.xlu1 %v2294_v53, %s5517_s18 }
 0x64c   : > { %2474 = vperm.xlu2 %4735, %v2449_v39  }
 0x64f   : > { %v7367_v48 = vpop.permute.xlu1 %2462 }
 0x650   : > { %vm2509_vm8 = vcmp.eq.s32.totalorder %v7367_v48, 1 }
 0x656   : > { %v2325_v24 = vpop.permute.xlu2 %2324 }
 0x657   : > { %v7358_v16 = vadd.f32 %v2325_v24, %v2304_v44 }
 0x659   : > { %5001 = vtanh.f32 %v7358_v16 }
 0x65e   : > { %v7365_v51 = vpop.permute.xlu2 %2465 }
 0x65f   : > { %v5002_v59 = vpop.eup %5001  ;;  %vm2510_vm5 = vcmp.eq.s32.totalorder %v7365_v51, 1 }
 0x660   : > { %2388 = vrot.lane.b32.xlu0 %v5002_v59, %s5515_s17 }
 0x666   : > { %v2381_v9 = vpop.permute.xlu2 %2380 }
 0x667   : > { %v2412_v44 = vmul.f32 %v2381_v9, %v7070_v43  ;;  %v7423_v43 = vsel %vm1719_vm2, %v6854_v36, %v6846_v54  ;;  %v8993_v54 = vld [vmem:[#allocation44_spill] sm:$0xff]  ;;  %v8994_v36 = vld [vmem:[#allocation58_spill] sm:$0xff] }
 0x668   : > { %2477 = vperm.xlu0 %4736, %v2450_v27   ;;  %8990 = vst [vmem:[#allocation80_spill] sm:$0xff] %v7423_v43 }
 0x669   : > { %v7412_v3 = vsel %vm2509_vm8, %v2412_v44, %v6836_v40  ;;  %v2308_v40 = vmul.f32 %v7205_v4, %v7423_v43 }
 0x66a   : > { %8988 = vst [vmem:[#allocation78_spill] sm:$0xff] %v7412_v3 }
 0x684   : > { %v2277_v25 = vpop.permute.xlu0 %2276 }
 0x685   : > { %v2296_v59 = vmul.f32 %v2277_v25, %v7268_v8  ;;  %v8991_v25 = vld [vmem:[#allocation28_spill] sm:$0xff] }
 0x686   : > { %v2333_v53 = vpop.permute.xlu2 %2332  ;;  %vm2436_vm15 = vcmp.gt.s32.totalorder %v8991_v25, %v7226_v11 }
 0x68c   : > { %v2279_v5 = vpop.permute.xlu1 %2278  ;;  %v2327_v45 = vpop.permute.xlu0 %2326 }
 0x68d   : > { %v2297_v2 = vmul.f32 %v2279_v5, %v7277_v6  ;;  %v7372_v32 = vadd.f32 %v2327_v45, %v2305_v49  ;;  %v7431_v45 = vadd.f32 %v2333_v53, %v2308_v40 }
 0x68e   : > { %v2387_v50 = vpop.permute.xlu2 %2386 }
 0x68f   : > { %8985 = vst [vmem:[#allocation45_spill] sm:$0xff] %v7372_v32  ;;  %5003 = vtanh.f32 %v7372_v32  ;;  %2342 = vrot.lane.b32.xlu2 %v2297_v2, %s5517_s18 }
 0x690   : > { %8992 = vst [vmem:[#allocation81_spill] sm:$0xff] %v7431_v45 }
 0x694   : > { %v2329_v46 = vpop.permute.xlu0 %2328 }
 0x695   : > { %v5004_v10 = vpop.eup %5003  ;;  %v7387_v39 = vadd.f32 %v2329_v46, %v2306_v15  ;;  %v7440_v15 = vsel %vm1720_vm10, %v8994_v36, %v8993_v54  ;;  %v8999_v36 = vld [vmem:[#allocation69_spill] sm:$0xff] }
 0x696   : > { %2390 = vrot.lane.b32.xlu1 %v5004_v10, %s5515_s17  ;;  %v2331_v37 = vpop.permute.xlu1 %2330  ;;  %v2281_v46 = vpop.permute.xlu2 %2280 }
 0x697   : > { %5005 = vtanh.f32 %v7387_v39  ;;  %2480 = vperm.xlu2 %4735, %v2451_v17   ;;  %v7400_v24 = vadd.f32 %v2331_v37, %v2307_v30  ;;  %v2309_v17 = vmul.f32 %v7213_v19, %v7440_v15  ;;  %v2298_v53 = vmul.f32 %v2281_v46, %v7331_v26  ;;  %v9003_v46 = vld [vmem:[#allocation63_spill] sm:$0xff] }
 0x699   : > { %8987 = vst [vmem:[#allocation77_spill] sm:$0xff] %v7400_v24  ;;  %5007 = vtanh.f32 %v7400_v24  ;;  %v9050_v24 = vld [vmem:[#allocation20_spill] sm:$0xff] }
 0x69a   : > { %5009 = vtanh.f32 %v7431_v45 }
 0x69c   : > { %v2383_v27 = vpop.permute.xlu0 %2382 }
 0x69d   : > { %v5006_v49 = vpop.eup %5005  ;;  %v2413_v5 = vmul.f32 %v2383_v27, %v7077_v57 }
 0x69e   : > { %2340 = vrot.lane.b32.xlu1 %v2296_v59, %s5517_s18  ;;  %2392 = vrot.lane.b32.xlu0 %v5006_v49, %s5515_s17  ;;  %v7447_v30 = vpop.permute.xlu1 %2471  ;;  %v8996_v59 = vld [vmem:[#allocation30_spill] sm:$0xff] }
 0x69f   : > { %v7417_v58 = vsel %vm2510_vm5, %v2413_v5, %v6840_v56  ;;  %v2452_v56 = vsel %vm2436_vm15, 1, %v8816_v1  ;;  %v5008_v9 = vpop.eup %5007  ;;  %vm2438_vm2 = vcmp.gt.s32.totalorder %v8996_v59, %v7226_v11  ;;  %vm2512_vm10 = vcmp.eq.s32.totalorder %v7447_v30, 1 }
 0x6a0   : > { %8989 = vst [vmem:[#allocation79_spill] sm:$0xff] %v7417_v58  ;;  %v2593_v57 = vpack.c.bf16 %v7417_v58, %v7412_v3  ;;  %v5010_v37 = vpop.eup %5009  ;;  %v2454_v27 = vsel %vm2438_vm2, 1, %v8816_v1  ;;  %v2544_v48 = vsel %vm2512_vm10, %v7304_v60, %v7299_v7 }
 0x6a2   : > { %2609 = vmatmul.bf16.vlgmr.msra.gmra.mxu3 %v2593_v57  ;;  %v2415_v57 = vmul.f32 %v2387_v50, %v7113_v31  ;;  %v9002_v50 = vld [vmem:[#allocation41_spill] sm:$0xff] }
 0x6a4   : > { %v7471_v2 = vsel %vm2512_vm10, %v2415_v57, %v8999_v36  ;;  %v2339_v57 = vpop.permute.xlu2 %2338 }
 0x6a5   : > { %9000 = vst [vmem:[#allocation58_spill] sm:$0xff] %v7471_v2 }
 0x6a6   : > { %2394 = vrot.lane.b32.xlu1 %v5008_v9, %s5515_s17  ;;  %v2335_v0 = vpop.permute.xlu0 %2334  ;;  %2483 = vperm.xlu0 %4736, %v2452_v56  }
 0x6a7   : > { %v7444_v10 = vadd.f32 %v2335_v0, %v2309_v17  ;;  %v8997_v0 = vld [vmem:[#allocation59_spill] sm:$0xff] }
 0x6a9   : > { %5011 = vtanh.f32 %v7444_v10 }
 0x6ae   : > { %v7449_v44 = vpop.permute.xlu0 %2468  ;;  %2396 = vrot.lane.b32.xlu0 %v5010_v37, %s5515_s17  ;;  %2344 = vrot.lane.b32.xlu1 %v2298_v53, %s5517_s18  ;;  %v7482_v53 = vsel %vm1721_vm6, %v9003_v46, %v9002_v50  ;;  %v9006_v37 = vld [vmem:[#allocation70_spill] sm:$0xff] }
 0x6af   : > { %v5012_v49 = vpop.eup %5011  ;;  %vm2511_vm14 = vcmp.eq.s32.totalorder %v7449_v44, 1  ;;  %9005 = vst [vmem:[#allocation66_spill] sm:$0xff] %v7482_v53  ;;  %v2310_v36 = vmul.f32 %v7224_v52, %v7482_v53 }
 0x6b5   : > { %v2385_v5 = vpop.permute.xlu1 %2384 }
 0x6b6   : > { %v2414_v40 = vmul.f32 %v2385_v5, %v7107_v38  ;;  %v2283_v56 = vpop.permute.xlu0 %2282  ;;  %2489 = vperm.xlu0 %4736, %v2454_v27   ;;  %2398 = vrot.lane.b32.xlu1 %v5012_v49, %s5515_s17  ;;  %v9001_v38 = vld [vmem:[#allocation31_spill] sm:$0xff]  ;;  %v9007_v27 = vld [vmem:[#allocation64_spill] sm:$0xff] }
 0x6b7   : > { %v2299_v9 = vmul.f32 %v2283_v56, %v7340_v35  ;;  %vm2439_vm1 = vcmp.gt.s32.totalorder %v9001_v38, %v7226_v11  ;;  %v9008_v49 = vld [vmem:[#allocation76_spill] sm:$0xff]  ;;  %v9011_v56 = vld [vmem:[#allocation29_spill] sm:$0xff] }
 0x6b8   : > { %v7466_v54 = vsel %vm2511_vm14, %v2414_v40, %v8997_v0  ;;  %vm9009_vm11 = vcmp.eq.s32.totalorder %v9008_v49, 1  ;;  %v2455_v40 = vsel %vm2439_vm1, 1, %v8816_v1  ;;  %vm2437_vm0 = vcmp.gt.s32.totalorder %v9011_v56, %v7226_v11  ;;  %v9015_v49 = vld [vmem:[#allocation32_spill] sm:$0xff] }
 0x6b9   : > { %8998 = vst [vmem:[#allocation44_spill] sm:$0xff] %v7466_v54  ;;  %2346 = vrot.lane.b32.xlu2 %v2299_v9, %s5517_s18  ;;  %v2594_v31 = vpack.c.bf16 %v7471_v2, %v7466_v54  ;;  %v7488_v5 = vsel %vm9009_vm11, %v9007_v27, %v9006_v37  ;;  %v9012_v9 = vmov %v9011_v56  ;;  %v2453_v37 = vsel %vm2437_vm0, 1, %v8816_v1 }
 0x6ba   : > { %9010 = vst [vmem:[#allocation59_spill] sm:$0xff] %v7488_v5  ;;  %v2311_v0 = vmul.f32 %v7235_v33, %v7488_v5  ;;  %v9016_v2 = vmov %v9015_v49  ;;  %vm2440_vm6 = vcmp.gt.s32.totalorder %v9015_v49, %v7226_v11  ;;  %v9033_v5 = vld [vmem:[#allocation56_spill] sm:$0xff] }
 0x6bb   : > { %2614 = vmatmul.bf16.gmra.mxu3 %v2594_v31 }
 0x6bc   : > { %v7497_v46 = vadd.f32 %v2339_v57, %v2311_v0  ;;  %v2456_v57 = vsel %vm2440_vm6, 1, %v8816_v1 }
 0x6bd   : > { %v2337_v50 = vpop.permute.xlu1 %2336 }
 0x6be   : > { %9013 = vst [vmem:[#allocation69_spill] sm:$0xff] %v7497_v46  ;;  %v7499_v17 = vadd.f32 %v2337_v50, %v2310_v36  ;;  %2492 = vperm.xlu0 %4736, %v2455_v40   ;;  %v9017_v40 = vld [vmem:[#allocation33_spill] sm:$0xff]  ;;  %v7512_v36 = vpop.permute.xlu2 %2474  ;;  %v9019_v50 = vld [vmem:[#allocation62_spill] sm:$0xff] }
 0x6bf   : > { %v9018_v0 = vmov %v9017_v40  ;;  %vm2441_vm4 = vcmp.gt.s32.totalorder %v9017_v40, %v7226_v11 }
 0x6c0   : > { %9014 = vst [vmem:[#allocation41_spill] sm:$0xff] %v7499_v17  ;;  %5013 = vtanh.f32 %v7499_v17  ;;  %v2457_v56 = vsel %vm2441_vm4, 1, %v8816_v1  ;;  %v9034_v17 = vld [vmem:[#allocation55_spill] sm:$0xff] }
 0x6c1   : > { %2486 = vperm.xlu2 %4735, %v2453_v37   ;;  %5015 = vtanh.f32 %v7497_v46  ;;  %v9020_v37 = vld [vmem:[#allocation72_spill] sm:$0xff] }
 0x6c2   : > { %v7518_v58 = vsel %vm1724_vm9, %v9020_v37, %v9019_v50  ;;  %vm2513_vm9 = vcmp.eq.s32.totalorder %v7512_v36, 1 }
 0x6c3   : > { %9022 = vst [vmem:[#allocation63_spill] sm:$0xff] %v7518_v58 }
 0x6c6   : > { %v5014_v31 = vpop.eup %5013 }
 0x6c7   : > { %2400 = vrot.lane.b32.xlu1 %v5014_v31, %s5515_s17  ;;  %v5016_v27 = vpop.eup %5015  ;;  %v9025_v31 = vld [vmem:[#allocation71_spill] sm:$0xff] }
 0x6c9   : > { %2402 = vrot.lane.b32.xlu2 %v5016_v27, %s5515_s17  ;;  %v2313_v27 = vmul.f32 %v7277_v6, %v7518_v58 }
 0x6cf   : > { %2495 = vperm.xlu1 %4734, %v2456_v57  }
 0x6d2   : > { %v2389_v40 = vpop.permute.xlu0 %2388 }
 0x6d7   : > { %2498 = vperm.xlu1 %4734, %v2457_v56   ;;  %v2416_v56 = vmul.f32 %v2389_v40, %v7167_v63  ;;  %v9031_v40 = vld [vmem:[#allocation38_spill] sm:$0xff] }
 0x6d8   : > { %vm9032_vm12 = vcmp.eq.s32.totalorder %v9031_v40, 1 }
 0x6da   : > { %v7527_v3 = vpop.permute.xlu0 %2477 }
 0x6db   : > { %9024 = vst [vmem:[#allocation70_spill] sm:$0xff] %v7527_v3  ;;  %vm2514_vm7 = vcmp.eq.s32.totalorder %v7527_v3, 1 }
 0x6e9   : > { %v2343_v49 = vpop.permute.xlu2 %2342 }
 0x6ea   : > { %v7522_v54 = vadd.f32 %v2343_v49, %v2313_v27  ;;  %v7537_v27 = vsel %vm2513_vm9, %v2416_v56, %v9025_v31  ;;  %v9027_v49 = vld [vmem:[#allocation60_spill] sm:$0xff] }
 0x6eb   : > { %9026 = vst [vmem:[#allocation64_spill] sm:$0xff] %v7537_v27 }
 0x6ec   : > { %9023 = vst [vmem:[#allocation68_spill] sm:$0xff] %v7522_v54  ;;  %5017 = vtanh.f32 %v7522_v54 }
 0x6f1   : > { %v7532_v37 = vpop.permute.xlu2 %2480 }
 0x6f2   : > { %v5018_v57 = vpop.eup %5017  ;;  %vm2515_vm2 = vcmp.eq.s32.totalorder %v7532_v37, 1 }
 0x6f3   : > { %2406 = vrot.lane.b32.xlu0 %v5018_v57, %s5515_s17  ;;  %v2547_v7 = vsel %vm2515_vm2, %v7387_v39, %v7382_v29 }
 0x708   : > { %v2391_v46 = vpop.permute.xlu1 %2390 }
 0x709   : > { %v2417_v50 = vmul.f32 %v2391_v46, %v7177_v47  ;;  %v9029_v47 = vld [vmem:[#allocation61_spill] sm:$0xff]  ;;  %v9030_v46 = vld [vmem:[#allocation42_spill] sm:$0xff] }
 0x70a   : > { %v7550_v54 = vsel %vm9032_vm12, %v9030_v46, %v9029_v47 }
 0x70b   : > { %v7542_v63 = vsel %vm2514_vm7, %v2417_v50, %v9027_v49  ;;  %v2312_v58 = vmul.f32 %v7268_v8, %v7550_v54  ;;  %v9035_v50 = vld [vmem:[#allocation50_spill] sm:$0xff] }
 0x70c   : > { %9028 = vst [vmem:[#allocation76_spill] sm:$0xff] %v7542_v63  ;;  %v2595_v57 = vpack.c.bf16 %v7542_v63, %v7537_v27  ;;  %vm9036_vm13 = vcmp.eq.s32.totalorder %v9035_v50, 1 }
 0x70d   : > { %v7558_v49 = vsel %vm9036_vm13, %v9034_v17, %v9033_v5 }
 0x70e   : > { %2619 = vmatmul.bf16.gmra.mxu3 %v2595_v57  ;;  %9037 = vst [vmem:[#allocation62_spill] sm:$0xff] %v7558_v49  ;;  %v2315_v40 = vmul.f32 %v7340_v35, %v7558_v49 }
 0x710   : > { %v2341_v56 = vpop.permute.xlu1 %2340  ;;  %v2393_v31 = vpop.permute.xlu0 %2392 }
 0x711   : > { %v7560_v27 = vadd.f32 %v2341_v56, %v2312_v58  ;;  %v2418_v46 = vmul.f32 %v2393_v31, %v7190_v28  ;;  %v9040_v58 = vld [vmem:[#allocation40_spill] sm:$0xff]  ;;  %v9042_v28 = vld [vmem:[#allocation65_spill] sm:$0xff] }
 0x713   : > { %5019 = vtanh.f32 %v7560_v27  ;;  %v2347_v57 = vpop.permute.xlu2 %2346  ;;  %v7579_v17 = vsel %vm2515_vm2, %v2418_v46, %v9040_v58  ;;  %v9047_v46 = vld [vmem:[#allocation51_spill] sm:$0xff] }
 0x714   : > { %v7565_v47 = vadd.f32 %v2347_v57, %v2315_v40  ;;  %9041 = vst [vmem:[#allocation71_spill] sm:$0xff] %v7579_v17  ;;  %v7590_v40 = vstv %s2557_s22  ;;  %v9045_v57 = vld [vmem:[#allocation73_spill] sm:$0xff]  ;;  %vm9048_vm11 = vcmp.eq.s32.totalorder %v9047_v46, 1 }
 0x715   : > { %vm3227_vm0 = vcmp.gt.s32.totalorder %v9050_v24, %v7590_v40  ;;  %vm3230_vm4 = vcmp.gt.s32.totalorder %v8770_v21, %v7590_v40 }
 0x716   : > { %9038 = vst [vmem:[#allocation72_spill] sm:$0xff] %v7565_v47  ;;  %5021 = vtanh.f32 %v7565_v47  ;;  %v3243_v46 = vsel %vm3227_vm0, 1, %v8816_v1  ;;  %vm3233_vm0 = vcmp.gt.s32.totalorder %v8893_v42, %v7590_v40 }
 0x718   : > { %v2395_v63 = vpop.permute.xlu1 %2394  ;;  %v7569_v53 = vpop.permute.xlu0 %2483 }
 0x719   : > { %9039 = vst [vmem:[#allocation67_spill] sm:$0xff] %v7569_v53  ;;  %v5020_v50 = vpop.eup %5019  ;;  %v2419_v5 = vmul.f32 %v2395_v63, %v7197_v41  ;;  %vm8709_vm15 = vcmp.eq.s32.totalorder %v7569_v53, 1  ;;  %v9044_v63 = vld [vmem:[#allocation34_spill] sm:$0xff] }
 0x71a   : > { %2404 = vrot.lane.b32.xlu2 %v5020_v50, %s5515_s17  ;;  %vm2442_vm1 = vcmp.gt.s32.totalorder %v9044_v63, %v7226_v11  ;;  %v9046_v50 = vld [vmem:[#allocation39_spill] sm:$0xff] }
 0x71b   : > { %v7584_v56 = vsel %vm8709_vm15, %v2419_v5, %v9042_v28  ;;  %v7597_v58 = vsel %vm9048_vm11, %v9046_v50, %v9045_v57  ;;  %v2458_v28 = vsel %vm2442_vm1, 1, %v8816_v1 }
 0x71c   : > { %9043 = vst [vmem:[#allocation60_spill] sm:$0xff] %v7584_v56  ;;  %v5022_v31 = vpop.eup %5021  ;;  %v2596_v41 = vpack.c.bf16 %v7584_v56, %v7579_v17  ;;  %v2314_v5 = vmul.f32 %v7331_v26, %v7597_v58  ;;  %v4315_v56 = vld [vmem:[%s5975_s16 + $0xc0] sm:$0xff]   ;;  %v9056_v17 = vld [vmem:[#allocation37_spill] sm:$0xff] }
 0x71d   : > { %2410 = vrot.lane.b32.xlu1 %v5022_v31, %s5515_s17  ;;  %9049 = vst [vmem:[#allocation61_spill] sm:$0xff] %v7597_v58  ;;  %v4262_v31 = vunpack.c.l.bf16 %v4315_v56  ;;  %v7611_v58 = vpop.permute.xlu2 %2486 }
 0x71e   : > { %2624 = vmatmul.bf16.gmra.mxu3 %v2596_v41  ;;  %v9052_v41 = vld [vmem:[#allocation35_spill] sm:$0xff]  ;;  %9053 = vst [vmem:[#allocation38_spill] sm:$0xff] %v7611_v58  ;;  %vm8704_vm13 = vcmp.eq.s32.totalorder %v7611_v58, 1 }
 0x71f   : > { %vm2443_vm6 = vcmp.gt.s32.totalorder %v9052_v41, %v7226_v11 }
 0x720   : > { %v2397_v63 = vpop.permute.xlu0 %2396  ;;  %v2345_v47 = vpop.permute.xlu1 %2344  ;;  %v2459_v45 = vsel %vm2443_vm6, 1, %v8816_v1  ;;  %vm3231_vm6 = vcmp.gt.s32.totalorder %v8768_v22, %v7590_v40 }
 0x721   : > { %v7605_v49 = vadd.f32 %v2345_v47, %v2314_v5  ;;  %v2420_v24 = vmul.f32 %v2397_v63, %v7205_v4  ;;  %v4263_v4 = vunpack.c.h.bf16 %v4315_v56  ;;  %v3246_v63 = vsel %vm3230_vm4, 1, %v8816_v1 }
 0x722   : > { %2501 = vperm.xlu2 %4735, %v2458_v28   ;;  %vm3229_vm4 = vcmp.gt.s32.totalorder %v8769_v20, %v7590_v40  ;;  %v3247_v42 = vsel %vm3231_vm6, 1, %v8816_v1 }
 0x723   : > { %9051 = vst [vmem:[#allocation42_spill] sm:$0xff] %v7605_v49  ;;  %5023 = vtanh.f32 %v7605_v49 }
 0x725   : > { %v2610_v57 = vpop.f32.mrf.mxu3  ;;  %3260 = vperm.xlu1 %4734, %v3243_v46  }
 0x726   : > { %v2650_v50 = vadd.f32 %v4262_v31, %v2610_v57  ;;  %v9054_v57 = vld [vmem:[#allocation74_spill] sm:$0xff] }
 0x727   : > { %v7629_v21 = vsel %vm8704_vm13, %v2420_v24, %v9054_v57  ;;  %v3245_v57 = vsel %vm3229_vm4, 1, %v8816_v1 }
 0x728   : > { %v2666_v47 = vmul.f32 2.0, %v2650_v50  ;;  %v7617_v5 = vpop.permute.xlu0 %2489  ;;  %v2399_v28 = vpop.permute.xlu1 %2398  ;;  %9055 = vst [vmem:[#allocation56_spill] sm:$0xff] %v7629_v21 }
 0x729   : > { %v5024_v49 = vpop.eup %5023  ;;  %vm2518_vm12 = vcmp.eq.s32.totalorder %v7617_v5, 1  ;;  %v2421_v41 = vmul.f32 %v2399_v28, %v7213_v19 }
 0x72a   : > { %v2682_v31 = vsel %vm5736_vm3, %v2666_v47, %v2650_v50  ;;  %2504 = vperm.xlu2 %4735, %v2459_v45   ;;  %2408 = vrot.lane.b32.xlu0 %v5024_v49, %s5515_s17  ;;  %v9058_v45 = vld [vmem:[#allocation21_spill] sm:$0xff]  ;;  %v9059_v49 = vld [vmem:[#allocation36_spill] sm:$0xff]  ;;  %v2550_v37 = vsel %vm2518_vm12, %v7444_v10, %v7440_v15  ;;  %v2542_v10 = vsel %vm2510_vm5, %v7285_v61, %v6797_v62 }
 0x72b   : > { %v3999_v46 = vmul.f32 -1.442695, %v2682_v31  ;;  %v7634_v19 = vsel %vm2518_vm12, %v2421_v41, %v9056_v17  ;;  %vm3228_vm1 = vcmp.gt.s32.totalorder %v9058_v45, %v7590_v40  ;;  %vm2444_vm11 = vcmp.gt.s32.totalorder %v9059_v49, %v7226_v11 }
 0x72c   : > { %9057 = vst [vmem:[#allocation55_spill] sm:$0xff] %v7634_v19  ;;  %v2597_v50 = vpack.c.bf16 %v7634_v19, %v7629_v21  ;;  %v3244_v24 = vsel %vm3228_vm1, 1, %v8816_v1  ;;  %v2460_v31 = vsel %vm2444_vm11, 1, %v8816_v1  ;;  %v3249_v11 = vsel %vm3233_vm0, 1, %v8816_v1 }
 0x72d   : > { %5025 = vpow2.f32 %v3999_v46  ;;  %v2612_v56 = vpop.f32.mrf.mxu3  ;;  %3269 = vperm.xlu1 %4734, %v3246_v63   ;;  %vm3236_vm1 = vcmp.gt.s32.totalorder %v8996_v59, %v7590_v40  ;;  %vm3234_vm11 = vcmp.gt.s32.totalorder %v8991_v25, %v7590_v40  ;;  %vm3232_vm0 = vcmp.gt.s32.totalorder %v8767_v23, %v7590_v40 }
 0x72e   : > { %v2651_v47 = vadd.f32 %v4263_v4, %v2612_v56  ;;  %2629 = vmatmul.bf16.gmra.mxu3 %v2597_v50  ;;  %v4316_v50 = vld [vmem:[%s5975_s16 + $0xc8] sm:$0xff]   ;;  %v3252_v49 = vsel %vm3236_vm1, 1, %v8816_v1  ;;  %v3248_v25 = vsel %vm3232_vm0, 1, %v8816_v1  ;;  %vm3235_vm0 = vcmp.gt.s32.totalorder %v9012_v9, %v7590_v40 }
 0x72f   : > { %vm3239_vm12 = vcmp.gt.s32.totalorder %v9018_v0, %v7590_v40  ;;  %vm3237_vm5 = vcmp.gt.s32.totalorder %v9001_v38, %v7590_v40  ;;  %v2545_v62 = vsel %vm2513_vm9, %v7358_v16, %v7354_v18  ;;  %v2543_v61 = vsel %vm2511_vm14, %v7327_v55, %v7322_v13  ;;  %v9085_v13 = vld [vmem:[#allocation43_spill] sm:$0xff]  ;;  %v9086_v55 = vld [vmem:[#allocation45_spill] sm:$0xff] }
 0x730   : > { %v2667_v17 = vmul.f32 2.0, %v2651_v47  ;;  %v2546_v44 = vsel %vm2514_vm7, %v9086_v55, %v9085_v13 }
 0x732   : > { %v2683_v41 = vsel %vm5736_vm3, %v2667_v17, %v2651_v47  ;;  %3263 = vperm.xlu2 %4735, %v3244_v24   ;;  %2507 = vperm.xlu0 %4736, %v2460_v31   ;;  %v4266_v47 = vunpack.c.l.bf16 %v4316_v50  ;;  %v2403_v17 = vpop.permute.xlu2 %2402 }
 0x733   : > { %v5026_v46 = vpop.eup %5025  ;;  %v4000_v63 = vmul.f32 -1.442695, %v2683_v41 }
 0x734   : > { %v2746_v4 = vadd.f32 1.0, %v5026_v46  ;;  %v7667_v46 = vpop.permute.xlu0 %2492 }
 0x735   : > { %5027 = vpow2.f32 %v4000_v63  ;;  %3278 = vperm.xlu1 %4734, %v3249_v11   ;;  %v3250_v11 = vsel %vm3234_vm11, 1, %v8816_v1  ;;  %9060 = vst [vmem:[#allocation50_spill] sm:$0xff] %v7667_v46  ;;  %vm8705_vm4 = vcmp.eq.s32.totalorder %v7667_v46, 1 }
 0x736   : > { %5029 = vrcp.f32 %v2746_v4  ;;  %v2773_v20 = vand.u32 2147483648, %v2746_v4  ;;  %v2771_v21 = vand.u32 2147483647, %v2746_v4  ;;  %vm2767_vm11 = vweird.f32 %v2746_v4 }
 0x739   : > { %v2401_v45 = vpop.permute.xlu1 %2400 }
 0x73a   : > { %3272 = vperm.xlu2 %4735, %v3247_v42   ;;  %3266 = vperm.xlu0 %4736, %v3245_v57   ;;  %v2422_v63 = vmul.f32 %v2401_v45, %v7224_v52  ;;  %v4267_v52 = vunpack.c.h.bf16 %v4316_v50 }
 0x73b   : > { %v5028_v56 = vpop.eup %5027 }
 0x73c   : > { %v5030_v24 = vpop.eup %5029  ;;  %v7661_v31 = vadd.f32 1.0, %v5028_v56  ;;  %v2423_v56 = vmul.f32 %v2403_v17, %v7235_v33  ;;  %v9064_v17 = vld [vmem:[#allocation53_spill] sm:$0xff] }
 0x73d   : > { %3287 = vperm.xlu1 %4734, %v3252_v49   ;;  %v2763_v59 = vmul.f32 %v5030_v24, %v2746_v4  ;;  %vm2768_vm6 = vweird.f32 %v5030_v24 }
 0x73e   : > { %5031 = vrcp.f32 %v7661_v31  ;;  %v2615_v41 = vpop.f32.mrf.mxu3  ;;  %vm2769_vm13 = vmor %vm2767_vm11, %vm2768_vm6 }
 0x73f   : > { %v2652_v42 = vadd.f32 %v4266_v47, %v2615_v41  ;;  %v2764_v57 = vsub.f32 1.0, %v2763_v59  ;;  %v9062_v47 = vld [vmem:[#allocation54_spill] sm:$0xff] }
 0x740   : > { %v7681_v33 = vsel %vm8705_vm4, %v2422_v63, %v9062_v47  ;;  %vm2772_vm4 = vcmp.eq.f32.partialorder %v2771_v21, 8.507059e+37  ;;  %v2786_v47 = vand.u32 2147483647, %v7661_v31 }
 0x741   : > { %v2668_v22 = vmul.f32 2.0, %v2652_v42  ;;  %v7672_v23 = vpop.permute.xlu1 %2495  ;;  %v2765_v49 = vmul.f32 %v5030_v24, %v2764_v57  ;;  %9063 = vst [vmem:[#allocation65_spill] sm:$0xff] %v7681_v33 }
 0x742   : > { %9061 = vst [vmem:[#allocation40_spill] sm:$0xff] %v7672_v23  ;;  %vm8708_vm1 = vcmp.eq.s32.totalorder %v7672_v23, 1  ;;  %3281 = vperm.xlu2 %4735, %v3250_v11   ;;  %3275 = vperm.xlu0 %4736, %v3248_v25  }
 0x743   : > { %v2684_v45 = vsel %vm5736_vm3, %v2668_v22, %v2652_v42  ;;  %v7686_v59 = vsel %vm8708_vm1, %v2423_v56, %v9064_v17  ;;  %v2766_v41 = vadd.f32 %v5030_v24, %v2765_v49  ;;  %v2774_v22 = vor.u32 1.1754944e-38, %v2773_v20 }
 0x744   : > { %9065 = vst [vmem:[#allocation73_spill] sm:$0xff] %v7686_v59  ;;  %v5032_v57 = vpop.eup %5031  ;;  %v4001_v19 = vmul.f32 -1.442695, %v2684_v45  ;;  %v2598_v50 = vpack.c.bf16 %v7686_v59, %v7681_v33  ;;  %v3251_v56 = vsel %vm3235_vm0, 1, %v8816_v1  ;;  %v2788_v17 = vand.u32 2147483648, %v7661_v31 }
 0x745   : > { %v2770_v4 = vsel %vm2769_vm13, %v5030_v24, %v2766_v41  ;;  %v2778_v11 = vmul.f32 %v5032_v57, %v7661_v31  ;;  %vm2783_vm13 = vweird.f32 %v5032_v57  ;;  %vm2787_vm0 = vcmp.eq.f32.partialorder %v2786_v47, 8.507059e+37 }
 0x746   : > { %5033 = vpow2.f32 %v4001_v19  ;;  %v2617_v63 = vpop.f32.mrf.mxu3  ;;  %2634 = vmatmul.bf16.gmra.mxu3 %v2598_v50  ;;  %v2775_v42 = vsel %vm2772_vm4, %v2774_v22, %v2770_v4  ;;  %vm2782_vm4 = vweird.f32 %v7661_v31  ;;  %v2789_v31 = vor.u32 1.1754944e-38, %v2788_v17 }
 0x747   : > { %v2653_v25 = vadd.f32 %v4267_v52, %v2617_v63  ;;  %v3002_v49 = vmul.f32 2.0, %v2775_v42  ;;  %v2779_v45 = vsub.f32 1.0, %v2778_v11  ;;  %vm2784_vm11 = vmor %vm2782_vm4, %vm2783_vm13 }
 0x749   : > { %v2669_v9 = vmul.f32 2.0, %v2653_v25  ;;  %v7697_v33 = vpop.permute.xlu1 %2498  ;;  %v4015_v20 = vadd.f32 -1.0, %v3002_v49  ;;  %v2780_v21 = vmul.f32 %v5032_v57, %v2779_v45 }
 0x74a   : > { %vm2521_vm6 = vcmp.eq.s32.totalorder %v7697_v33, 1  ;;  %3284 = vperm.xlu0 %4736, %v3251_v56  }
 0x74b   : > { %v2685_v19 = vsel %vm5736_vm3, %v2669_v9, %v2653_v25  ;;  %v7707_v24 = vsel %vm2521_vm6, %v7560_v27, %v7550_v54  ;;  %v7711_v52 = vsel %vm5736_vm3, %v4015_v20, %v2775_v42  ;;  %v2781_v41 = vadd.f32 %v5032_v57, %v2780_v21 }
 0x74c   : > { %9066 = vst [vmem:[#allocation39_spill] sm:$0xff] %v7707_v24  ;;  %v5034_v50 = vpop.eup %5033  ;;  %v4002_v22 = vmul.f32 -1.442695, %v2685_v19  ;;  %3050 = vrot.lane.b32.xlu1 %v7711_v52, %s5515_s17 }
 0x74d   : > { %v2748_v4 = vadd.f32 1.0, %v5034_v50  ;;  %v2785_v9 = vsel %vm2784_vm11, %v5032_v57, %v2781_v41 }
 0x74e   : > { %5035 = vpow2.f32 %v4002_v22  ;;  %v2790_v11 = vsel %vm2787_vm0, %v2789_v31, %v2785_v9 }
 0x74f   : > { %5037 = vrcp.f32 %v2748_v4  ;;  %v3003_v54 = vmul.f32 2.0, %v2790_v11  ;;  %v2803_v57 = vand.u32 2147483648, %v2748_v4  ;;  %v2801_v17 = vand.u32 2147483647, %v2748_v4 }
 0x750   : > { %vm2797_vm4 = vweird.f32 %v2748_v4 }
 0x751   : > { %v4016_v27 = vadd.f32 -1.0, %v3003_v54  ;;  %v2804_v19 = vor.u32 1.1754944e-38, %v2803_v57  ;;  %vm2802_vm0 = vcmp.eq.f32.partialorder %v2801_v17, 8.507059e+37 }
 0x753   : > { %v7717_v63 = vsel %vm5736_vm3, %v4016_v27, %v2790_v11 }
 0x754   : > { %v5036_v42 = vpop.eup %5035  ;;  %3052 = vrot.lane.b32.xlu2 %v7717_v63, %s5515_s17  ;;  %v3099_v5 = vmul.f32 %v7717_v63, %v2542_v10 }
 0x755   : > { %v5038_v25 = vpop.eup %5037  ;;  %v2749_v56 = vadd.f32 1.0, %v5036_v42 }
 0x756   : > { %v2793_v49 = vmul.f32 %v5038_v25, %v2748_v4  ;;  %vm2798_vm13 = vweird.f32 %v5038_v25 }
 0x757   : > { %5039 = vrcp.f32 %v2749_v56  ;;  %vm2799_vm11 = vmor %vm2797_vm4, %vm2798_vm13  ;;  %v2818_v11 = vand.u32 2147483648, %v2749_v56  ;;  %v2816_v42 = vand.u32 2147483647, %v2749_v56  ;;  %vm2812_vm15 = vweird.f32 %v2749_v56 }
 0x758   : > { %v2794_v45 = vsub.f32 1.0, %v2793_v49 }
 0x759   : > { %v2819_v4 = vor.u32 1.1754944e-38, %v2818_v11  ;;  %vm2817_vm4 = vcmp.eq.f32.partialorder %v2816_v42, 8.507059e+37 }
 0x75a   : > { %v2795_v47 = vmul.f32 %v5038_v25, %v2794_v45 }
 0x75c   : > { %v2796_v20 = vadd.f32 %v5038_v25, %v2795_v47 }
 0x75d   : > { %v5040_v21 = vpop.eup %5039 }
 0x75e   : > { %v2800_v41 = vsel %vm2799_vm11, %v5038_v25, %v2796_v20  ;;  %v2808_v50 = vmul.f32 %v5040_v21, %v2749_v56  ;;  %vm2813_vm1 = vweird.f32 %v5040_v21 }
 0x75f   : > { %v2805_v22 = vsel %vm2802_vm0, %v2804_v19, %v2800_v41  ;;  %vm2814_vm13 = vmor %vm2812_vm15, %vm2813_vm1 }
 0x760   : > { %v3004_v31 = vmul.f32 2.0, %v2805_v22  ;;  %v2809_v9 = vsub.f32 1.0, %v2808_v50 }
 0x762   : > { %v4017_v54 = vadd.f32 -1.0, %v3004_v31  ;;  %v2810_v27 = vmul.f32 %v5040_v21, %v2809_v9  ;;  %v9070_v9 = vld [vmem:[#allocation52_spill] sm:$0xff] }
 0x764   : > { %v7723_v49 = vsel %vm5736_vm3, %v4017_v54, %v2805_v22  ;;  %v2811_v45 = vadd.f32 %v5040_v21, %v2810_v27 }
 0x765   : > { %3054 = vrot.lane.b32.xlu0 %v7723_v49, %s5515_s17  ;;  %v2407_v56 = vpop.permute.xlu0 %2406  ;;  %v3100_v51 = vmul.f32 %v7723_v49, %v2543_v61 }
 0x766   : > { %v2815_v25 = vsel %vm2814_vm13, %v5040_v21, %v2811_v45  ;;  %v2425_v50 = vmul.f32 %v2407_v56, %v7277_v6  ;;  %v9068_v21 = vld [vmem:[#allocation75_spill] sm:$0xff]  ;;  %v4317_v6 = vld [vmem:[%s5975_s16 + $0xd0] sm:$0xff]  }
 0x767   : > { %v2820_v57 = vsel %vm2817_vm4, %v2819_v4, %v2815_v25  ;;  %v4270_v54 = vunpack.c.l.bf16 %v4317_v6  ;;  %v4271_v4 = vunpack.c.h.bf16 %v4317_v6 }
 0x768   : > { %v3005_v47 = vmul.f32 2.0, %v2820_v57 }
 0x76a   : > { %v4018_v17 = vadd.f32 -1.0, %v3005_v47 }
 0x76c   : > { %v7729_v20 = vsel %vm5736_vm3, %v4018_v17, %v2820_v57  ;;  %v4318_v17 = vld [vmem:[%s5975_s16 + $0xd8] sm:$0xff]  }
 0x76d   : > { %3056 = vrot.lane.b32.xlu1 %v7729_v20, %s5515_s17 }
 0x774   : > { %v2405_v19 = vpop.permute.xlu2 %2404 }
 0x775   : > { %v2424_v41 = vmul.f32 %v2405_v19, %v7268_v8 }
 0x777   : > { %v7741_v31 = vsel %vm2521_vm6, %v2424_v41, %v9068_v21 }
 0x778   : > { %9069 = vst [vmem:[#allocation74_spill] sm:$0xff] %v7741_v31 }
 0x77c   : > { %v7735_v22 = vpop.permute.xlu2 %2501 }
 0x77d   : > { %9067 = vst [vmem:[#allocation51_spill] sm:$0xff] %v7735_v22  ;;  %vm2522_vm15 = vcmp.eq.s32.totalorder %v7735_v22, 1 }
 0x77e   : > { %v7746_v11 = vsel %vm2522_vm15, %v2425_v50, %v9070_v9  ;;  %v4274_v50 = vunpack.c.l.bf16 %v4318_v17 }
 0x77f   : > { %9071 = vst [vmem:[#allocation37_spill] sm:$0xff] %v7746_v11  ;;  %v2599_v8 = vpack.c.bf16 %v7746_v11, %v7741_v31 }
 0x781   : > { %2639 = vmatmul.bf16.gmra.mxu3 %v2599_v8 }
 0x784   : > { %v7756_v11 = vpop.permute.xlu2 %2504 }
 0x785   : > { %9072 = vst [vmem:[#allocation54_spill] sm:$0xff] %v7756_v11  ;;  %vm8718_vm1 = vcmp.eq.s32.totalorder %v7756_v11, 1 }
 0x791   : > { %v2620_v27 = vpop.f32.mrf.mxu3 }
 0x792   : > { %v2654_v42 = vadd.f32 %v4270_v54, %v2620_v27  ;;  %v2411_v54 = vpop.permute.xlu1 %2410 }
 0x794   : > { %v2670_v45 = vmul.f32 2.0, %v2654_v42 }
 0x796   : > { %v2686_v33 = vsel %vm5736_vm3, %v2670_v45, %v2654_v42  ;;  %v2427_v45 = vmul.f32 %v2411_v54, %v7340_v35 }
 0x797   : > { %v4003_v25 = vmul.f32 -1.442695, %v2686_v33 }
 0x799   : > { %5041 = vpow2.f32 %v4003_v25  ;;  %v2622_v57 = vpop.f32.mrf.mxu3 }
 0x79a   : > { %v2655_v47 = vadd.f32 %v4271_v4, %v2622_v57  ;;  %v4275_v57 = vunpack.c.h.bf16 %v4318_v17 }
 0x79c   : > { %v2671_v19 = vmul.f32 2.0, %v2655_v47  ;;  %v2409_v56 = vpop.permute.xlu0 %2408 }
 0x79d   : > { %v2426_v6 = vmul.f32 %v2409_v56, %v7331_v26  ;;  %v9076_v26 = vld [vmem:[#allocation48_spill] sm:$0xff] }
 0x79e   : > { %v2687_v41 = vsel %vm5736_vm3, %v2671_v19, %v2655_v47  ;;  %v9074_v47 = vld [vmem:[#allocation49_spill] sm:$0xff] }
 0x79f   : > { %v5042_v21 = vpop.eup %5041  ;;  %v4004_v9 = vmul.f32 -1.442695, %v2687_v41  ;;  %v7769_v19 = vsel %vm8718_vm1, %v2426_v6, %v9074_v47  ;;  %v4319_v6 = vld [vmem:[%s5975_s16 + $0xe0] sm:$0xff]  }
 0x7a0   : > { %v2750_v8 = vadd.f32 1.0, %v5042_v21  ;;  %9075 = vst [vmem:[#allocation75_spill] sm:$0xff] %v7769_v19 }
 0x7a1   : > { %5043 = vpow2.f32 %v4004_v9  ;;  %v2625_v27 = vpop.f32.mrf.mxu3 }
 0x7a2   : > { %5045 = vrcp.f32 %v2750_v8  ;;  %v2656_v42 = vadd.f32 %v4274_v50, %v2625_v27  ;;  %v2833_v47 = vand.u32 2147483648, %v2750_v8  ;;  %vm2827_vm0 = vweird.f32 %v2750_v8 }
 0x7a4   : > { %v2672_v33 = vmul.f32 2.0, %v2656_v42  ;;  %v7760_v4 = vpop.permute.xlu0 %2507  ;;  %v2834_v59 = vor.u32 1.1754944e-38, %v2833_v47 }
 0x7a5   : > { %9073 = vst [vmem:[#allocation53_spill] sm:$0xff] %v7760_v4  ;;  %vm8721_vm6 = vcmp.eq.s32.totalorder %v7760_v4, 1 }
 0x7a6   : > { %v2688_v25 = vsel %vm5736_vm3, %v2672_v33, %v2656_v42  ;;  %v7774_v35 = vsel %vm8721_vm6, %v2427_v45, %v9076_v26  ;;  %v2831_v45 = vand.u32 2147483647, %v2750_v8  ;;  %v4278_v26 = vunpack.c.l.bf16 %v4319_v6 }
 0x7a7   : > { %9077 = vst [vmem:[#allocation52_spill] sm:$0xff] %v7774_v35  ;;  %v5044_v56 = vpop.eup %5043  ;;  %v4005_v41 = vmul.f32 -1.442695, %v2688_v25  ;;  %v2600_v50 = vpack.c.bf16 %v7774_v35, %v7769_v19 }
 0x7a8   : > { %v5046_v21 = vpop.eup %5045  ;;  %v2751_v9 = vadd.f32 1.0, %v5044_v56  ;;  %vm2832_vm4 = vcmp.eq.f32.partialorder %v2831_v45, 8.507059e+37 }
 0x7a9   : > { %5047 = vpow2.f32 %v4005_v41  ;;  %v2627_v54 = vpop.f32.mrf.mxu3  ;;  %2644 = vmatmul.bf16.gmra.mxu3 %v2600_v50  ;;  %v2823_v17 = vmul.f32 %v5046_v21, %v2750_v8  ;;  %vm2828_vm11 = vweird.f32 %v5046_v21 }
 0x7aa   : > { %5049 = vrcp.f32 %v2751_v9  ;;  %v2657_v27 = vadd.f32 %v4275_v57, %v2627_v54  ;;  %vm2829_vm13 = vmor %vm2827_vm0, %vm2828_vm11  ;;  %vm2842_vm11 = vweird.f32 %v2751_v9 }
 0x7ab   : > { %v2824_v42 = vsub.f32 1.0, %v2823_v17 }
 0x7ac   : > { %v2673_v33 = vmul.f32 2.0, %v2657_v27 }
 0x7ad   : > { %v2825_v31 = vmul.f32 %v5046_v21, %v2824_v42 }
 0x7ae   : > { %v2689_v25 = vsel %vm5736_vm3, %v2673_v33, %v2657_v27  ;;  %v2848_v33 = vand.u32 2147483648, %v2751_v9 }
 0x7af   : > { %v5048_v19 = vpop.eup %5047  ;;  %v4006_v35 = vmul.f32 -1.442695, %v2689_v25  ;;  %v2826_v56 = vadd.f32 %v5046_v21, %v2825_v31  ;;  %v2846_v31 = vand.u32 2147483647, %v2751_v9 }
 0x7b0   : > { %v5050_v41 = vpop.eup %5049  ;;  %v2752_v50 = vadd.f32 1.0, %v5048_v19  ;;  %v4279_v19 = vunpack.c.h.bf16 %v4319_v6 }
 0x7b1   : > { %5051 = vpow2.f32 %v4006_v35  ;;  %v2630_v57 = vpop.f32.mrf.mxu3  ;;  %v2830_v54 = vsel %vm2829_vm13, %v5046_v21, %v2826_v56  ;;  %v2838_v17 = vmul.f32 %v5050_v41, %v2751_v9  ;;  %vm2843_vm1 = vweird.f32 %v5050_v41 }
 0x7b2   : > { %5053 = vrcp.f32 %v2752_v50  ;;  %v2658_v42 = vadd.f32 %v4278_v26, %v2630_v57  ;;  %v2835_v11 = vsel %vm2832_vm4, %v2834_v59, %v2830_v54  ;;  %vm2844_vm0 = vmor %vm2842_vm11, %vm2843_vm1  ;;  %vm2847_vm13 = vcmp.eq.f32.partialorder %v2846_v31, 8.507059e+37 }
 0x7b3   : > { %v3006_v4 = vmul.f32 2.0, %v2835_v11  ;;  %v2839_v28 = vsub.f32 1.0, %v2838_v17  ;;  %vm2857_vm1 = vweird.f32 %v2752_v50 }
 0x7b4   : > { %v2674_v27 = vmul.f32 2.0, %v2658_v42 }
 0x7b5   : > { %v4019_v22 = vadd.f32 -1.0, %v3006_v4  ;;  %v2840_v25 = vmul.f32 %v5050_v41, %v2839_v28  ;;  %v2849_v28 = vor.u32 1.1754944e-38, %v2848_v33 }
 0x7b6   : > { %v2690_v8 = vsel %vm5736_vm3, %v2674_v27, %v2658_v42  ;;  %v2863_v42 = vand.u32 2147483648, %v2752_v50 }
 0x7b7   : > { %v5052_v35 = vpop.eup %5051  ;;  %v4007_v47 = vmul.f32 -1.442695, %v2690_v8  ;;  %v7785_v21 = vsel %vm5736_vm3, %v4019_v22, %v2835_v11  ;;  %v2841_v45 = vadd.f32 %v5050_v41, %v2840_v25  ;;  %v2861_v25 = vand.u32 2147483647, %v2752_v50 }
 0x7b8   : > { %v5054_v59 = vpop.eup %5053  ;;  %v2753_v26 = vadd.f32 1.0, %v5052_v35  ;;  %3058 = vrot.lane.b32.xlu2 %v7785_v21, %s5515_s17 }
 0x7b9   : > { %5055 = vpow2.f32 %v4007_v47  ;;  %v2632_v4 = vpop.f32.mrf.mxu3  ;;  %v2845_v56 = vsel %vm2844_vm0, %v5050_v41, %v2841_v45  ;;  %v2853_v6 = vmul.f32 %v5054_v59, %v2752_v50  ;;  %vm2858_vm4 = vweird.f32 %v5054_v59 }
 0x7ba   : > { %5057 = vrcp.f32 %v2753_v26  ;;  %v2659_v57 = vadd.f32 %v4279_v19, %v2632_v4  ;;  %v2850_v54 = vsel %vm2847_vm13, %v2849_v28, %v2845_v56  ;;  %vm2859_vm11 = vmor %vm2857_vm1, %vm2858_vm4  ;;  %v2864_v45 = vor.u32 1.1754944e-38, %v2863_v42 }
 0x7bb   : > { %v3007_v17 = vmul.f32 2.0, %v2850_v54  ;;  %v2854_v22 = vsub.f32 1.0, %v2853_v6  ;;  %vm2862_vm0 = vcmp.eq.f32.partialorder %v2861_v25, 8.507059e+37  ;;  %v2876_v50 = vand.u32 2147483647, %v2753_v26 }
 0x7bc   : > { %v2675_v11 = vmul.f32 2.0, %v2659_v57  ;;  %vm2872_vm4 = vweird.f32 %v2753_v26 }
 0x7bd   : > { %v4020_v9 = vadd.f32 -1.0, %v3007_v17  ;;  %v2855_v27 = vmul.f32 %v5054_v59, %v2854_v22 }
 0x7be   : > { %v2691_v8 = vsel %vm5736_vm3, %v2675_v11, %v2659_v57  ;;  %v4320_v57 = vld [vmem:[%s5975_s16 + $0xe8] sm:$0xff]  }
 0x7bf   : > { %v5056_v33 = vpop.eup %5055  ;;  %v4008_v35 = vmul.f32 -1.442695, %v2691_v8  ;;  %v7793_v41 = vsel %vm5736_vm3, %v4020_v9, %v2850_v54  ;;  %v2856_v31 = vadd.f32 %v5054_v59, %v2855_v27  ;;  %v2878_v54 = vand.u32 2147483648, %v2753_v26 }
 0x7c0   : > { %v5058_v19 = vpop.eup %5057  ;;  %v2754_v47 = vadd.f32 1.0, %v5056_v33  ;;  %3060 = vrot.lane.b32.xlu0 %v7793_v41, %s5515_s17  ;;  %v4282_v9 = vunpack.c.l.bf16 %v4320_v57  ;;  %v4283_v23 = vunpack.c.h.bf16 %v4320_v57 }
 0x7c1   : > { %5059 = vpow2.f32 %v4008_v35  ;;  %v2860_v28 = vsel %vm2859_vm11, %v5054_v59, %v2856_v31  ;;  %v2868_v4 = vmul.f32 %v5058_v19, %v2753_v26  ;;  %vm2873_vm13 = vweird.f32 %v5058_v19 }
 0x7c2   : > { %5061 = vrcp.f32 %v2754_v47  ;;  %v2865_v56 = vsel %vm2862_vm0, %v2864_v45, %v2860_v28  ;;  %vm2874_vm1 = vmor %vm2872_vm4, %vm2873_vm13  ;;  %v2879_v33 = vor.u32 1.1754944e-38, %v2878_v54  ;;  %vm2877_vm11 = vcmp.eq.f32.partialorder %v2876_v50, 8.507059e+37 }
 0x7c3   : > { %v3008_v6 = vmul.f32 2.0, %v2865_v56  ;;  %v2869_v17 = vsub.f32 1.0, %v2868_v4  ;;  %vm2887_vm13 = vweird.f32 %v2754_v47 }
 0x7c5   : > { %v4021_v22 = vadd.f32 -1.0, %v3008_v6  ;;  %v2870_v11 = vmul.f32 %v5058_v19, %v2869_v17 }
 0x7c7   : > { %v5060_v27 = vpop.eup %5059  ;;  %v7800_v8 = vsel %vm5736_vm3, %v4021_v22, %v2865_v56  ;;  %v2871_v42 = vadd.f32 %v5058_v19, %v2870_v11  ;;  %v2893_v22 = vand.u32 2147483648, %v2754_v47 }
 0x7c8   : > { %v5062_v59 = vpop.eup %5061  ;;  %v2755_v25 = vadd.f32 1.0, %v5060_v27  ;;  %3062 = vrot.lane.b32.xlu1 %v7800_v8, %s5515_s17  ;;  %v2891_v27 = vand.u32 2147483647, %v2754_v47  ;;  %v3104_v60 = vmul.f32 %v7800_v8, %v2547_v7 }
 0x7c9   : > { %v2635_v35 = vpop.f32.mrf.mxu3  ;;  %v2875_v31 = vsel %vm2874_vm1, %v5058_v19, %v2871_v42  ;;  %v2883_v45 = vmul.f32 %v5062_v59, %v2754_v47  ;;  %vm2888_vm0 = vweird.f32 %v5062_v59  ;;  %v2894_v42 = vor.u32 1.1754944e-38, %v2893_v22 }
 0x7ca   : > { %5063 = vrcp.f32 %v2755_v25  ;;  %v2660_v28 = vadd.f32 %v4282_v9, %v2635_v35  ;;  %v2880_v4 = vsel %vm2877_vm11, %v2879_v33, %v2875_v31  ;;  %vm2889_vm4 = vmor %vm2887_vm13, %vm2888_vm0  ;;  %vm2892_vm1 = vcmp.eq.f32.partialorder %v2891_v27, 8.507059e+37 }
 0x7cb   : > { %v3009_v6 = vmul.f32 2.0, %v2880_v4  ;;  %v2884_v17 = vsub.f32 1.0, %v2883_v45  ;;  %v2906_v47 = vand.u32 2147483647, %v2755_v25  ;;  %vm2902_vm0 = vweird.f32 %v2755_v25 }
 0x7cc   : > { %v2676_v56 = vmul.f32 2.0, %v2660_v28 }
 0x7cd   : > { %v4022_v11 = vadd.f32 -1.0, %v3009_v6  ;;  %v2885_v26 = vmul.f32 %v5062_v59, %v2884_v17 }
 0x7ce   : > { %v2692_v24 = vsel %vm5736_vm3, %v2676_v56, %v2660_v28 }
 0x7cf   : > { %v4009_v54 = vmul.f32 -1.442695, %v2692_v24  ;;  %v7808_v19 = vsel %vm5736_vm3, %v4022_v11, %v2880_v4  ;;  %v2886_v50 = vadd.f32 %v5062_v59, %v2885_v26  ;;  %v2908_v4 = vand.u32 2147483648, %v2755_v25 }
 0x7d0   : > { %v5064_v9 = vpop.eup %5063  ;;  %3064 = vrot.lane.b32.xlu2 %v7808_v19, %s5515_s17 }
 0x7d1   : > { %5065 = vpow2.f32 %v4009_v54  ;;  %v2637_v33 = vpop.f32.mrf.mxu3  ;;  %v2890_v35 = vsel %vm2889_vm4, %v5062_v59, %v2886_v50  ;;  %v2898_v31 = vmul.f32 %v5064_v9, %v2755_v25  ;;  %vm2903_vm11 = vweird.f32 %v5064_v9 }
 0x7d2   : > { %v2661_v45 = vadd.f32 %v4283_v23, %v2637_v33  ;;  %v2895_v57 = vsel %vm2892_vm1, %v2894_v42, %v2890_v35  ;;  %vm2904_vm13 = vmor %vm2902_vm0, %vm2903_vm11  ;;  %v2909_v54 = vor.u32 1.1754944e-38, %v2908_v4  ;;  %vm2907_vm4 = vcmp.eq.f32.partialorder %v2906_v47, 8.507059e+37 }
 0x7d3   : > { %v3010_v24 = vmul.f32 2.0, %v2895_v57  ;;  %v2899_v28 = vsub.f32 1.0, %v2898_v31 }
 0x7d4   : > { %v2677_v6 = vmul.f32 2.0, %v2661_v45 }
 0x7d5   : > { %v4023_v17 = vadd.f32 -1.0, %v3010_v24  ;;  %v2900_v56 = vmul.f32 %v5064_v9, %v2899_v28 }
 0x7d6   : > { %v2693_v11 = vsel %vm5736_vm3, %v2677_v6, %v2661_v45 }
 0x7d7   : > { %v5066_v26 = vpop.eup %5065  ;;  %v4010_v22 = vmul.f32 -1.442695, %v2693_v11  ;;  %v7816_v59 = vsel %vm5736_vm3, %v4023_v17, %v2895_v57  ;;  %v2901_v27 = vadd.f32 %v5064_v9, %v2900_v56 }
 0x7d8   : > { %v2756_v23 = vadd.f32 1.0, %v5066_v26  ;;  %3066 = vrot.lane.b32.xlu0 %v7816_v59, %s5515_s17 }
 0x7d9   : > { %5067 = vpow2.f32 %v4010_v22  ;;  %v2905_v50 = vsel %vm2904_vm13, %v5064_v9, %v2901_v27 }
 0x7da   : > { %5069 = vrcp.f32 %v2756_v23  ;;  %v2910_v42 = vsel %vm2907_vm4, %v2909_v54, %v2905_v50  ;;  %v2923_v6 = vand.u32 2147483648, %v2756_v23  ;;  %v2921_v4 = vand.u32 2147483647, %v2756_v23 }
 0x7db   : > { %v3011_v33 = vmul.f32 2.0, %v2910_v42  ;;  %vm2917_vm11 = vweird.f32 %v2756_v23 }
 0x7dc   : > { %v2924_v47 = vor.u32 1.1754944e-38, %v2923_v6  ;;  %vm2922_vm13 = vcmp.eq.f32.partialorder %v2921_v4, 8.507059e+37 }
 0x7dd   : > { %v4024_v35 = vadd.f32 -1.0, %v3011_v33 }
 0x7df   : > { %v5068_v31 = vpop.eup %5067  ;;  %v7822_v45 = vsel %vm5736_vm3, %v4024_v35, %v2910_v42 }
 0x7e0   : > { %v5070_v57 = vpop.eup %5069  ;;  %v2757_v25 = vadd.f32 1.0, %v5068_v31  ;;  %3068 = vrot.lane.b32.xlu1 %v7822_v45, %s5515_s17  ;;  %v3107_v39 = vmul.f32 %v7822_v45, %v2550_v37 }
 0x7e1   : > { %v2913_v24 = vmul.f32 %v5070_v57, %v2756_v23  ;;  %vm2918_vm1 = vweird.f32 %v5070_v57 }
 0x7e2   : > { %5071 = vrcp.f32 %v2757_v25  ;;  %vm2919_vm0 = vmor %vm2917_vm11, %vm2918_vm1  ;;  %v2938_v50 = vand.u32 2147483648, %v2757_v25  ;;  %v2936_v35 = vand.u32 2147483647, %v2757_v25  ;;  %vm2932_vm6 = vweird.f32 %v2757_v25 }
 0x7e3   : > { %v2914_v28 = vsub.f32 1.0, %v2913_v24 }
 0x7e4   : > { %vm2937_vm11 = vcmp.eq.f32.partialorder %v2936_v35, 8.507059e+37 }
 0x7e5   : > { %v2915_v9 = vmul.f32 %v5070_v57, %v2914_v28 }
 0x7e7   : > { %v2916_v17 = vadd.f32 %v5070_v57, %v2915_v9 }
 0x7e8   : > { %v5072_v56 = vpop.eup %5071 }
 0x7e9   : > { %v2920_v11 = vsel %vm2919_vm0, %v5070_v57, %v2916_v17  ;;  %v2928_v26 = vmul.f32 %v5072_v56, %v2757_v25  ;;  %vm2933_vm4 = vweird.f32 %v5072_v56  ;;  %v2939_v57 = vor.u32 1.1754944e-38, %v2938_v50  ;;  %v4321_v17 = vld [vmem:[%s5975_s16 + $0xf0] sm:$0xff]  }
 0x7ea   : > { %v2925_v22 = vsel %vm2922_vm13, %v2924_v47, %v2920_v11  ;;  %vm2934_vm1 = vmor %vm2932_vm6, %vm2933_vm4  ;;  %v4286_v47 = vunpack.c.l.bf16 %v4321_v17 }
 0x7eb   : > { %v3012_v27 = vmul.f32 2.0, %v2925_v22  ;;  %v2929_v54 = vsub.f32 1.0, %v2928_v26 }
 0x7ed   : > { %v4025_v42 = vadd.f32 -1.0, %v3012_v27  ;;  %v2930_v33 = vmul.f32 %v5072_v56, %v2929_v54 }
 0x7ef   : > { %v7828_v31 = vsel %vm5736_vm3, %v4025_v42, %v2925_v22  ;;  %v2931_v23 = vadd.f32 %v5072_v56, %v2930_v33  ;;  %v7841_v33 = vpop.permute.xlu1 %3260 }
 0x7f0   : > { %3070 = vrot.lane.b32.xlu2 %v7828_v31, %s5515_s17 }
 0x7f1   : > { %v2935_v24 = vsel %vm2934_vm1, %v5072_v56, %v2931_v23  ;;  %v4287_v56 = vunpack.c.h.bf16 %v4321_v17 }
 0x7f2   : > { %v2940_v28 = vsel %vm2937_vm11, %v2939_v57, %v2935_v24 }
 0x7f3   : > { %v3013_v6 = vmul.f32 2.0, %v2940_v28 }
 0x7f5   : > { %v4026_v9 = vadd.f32 -1.0, %v3013_v6 }
 0x7f7   : > { %v7834_v4 = vsel %vm5736_vm3, %v4026_v9, %v2940_v28  ;;  %v7845_v6 = vpop.permute.xlu1 %3269 }
 0x7f8   : > { %3072 = vrot.lane.b32.xlu0 %v7834_v4, %s5515_s17 }
 0x804   : > { %v2640_v25 = vpop.f32.mrf.mxu3 }
 0x805   : > { %v2662_v11 = vadd.f32 %v4286_v47, %v2640_v25 }
 0x807   : > { %v2678_v26 = vmul.f32 2.0, %v2662_v11 }
 0x809   : > { %v2694_v22 = vsel %vm5736_vm3, %v2678_v26, %v2662_v11 }
 0x80a   : > { %v4011_v27 = vmul.f32 -1.442695, %v2694_v22 }
 0x80c   : > { %5073 = vpow2.f32 %v4011_v27  ;;  %v2642_v54 = vpop.f32.mrf.mxu3 }
 0x80d   : > { %v2663_v50 = vadd.f32 %v4287_v56, %v2642_v54 }
 0x80f   : > { %v2679_v42 = vmul.f32 2.0, %v2663_v50 }
 0x811   : > { %v2695_v35 = vsel %vm5736_vm3, %v2679_v42, %v2663_v50  ;;  %v7847_v50 = vpop.permute.xlu1 %3278 }
 0x812   : > { %v5074_v23 = vpop.eup %5073  ;;  %v4012_v57 = vmul.f32 -1.442695, %v2695_v35  ;;  %vm3313_vm10 = vcmp.eq.s32.totalorder %v7847_v50, 1 }
 0x813   : > { %v2758_v24 = vadd.f32 1.0, %v5074_v23 }
 0x814   : > { %5075 = vpow2.f32 %v4012_v57 }
 0x815   : > { %5077 = vrcp.f32 %v2758_v24  ;;  %v2953_v11 = vand.u32 2147483648, %v2758_v24  ;;  %v2951_v22 = vand.u32 2147483647, %v2758_v24  ;;  %vm2947_vm0 = vweird.f32 %v2758_v24 }
 0x817   : > { %v2954_v54 = vor.u32 1.1754944e-38, %v2953_v11  ;;  %vm2952_vm4 = vcmp.eq.f32.partialorder %v2951_v22, 8.507059e+37 }
 0x81a   : > { %v5076_v28 = vpop.eup %5075 }
 0x81b   : > { %v5078_v9 = vpop.eup %5077  ;;  %v2759_v17 = vadd.f32 1.0, %v5076_v28  ;;  %v4322_v28 = vld [vmem:[%s5975_s16 + $0xf8] sm:$0xff]  }
 0x81c   : > { %v2943_v47 = vmul.f32 %v5078_v9, %v2758_v24  ;;  %vm2948_vm6 = vweird.f32 %v5078_v9  ;;  %v4290_v53 = vunpack.c.l.bf16 %v4322_v28 }
 0x81d   : > { %5079 = vrcp.f32 %v2759_v17  ;;  %vm2949_vm13 = vmor %vm2947_vm0, %vm2948_vm6  ;;  %vm2962_vm11 = vweird.f32 %v2759_v17 }
 0x81e   : > { %v2944_v25 = vsub.f32 1.0, %v2943_v47  ;;  %v2968_v47 = vand.u32 2147483648, %v2759_v17 }
 0x820   : > { %v2945_v26 = vmul.f32 %v5078_v9, %v2944_v25  ;;  %v2966_v25 = vand.u32 2147483647, %v2759_v17 }
 0x822   : > { %v2946_v56 = vadd.f32 %v5078_v9, %v2945_v26  ;;  %vm2967_vm0 = vcmp.eq.f32.partialorder %v2966_v25, 8.507059e+37 }
 0x823   : > { %v5080_v27 = vpop.eup %5079 }
 0x824   : > { %v2950_v42 = vsel %vm2949_vm13, %v5078_v9, %v2946_v56  ;;  %v2958_v35 = vmul.f32 %v5080_v27, %v2759_v17  ;;  %vm2963_vm1 = vweird.f32 %v5080_v27  ;;  %v2969_v9 = vor.u32 1.1754944e-38, %v2968_v47 }
 0x825   : > { %v2955_v23 = vsel %vm2952_vm4, %v2954_v54, %v2950_v42  ;;  %vm2964_vm6 = vmor %vm2962_vm11, %vm2963_vm1 }
 0x826   : > { %v3014_v57 = vmul.f32 2.0, %v2955_v23  ;;  %v2959_v46 = vsub.f32 1.0, %v2958_v35 }
 0x828   : > { %v4027_v58 = vadd.f32 -1.0, %v3014_v57  ;;  %v2960_v43 = vmul.f32 %v5080_v27, %v2959_v46  ;;  %v7856_v46 = vpop.permute.xlu1 %3287 }
 0x829   : > { %vm3316_vm2 = vcmp.eq.s32.totalorder %v7856_v46, 1 }
 0x82a   : > { %v7852_v24 = vsel %vm5736_vm3, %v4027_v58, %v2955_v23  ;;  %v2961_v11 = vadd.f32 %v5080_v27, %v2960_v43  ;;  %v4291_v43 = vunpack.c.h.bf16 %v4322_v28  ;;  %v7869_v28 = vpop.permute.xlu2 %3263 }
 0x82b   : > { %3074 = vrot.lane.b32.xlu1 %v7852_v24, %s5515_s17 }
 0x82c   : > { %v2645_v26 = vpop.f32.mrf.mxu3  ;;  %v2965_v22 = vsel %vm2964_vm6, %v5080_v27, %v2961_v11 }
 0x82d   : > { %v2664_v56 = vadd.f32 %v4290_v53, %v2645_v26  ;;  %v2970_v54 = vsel %vm2967_vm0, %v2969_v9, %v2965_v22 }
 0x82e   : > { %v3015_v42 = vmul.f32 2.0, %v2970_v54 }
 0x82f   : > { %v2680_v35 = vmul.f32 2.0, %v2664_v56 }
 0x830   : > { %v4028_v57 = vadd.f32 -1.0, %v3015_v42  ;;  %v3051_v47 = vpop.permute.xlu1 %3050 }
 0x831   : > { %v2696_v58 = vsel %vm5736_vm3, %v2680_v35, %v2664_v56  ;;  %v3082_v11 = vmul.f32 %v3051_v47, %v7711_v52 }
 0x832   : > { %v4013_v17 = vmul.f32 -1.442695, %v2696_v58  ;;  %v7862_v23 = vsel %vm5736_vm3, %v4028_v57, %v2970_v54  ;;  %v7873_v57 = vpop.permute.xlu0 %3266 }
 0x833   : > { %3076 = vrot.lane.b32.xlu2 %v7862_v23, %s5515_s17  ;;  %9078 = vst [vmem:[#allocation49_spill] sm:$0xff] %v7873_v57 }
 0x834   : > { %5081 = vpow2.f32 %v4013_v17  ;;  %v2647_v53 = vpop.f32.mrf.mxu3  ;;  %v7876_v17 = vpop.permute.xlu2 %3272 }
 0x835   : > { %v2665_v27 = vadd.f32 %v4291_v43, %v2647_v53  ;;  %9079 = vst [vmem:[#allocation48_spill] sm:$0xff] %v7876_v17 }
 0x837   : > { %v2681_v25 = vmul.f32 2.0, %v2665_v27 }
 0x838   : > { %v3057_v54 = vpop.permute.xlu1 %3056 }
 0x839   : > { %v2697_v9 = vsel %vm5736_vm3, %v2681_v25, %v2665_v27  ;;  %v3085_v42 = vmul.f32 %v3057_v54, %v7729_v20 }
 0x83a   : > { %v5082_v26 = vpop.eup %5081  ;;  %v4014_v22 = vmul.f32 -1.442695, %v2697_v9  ;;  %v9084_v36 = vld [vmem:[#allocation49_spill] sm:$0xff] }
 0x83b   : > { %v2760_v56 = vadd.f32 1.0, %v5082_v26  ;;  %3114 = vrot.lane.b32.xlu2 %v3082_v11, %s5517_s18  ;;  %vm3309_vm9 = vcmp.eq.s32.totalorder %v9084_v36, 1  ;;  %v9127_v36 = vld [vmem:[#allocation34_spill] sm:$0xff] }
 0x83c   : > { %5083 = vpow2.f32 %v4014_v22 }
 0x83d   : > { %5085 = vrcp.f32 %v2760_v56  ;;  %v2983_v25 = vand.u32 2147483648, %v2760_v56  ;;  %v2981_v9 = vand.u32 2147483647, %v2760_v56  ;;  %vm2977_vm4 = vweird.f32 %v2760_v56 }
 0x83f   : > { %vm2982_vm11 = vcmp.eq.f32.partialorder %v2981_v9, 8.507059e+37 }
 0x840   : > { %v3063_v27 = vpop.permute.xlu1 %3062 }
 0x841   : > { %v3088_v26 = vmul.f32 %v3063_v27, %v7800_v8 }
 0x842   : > { %v5084_v35 = vpop.eup %5083 }
 0x843   : > { %v5086_v58 = vpop.eup %5085  ;;  %v2761_v43 = vadd.f32 1.0, %v5084_v35  ;;  %3120 = vrot.lane.b32.xlu2 %v3085_v42, %s5517_s18  ;;  %v2984_v35 = vor.u32 1.1754944e-38, %v2983_v25  ;;  %v7880_v42 = vpop.permute.xlu0 %3275 }
 0x844   : > { %v2973_v53 = vmul.f32 %v5086_v58, %v2760_v56  ;;  %vm2978_vm13 = vweird.f32 %v5086_v58 }
 0x845   : > { %5087 = vrcp.f32 %v2761_v43  ;;  %vm2979_vm1 = vmor %vm2977_vm4, %vm2978_vm13  ;;  %v2998_v57 = vand.u32 2147483648, %v2761_v43  ;;  %v2996_v56 = vand.u32 2147483647, %v2761_v43  ;;  %vm2992_vm0 = vweird.f32 %v2761_v43 }
 0x846   : > { %v2974_v47 = vsub.f32 1.0, %v2973_v53  ;;  %v7882_v53 = vpop.permute.xlu2 %3281 }
 0x847   : > { %vm2997_vm4 = vcmp.eq.f32.partialorder %v2996_v56, 8.507059e+37 }
 0x848   : > { %v2975_v11 = vmul.f32 %v5086_v58, %v2974_v47 }
 0x84a   : > { %v2976_v22 = vadd.f32 %v5086_v58, %v2975_v11 }
 0x84b   : > { %v5088_v54 = vpop.eup %5087  ;;  %3126 = vrot.lane.b32.xlu2 %v3088_v26, %s5517_s18 }
 0x84c   : > { %v2980_v12 = vsel %vm2979_vm1, %v5086_v58, %v2976_v22  ;;  %v2988_v3 = vmul.f32 %v5088_v54, %v2761_v43  ;;  %vm2993_vm6 = vweird.f32 %v5088_v54  ;;  %v7892_v22 = vpop.permute.xlu0 %3284  ;;  %vm3238_vm1 = vcmp.gt.s32.totalorder %v9016_v2, %v7590_v40 }
 0x84d   : > { %v2985_v32 = vsel %vm2982_vm11, %v2984_v35, %v2980_v12  ;;  %vm2994_vm13 = vmor %vm2992_vm0, %vm2993_vm6  ;;  %v2999_v12 = vor.u32 1.1754944e-38, %v2998_v57  ;;  %vm3307_vm11 = vcmp.eq.s32.totalorder %v7841_v33, 1  ;;  %vm3308_vm6 = vcmp.eq.s32.totalorder %v7869_v28, 1 }
 0x84e   : > { %v3016_v47 = vmul.f32 2.0, %v2985_v32  ;;  %v2989_v14 = vsub.f32 1.0, %v2988_v3  ;;  %v3053_v9 = vpop.permute.xlu2 %3052 }
 0x850   : > { %v4029_v17 = vadd.f32 -1.0, %v3016_v47  ;;  %v2990_v27 = vmul.f32 %v5088_v54, %v2989_v14 }
 0x852   : > { %v3069_v11 = vpop.permute.xlu1 %3068  ;;  %v7886_v26 = vsel %vm5736_vm3, %v4029_v17, %v2985_v32  ;;  %v2991_v25 = vadd.f32 %v5088_v54, %v2990_v27  ;;  %v3083_v17 = vmul.f32 %v3053_v9, %v7717_v63 }
 0x853   : > { %v3091_v58 = vmul.f32 %v3069_v11, %v7822_v45  ;;  %3078 = vrot.lane.b32.xlu0 %v7886_v26, %s5515_s17 }
 0x854   : > { %v2995_v3 = vsel %vm2994_vm13, %v5088_v54, %v2991_v25  ;;  %v3055_v57 = vpop.permute.xlu0 %3054  ;;  %vm3314_vm13 = vcmp.eq.s32.totalorder %v7882_v53, 1 }
 0x855   : > { %3132 = vrot.lane.b32.xlu2 %v3091_v58, %s5517_s18  ;;  %v3000_v14 = vsel %vm2997_vm4, %v2999_v12, %v2995_v3  ;;  %v3084_v47 = vmul.f32 %v3055_v57, %v7723_v49  ;;  %vm3312_vm4 = vcmp.eq.s32.totalorder %v7880_v42, 1  ;;  %v9130_v42 = vld [vmem:[#allocation56_spill] sm:$0xff] }
 0x856   : > { %v3017_v35 = vmul.f32 2.0, %v3000_v14  ;;  %v3059_v54 = vpop.permute.xlu2 %3058 }
 0x857   : > { %v3086_v27 = vmul.f32 %v3059_v54, %v7785_v21  ;;  %v9080_v54 = vld [vmem:[#allocation47_spill] sm:$0xff] }
 0x858   : > { %v4030_v32 = vadd.f32 -1.0, %v3017_v35 }
 0x85a   : > { %v7897_v43 = vsel %vm5736_vm3, %v4030_v32, %v3000_v14 }
 0x85b   : > { %3080 = vrot.lane.b32.xlu1 %v7897_v43, %s5515_s17  ;;  %3116 = vrot.lane.b32.xlu0 %v3083_v17, %s5517_s18 }
 0x85c   : > { %v3061_v11 = vpop.permute.xlu0 %3060 }
 0x85d   : > { %v3087_v58 = vmul.f32 %v3061_v11, %v7793_v41 }
 0x85e   : > { %v3065_v56 = vpop.permute.xlu2 %3064 }
 0x85f   : > { %v3089_v25 = vmul.f32 %v3065_v56, %v7808_v19 }
 0x863   : > { %3118 = vrot.lane.b32.xlu1 %v3084_v47, %s5517_s18  ;;  %3122 = vrot.lane.b32.xlu0 %v3086_v27, %s5517_s18  ;;  %v9081_v47 = vld [vmem:[#allocation46_spill] sm:$0xff] }
 0x864   : > { %v3067_v12 = vpop.permute.xlu0 %3066  ;;  %v2541_v27 = vsel %vm2509_vm8, %v9081_v47, %v9080_v54  ;;  %vm3310_vm8 = vcmp.eq.s32.totalorder %v7845_v6, 1 }
 0x865   : > { %v3090_v14 = vmul.f32 %v3067_v12, %v7816_v59  ;;  %v3098_v56 = vmul.f32 %v7711_v52, %v2541_v27 }
 0x866   : > { %v3071_v3 = vpop.permute.xlu2 %3070 }
 0x867   : > { %v3092_v9 = vmul.f32 %v3071_v3, %v7828_v31  ;;  %v3101_v3 = vmul.f32 %v7729_v20, %v2544_v48 }
 0x86b   : > { %3124 = vrot.lane.b32.xlu1 %v3087_v58, %s5517_s18  ;;  %3128 = vrot.lane.b32.xlu0 %v3089_v25, %s5517_s18  ;;  %v3254_v25 = vsel %vm3238_vm1, 1, %v8816_v1 }
 0x86c   : > { %v3073_v35 = vpop.permute.xlu0 %3072 }
 0x86d   : > { %v3093_v32 = vmul.f32 %v3073_v35, %v7834_v4 }
 0x873   : > { %3130 = vrot.lane.b32.xlu1 %v3090_v14, %s5517_s18  ;;  %3134 = vrot.lane.b32.xlu0 %v3092_v9, %s5517_s18 }
 0x87b   : > { %3136 = vrot.lane.b32.xlu1 %v3093_v32, %s5517_s18 }
 0x88d   : > { %v3077_v17 = vpop.permute.xlu2 %3076 }
 0x88e   : > { %v3095_v57 = vmul.f32 %v3077_v17, %v7862_v23 }
 0x890   : > { %3140 = vrot.lane.b32.xlu0 %v3095_v57, %s5517_s18 }
 0x895   : > { %v3115_v11 = vpop.permute.xlu2 %3114 }
 0x896   : > { %v3146_v58 = vadd.f32 %v3115_v11, %v3098_v56 }
 0x898   : > { %5089 = vtanh.f32 %v3146_v58  ;;  %v7929_v12 = vsel %vm3307_vm11, %v3146_v58, %v2541_v27   ;;  %3293 = vperm.xlu0 %4736, %v3254_v25  }
 0x89d   : > { %v3075_v14 = vpop.permute.xlu1 %3074  ;;  %v3121_v9 = vpop.permute.xlu2 %3120 }
 0x89e   : > { %v5090_v35 = vpop.eup %5089  ;;  %v3094_v32 = vmul.f32 %v3075_v14, %v7852_v24  ;;  %v3149_v17 = vadd.f32 %v3121_v9, %v3101_v3  ;;  %v3255_v14 = vsel %vm3239_vm12, 1, %v8816_v1  ;;  %vm3315_vm12 = vcmp.eq.s32.totalorder %v7892_v22, 1 }
 0x8a0   : > { %5091 = vtanh.f32 %v3149_v17  ;;  %v7940_v57 = vsel %vm3310_vm8, %v3149_v17, %v2544_v48   ;;  %3138 = vrot.lane.b32.xlu2 %v3094_v32, %s5517_s18  ;;  %3178 = vrot.lane.b32.xlu0 %v5090_v35, %s5515_s17  ;;  %v3102_v32 = vmul.f32 %v7785_v21, %v2545_v62 }
 0x8a1   : > { %v9082_v47 = vmov %v7940_v57 }
 0x8a5   : > { %v3127_v30 = vpop.permute.xlu2 %3126 }
 0x8a6   : > { %v5092_v54 = vpop.eup %5091  ;;  %v3152_v27 = vadd.f32 %v3127_v30, %v3104_v60  ;;  %v3253_v30 = vsel %vm3237_vm5, 1, %v8816_v1 }
 0x8a8   : > { %5093 = vtanh.f32 %v3152_v27  ;;  %v7952_v60 = vsel %vm3313_vm10, %v3152_v27, %v2547_v7   ;;  %3184 = vrot.lane.b32.xlu0 %v5092_v54, %s5515_s17 }
 0x8ae   : > { %v5094_v29 = vpop.eup %5093 }
 0x8af   : > { %v3133_v56 = vpop.permute.xlu2 %3132 }
 0x8b0   : > { %v3155_v11 = vadd.f32 %v3133_v56, %v3107_v39  ;;  %3190 = vrot.lane.b32.xlu0 %v5094_v29, %s5515_s17  ;;  %v9088_v29 = vld [vmem:[#allocation57_spill] sm:$0xff]  ;;  %v9090_v56 = vld [vmem:[#allocation67_spill] sm:$0xff] }
 0x8b1   : > { %v9089_v39 = vld [vmem:[#allocation77_spill] sm:$0xff]  ;;  %vm9091_vm14 = vcmp.eq.s32.totalorder %v9090_v56, 1 }
 0x8b2   : > { %5095 = vtanh.f32 %v3155_v11  ;;  %v7964_v57 = vsel %vm3316_vm2, %v3155_v11, %v2550_v37   ;;  %v9083_v37 = vld [vmem:[#allocation48_spill] sm:$0xff]  ;;  %v2548_v11 = vsel %vm9091_vm14, %v9089_v39, %v9088_v29 }
 0x8b3   : > { %vm3311_vm0 = vcmp.eq.s32.totalorder %v9083_v37, 1 }
 0x8b8   : > { %v5096_v25 = vpop.eup %5095 }
 0x8b9   : > { %3196 = vrot.lane.b32.xlu0 %v5096_v25, %s5515_s17  ;;  %v3103_v25 = vmul.f32 %v7793_v41, %v2546_v44 }
 0x8c5   : > { %v3079_v58 = vpop.permute.xlu0 %3078 }
 0x8c6   : > { %v3096_v15 = vmul.f32 %v3079_v58, %v7886_v26  ;;  %v3105_v58 = vmul.f32 %v7808_v19, %v2548_v11 }
 0x8c8   : > { %3142 = vrot.lane.b32.xlu1 %v3096_v15, %s5517_s18 }
 0x8cd   : > { %v3081_v48 = vpop.permute.xlu1 %3080  ;;  %v3117_v3 = vpop.permute.xlu0 %3116 }
 0x8ce   : > { %v3097_v9 = vmul.f32 %v3081_v48, %v7897_v43  ;;  %v3147_v35 = vadd.f32 %v3117_v3, %v3099_v5 }
 0x8d0   : > { %5097 = vtanh.f32 %v3147_v35  ;;  %v7981_v35 = vsel %vm3308_vm6, %v3147_v35, %v2542_v10   ;;  %3296 = vperm.xlu1 %4734, %v3255_v14   ;;  %3144 = vrot.lane.b32.xlu2 %v3097_v9, %s5517_s18 }
 0x8d5   : > { %v3119_v17 = vpop.permute.xlu1 %3118  ;;  %v3123_v7 = vpop.permute.xlu0 %3122 }
 0x8d6   : > { %v5098_v54 = vpop.eup %5097  ;;  %v3148_v38 = vadd.f32 %v3119_v17, %v3100_v51  ;;  %v3150_v27 = vadd.f32 %v3123_v7, %v3102_v32  ;;  %v9092_v51 = vld [vmem:[#allocation80_spill] sm:$0xff]  ;;  %v9093_v32 = vld [vmem:[#allocation81_spill] sm:$0xff]  ;;  %v9094_v17 = vld [vmem:[#allocation38_spill] sm:$0xff] }
 0x8d7   : > { %vm9095_vm7 = vcmp.eq.s32.totalorder %v9094_v17, 1 }
 0x8d8   : > { %5099 = vtanh.f32 %v3148_v38  ;;  %v8001_v18 = vsel %vm3309_vm9, %v3148_v38, %v2543_v61   ;;  %v8005_v62 = vsel %vm3311_vm0, %v3150_v27, %v2545_v62   ;;  %3290 = vperm.xlu2 %4735, %v3253_v30   ;;  %3180 = vrot.lane.b32.xlu1 %v5098_v54, %s5515_s17  ;;  %v2549_v7 = vsel %vm9095_vm7, %v9093_v32, %v9092_v51  ;;  %v9096_v30 = vld [vmem:[#allocation66_spill] sm:$0xff]  ;;  %v9097_v54 = vld [vmem:[#allocation41_spill] sm:$0xff] }
 0x8d9   : > { %5101 = vtanh.f32 %v3150_v27  ;;  %v9098_v38 = vld [vmem:[#allocation50_spill] sm:$0xff]  ;;  %v3106_v13 = vmul.f32 %v7816_v59, %v2549_v7 }
 0x8da   : > { %vm9099_vm1 = vcmp.eq.s32.totalorder %v9098_v38, 1 }
 0x8db   : > { %v8038_v27 = vsel %vm9099_vm1, %v9097_v54, %v9096_v30 }
 0x8dc   : > { %v3108_v55 = vmul.f32 %v7828_v31, %v8038_v27 }
 0x8dd   : > { %v3125_v15 = vpop.permute.xlu1 %3124  ;;  %v3129_v10 = vpop.permute.xlu0 %3128 }
 0x8de   : > { %v5100_v5 = vpop.eup %5099  ;;  %v3151_v48 = vadd.f32 %v3125_v15, %v3103_v25  ;;  %v3153_v3 = vadd.f32 %v3129_v10, %v3105_v58  ;;  %v9100_v25 = vld [vmem:[#allocation59_spill] sm:$0xff]  ;;  %v9101_v15 = vld [vmem:[#allocation69_spill] sm:$0xff]  ;;  %v9102_v10 = vld [vmem:[#allocation40_spill] sm:$0xff] }
 0x8df   : > { %v5102_v14 = vpop.eup %5101  ;;  %vm9103_vm5 = vcmp.eq.s32.totalorder %v9102_v10, 1 }
 0x8e0   : > { %5103 = vtanh.f32 %v3151_v48  ;;  %v8022_v61 = vsel %vm3312_vm4, %v3151_v48, %v2546_v44   ;;  %v8026_v9 = vsel %vm3314_vm13, %v3153_v3, %v2548_v11   ;;  %3182 = vrot.lane.b32.xlu2 %v5100_v5, %s5515_s17  ;;  %3186 = vrot.lane.b32.xlu1 %v5102_v14, %s5515_s17  ;;  %v2552_v5 = vsel %vm9103_vm5, %v9101_v15, %v9100_v25 }
 0x8e1   : > { %5105 = vtanh.f32 %v3153_v3  ;;  %v3109_v48 = vmul.f32 %v7834_v4, %v2552_v5 }
 0x8e5   : > { %v3131_v16 = vpop.permute.xlu1 %3130  ;;  %v3135_v44 = vpop.permute.xlu0 %3134 }
 0x8e6   : > { %v5104_v29 = vpop.eup %5103  ;;  %v3154_v39 = vadd.f32 %v3131_v16, %v3106_v13  ;;  %v3156_v56 = vadd.f32 %v3135_v44, %v3108_v55  ;;  %v9105_v13 = vld [vmem:[#allocation63_spill] sm:$0xff]  ;;  %v9106_v55 = vld [vmem:[#allocation68_spill] sm:$0xff] }
 0x8e7   : > { %v5106_v11 = vpop.eup %5105  ;;  %v8064_v44 = vsel %vm2522_vm15, %v9106_v55, %v9105_v13 }
 0x8e8   : > { %5107 = vtanh.f32 %v3154_v39  ;;  %v8046_v58 = vsel %vm3315_vm12, %v3154_v39, %v2549_v7   ;;  %3188 = vrot.lane.b32.xlu2 %v5104_v29, %s5515_s17  ;;  %3192 = vrot.lane.b32.xlu1 %v5106_v11, %s5515_s17  ;;  %v9104_v7 = vld [vmem:[#allocation39_spill] sm:$0xff]  ;;  %v3111_v29 = vmul.f32 %v7862_v23, %v8064_v44 }
 0x8e9   : > { %5109 = vtanh.f32 %v3156_v56  ;;  %v3110_v30 = vmul.f32 %v7852_v24, %v9104_v7 }
 0x8ed   : > { %v3137_v3 = vpop.permute.xlu1 %3136 }
 0x8ee   : > { %v5108_v14 = vpop.eup %5107  ;;  %v3157_v51 = vadd.f32 %v3137_v3, %v3109_v48  ;;  %v9108_v48 = vld [vmem:[#allocation36_spill] sm:$0xff] }
 0x8ef   : > { %v5110_v32 = vpop.eup %5109  ;;  %vm3242_vm15 = vcmp.gt.s32.totalorder %v9108_v48, %v7590_v40  ;;  %v9115_v48 = vld [vmem:[#allocation72_spill] sm:$0xff] }
 0x8f0   : > { %5111 = vtanh.f32 %v3157_v51  ;;  %3194 = vrot.lane.b32.xlu2 %v5108_v14, %s5515_s17  ;;  %3198 = vrot.lane.b32.xlu1 %v5110_v32, %s5515_s17  ;;  %v3258_v3 = vsel %vm3242_vm15, 1, %v8816_v1 }
 0x8f6   : > { %v5112_v17 = vpop.eup %5111 }
 0x8f8   : > { %3200 = vrot.lane.b32.xlu2 %v5112_v17, %s5515_s17  ;;  %v9109_v17 = vld [vmem:[#allocation78_spill] sm:$0xff] }
 0x8fa   : > { %v3139_v54 = vpop.permute.xlu2 %3138 }
 0x8fb   : > { %v3158_v38 = vadd.f32 %v3139_v54, %v3110_v30 }
 0x8fd   : > { %5113 = vtanh.f32 %v3158_v38 }
 0x902   : > { %v3141_v39 = vpop.permute.xlu0 %3140 }
 0x903   : > { %v5114_v11 = vpop.eup %5113  ;;  %v8068_v25 = vadd.f32 %v3141_v39, %v3111_v29  ;;  %v9112_v39 = vld [vmem:[#allocation71_spill] sm:$0xff] }
 0x904   : > { %3202 = vrot.lane.b32.xlu0 %v5114_v11, %s5515_s17 }
 0x905   : > { %5115 = vtanh.f32 %v8068_v25 }
 0x90a   : > { %v8072_v15 = vpop.permute.xlu0 %3293 }
 0x90b   : > { %v5116_v10 = vpop.eup %5115  ;;  %vm3318_vm14 = vcmp.eq.s32.totalorder %v8072_v15, 1  ;;  %v9139_v15 = vld [vmem:[#allocation74_spill] sm:$0xff] }
 0x90c   : > { %v8077_v55 = vsel %vm3318_vm14, %v3157_v51, %v2552_v5   ;;  %3204 = vrot.lane.b32.xlu1 %v5116_v10, %s5515_s17  ;;  %v9111_v51 = vld [vmem:[#allocation58_spill] sm:$0xff] }
 0x90d   : > { %v9114_v10 = vld [vmem:[#allocation62_spill] sm:$0xff] }
 0x912   : > { %v3179_v14 = vpop.permute.xlu0 %3178 }
 0x913   : > { %v3210_v32 = vmul.f32 %v3179_v14, %v7711_v52 }
 0x914   : > { %3305 = vperm.xlu1 %4734, %v3258_v3   ;;  %v9116_v3 = vld [vmem:[#allocation53_spill] sm:$0xff] }
 0x915   : > { %v8087_v33 = vsel %vm3307_vm11, %v3210_v32, %v9109_v17   ;;  %vm9117_vm11 = vcmp.eq.s32.totalorder %v9116_v3, 1 }
 0x916   : > { %v9110_v30 = vmov %v8087_v33  ;;  %v2556_v33 = vsel %vm9117_vm11, %v9115_v48, %v9114_v10 }
 0x91a   : > { %v3185_v54 = vpop.permute.xlu0 %3184 }
 0x91b   : > { %v3213_v5 = vmul.f32 %v3185_v54, %v7729_v20  ;;  %v3113_v20 = vmul.f32 %v7897_v43, %v2556_v33  ;;  %v9118_v54 = vld [vmem:[#allocation55_spill] sm:$0xff] }
 0x91d   : > { %v8093_v13 = vsel %vm3310_vm8, %v3213_v5, %v9111_v51   ;;  %v9119_v51 = vld [vmem:[#allocation35_spill] sm:$0xff] }
 0x922   : > { %v3191_v16 = vpop.permute.xlu0 %3190 }
 0x923   : > { %v3216_v29 = vmul.f32 %v3191_v16, %v7800_v8  ;;  %v9120_v16 = vld [vmem:[#allocation61_spill] sm:$0xff] }
 0x925   : > { %v8099_v52 = vsel %vm3313_vm10, %v3216_v29, %v9112_v39   ;;  %vm3241_vm10 = vcmp.gt.s32.totalorder %v9119_v51, %v7590_v40  ;;  %v9122_v29 = vld [vmem:[#allocation54_spill] sm:$0xff]  ;;  %v9125_v51 = vld [vmem:[#allocation76_spill] sm:$0xff] }
 0x926   : > { %v9113_v11 = vmov %v8099_v52  ;;  %vm9123_vm7 = vcmp.eq.s32.totalorder %v9122_v29, 1  ;;  %v3257_v52 = vsel %vm3241_vm10, 1, %v8816_v1 }
 0x92a   : > { %v3145_v14 = vpop.permute.xlu2 %3144 }
 0x92b   : > { %v3161_v32 = vadd.f32 %v3145_v14, %v3113_v20  ;;  %v3197_v6 = vpop.permute.xlu0 %3196  ;;  %v9124_v20 = vld [vmem:[#allocation44_spill] sm:$0xff] }
 0x92c   : > { %v3219_v17 = vmul.f32 %v3197_v6, %v7822_v45  ;;  %v9121_v45 = vld [vmem:[#allocation42_spill] sm:$0xff] }
 0x92d   : > { %5117 = vtanh.f32 %v3161_v32  ;;  %v2555_v39 = vsel %vm9123_vm7, %v9121_v45, %v9120_v16 }
 0x92e   : > { %v8110_v8 = vsel %vm3316_vm2, %v3219_v17, %v9118_v54   ;;  %v3112_v46 = vmul.f32 %v7886_v26, %v2555_v39 }
 0x932   : > { %v3291_v50 = vpop.permute.xlu2 %3290 }
 0x933   : > { %v5118_v5 = vpop.eup %5117  ;;  %vm3317_vm8 = vcmp.eq.s32.totalorder %v3291_v50, 1  ;;  %v9140_v50 = vld [vmem:[#allocation37_spill] sm:$0xff] }
 0x934   : > { %v8114_v56 = vsel %vm3317_vm8, %v3156_v56, %v8038_v27   ;;  %3208 = vrot.lane.b32.xlu0 %v5118_v5, %s5515_s17 }
 0x93a   : > { %v3143_v10 = vpop.permute.xlu1 %3142  ;;  %v3183_v48 = vpop.permute.xlu2 %3182 }
 0x93b   : > { %v3160_v3 = vadd.f32 %v3143_v10, %v3112_v46  ;;  %v3212_v27 = vmul.f32 %v3183_v48, %v7723_v49 }
 0x93c   : > { %3302 = vperm.xlu0 %4736, %v3257_v52  }
 0x93d   : > { %5119 = vtanh.f32 %v3160_v3  ;;  %v8129_v14 = vsel %vm3309_vm9, %v3212_v27, %v9124_v20   ;;  %vm3240_vm9 = vcmp.gt.s32.totalorder %v9127_v36, %v7590_v40 }
 0x93e   : > { %v3256_v45 = vsel %vm3240_vm9, 1, %v8816_v1 }
 0x942   : > { %v3297_v6 = vpop.permute.xlu1 %3296  ;;  %v3189_v17 = vpop.permute.xlu2 %3188 }
 0x943   : > { %v5120_v54 = vpop.eup %5119  ;;  %vm3319_vm2 = vcmp.eq.s32.totalorder %v3297_v6, 1  ;;  %v3215_v5 = vmul.f32 %v3189_v17, %v7793_v41 }
 0x944   : > { %v3351_v16 = vsel %vm3319_vm2, %v3158_v38, %v9104_v7   ;;  %3206 = vrot.lane.b32.xlu2 %v5120_v54, %s5515_s17  ;;  %v9128_v7 = vld [vmem:[#allocation79_spill] sm:$0xff] }
 0x945   : > { %v8138_v49 = vsel %vm3312_vm4, %v3215_v5, %v9125_v51  }
 0x946   : > { %v9126_v29 = vmov %v8138_v49  ;;  %v9136_v49 = vld [vmem:[#allocation60_spill] sm:$0xff] }
 0x94a   : > { %v3181_v46 = vpop.permute.xlu1 %3180  ;;  %v3195_v52 = vpop.permute.xlu2 %3194 }
 0x94b   : > { %v3211_v10 = vmul.f32 %v3181_v46, %v7717_v63  ;;  %v3218_v41 = vmul.f32 %v3195_v52, %v7816_v59  ;;  %v9132_v63 = vld [vmem:[#allocation64_spill] sm:$0xff]  ;;  %v9134_v59 = vld [vmem:[#allocation73_spill] sm:$0xff] }
 0x94c   : > { %3299 = vperm.xlu2 %4735, %v3256_v45   ;;  %v9138_v46 = vld [vmem:[#allocation65_spill] sm:$0xff] }
 0x94d   : > { %v8148_v38 = vsel %vm3308_vm6, %v3211_v10, %v9128_v7   ;;  %v8153_v48 = vsel %vm3315_vm12, %v3218_v41, %v9130_v42  }
 0x94e   : > { %v9129_v27 = vmov %v8148_v38  ;;  %v9131_v20 = vmov %v8153_v48 }
 0x952   : > { %v3187_v40 = vpop.permute.xlu1 %3186  ;;  %v3201_v17 = vpop.permute.xlu2 %3200 }
 0x953   : > { %v3214_v1 = vmul.f32 %v3187_v40, %v7785_v21  ;;  %v3221_v54 = vmul.f32 %v3201_v17, %v7834_v4 }
 0x955   : > { %v8160_v48 = vsel %vm3311_vm0, %v3214_v1, %v9132_v63   ;;  %v8165_v41 = vsel %vm3318_vm14, %v3221_v54, %v9134_v59   ;;  %v9144_v54 = vmov %v3351_v16  ;;  %v9145_v59 = vmov %v8026_v9 }
 0x956   : > { %v9133_v5 = vmov %v8160_v48  ;;  %v9135_v28 = vmov %v8165_v41  ;;  %v9146_v63 = vmov %v9082_v47  ;;  %v9159_v47 = vmov %v9126_v29 }
 0x957   :  { %v9178_v47 = vmov (%p8191_p2), %v8093_v13 }
 0x95a   : > { %v3193_v51 = vpop.permute.xlu1 %3192 }
 0x95b   : > { %v3217_v22 = vmul.f32 %v3193_v51, %v7808_v19 }
 0x95d   : > { %v8171_v45 = vsel %vm3314_vm13, %v3217_v22, %v9136_v49   ;;  %v9161_v49 = vmov %v8093_v13 }
 0x95e   : > { %v9137_v21 = vmov %v8171_v45  ;;  %v9180_v49 = vmov (%p8191_p2), %v9129_v27 }
 0x962   : > { %v3199_v36 = vpop.permute.xlu1 %3198 }
 0x963   : > { %v3220_v4 = vmul.f32 %v3199_v36, %v7828_v31  ;;  %v9148_v36 = vmov %v7929_v12 }
 0x965   : > { %v3333_v10 = vsel %vm3317_vm8, %v3220_v4, %v9138_v46   ;;  %v9158_v46 = vmov %v9113_v11 }
 0x966   :  { %v9177_v46 = vmov (%p8191_p2), %v9133_v5 }
 0x976   : > { %v3203_v37 = vpop.permute.xlu0 %3202 }
 0x977   : > { %v3222_v52 = vmul.f32 %v3203_v37, %v7852_v24  ;;  %v9141_v24 = vld [vmem:[#allocation52_spill] sm:$0xff] }
 0x979   : > { %v3335_v7 = vsel %vm3319_vm2, %v3222_v52, %v9139_v15  }
 0x97a   : > { %v9152_v40 = vmov %v3335_v7 }
 0x97b   :  { %v9171_v40 = vmov (%p8191_p2), %v3333_v10 }
 0x97e   : > { %v3205_v41 = vpop.permute.xlu1 %3204 }
 0x97f   : > { %v3223_v53 = vmul.f32 %v3205_v41, %v7862_v23  ;;  %v9153_v41 = vmov %v9135_v28 }
 0x980   :  { %v9172_v41 = vmov (%p8191_p2), %v8110_v8 }
 0x986   : > { %v3306_v38 = vpop.permute.xlu1 %3305 }
 0x987   : > { %vm3322_vm6 = vcmp.eq.s32.totalorder %v3306_v38, 1 }
 0x988   : > { %v3354_v51 = vsel %vm3322_vm6, %v3161_v32, %v2556_v33   ;;  %v9142_v33 = vld [vmem:[#allocation75_spill] sm:$0xff] }
 0x99e   : > { %v3207_v19 = vpop.permute.xlu2 %3206 }
 0x99f   : > { %v3224_v6 = vmul.f32 %v3207_v19, %v7886_v26  ;;  %v9163_v19 = vmov %v9129_v27 }
 0x9a6   : > { %v3209_v45 = vpop.permute.xlu0 %3208  ;;  %v3300_v42 = vpop.permute.xlu2 %3299 }
 0x9a7   : > { %v3225_v31 = vmul.f32 %v3209_v45, %v7897_v43  ;;  %vm3320_vm0 = vcmp.eq.s32.totalorder %v3300_v42, 1  ;;  %v9154_v42 = vmov %v3333_v10  ;;  %v9155_v43 = vmov %v8110_v8 }
 0x9a8   : > { %v3336_v17 = vsel %vm3320_vm0, %v3223_v53, %v9140_v50   ;;  %v3352_v53 = vsel %vm3320_vm0, %v8068_v25, %v8064_v44   ;;  %v9156_v44 = vmov %v9131_v20  ;;  %v9157_v45 = vmov %v9137_v21 }
 0x9a9   : > { %v3338_v1 = vsel %vm3322_vm6, %v3225_v31, %v9141_v24   ;;  %v9162_v50 = vmov %v8129_v14  ;;  %v9173_v42 = vmov (%p8191_p2), %v9131_v20  ;;  %v9174_v43 = vmov (%p8191_p2), %v9137_v21 }
 0x9aa   : > { %v9149_v37 = vmov %v3338_v1  ;;  %v9166_v35 = vmov (%p8191_p2), %v3338_v1  ;;  %v9175_v44 = vmov (%p8191_p2), %v9113_v11  ;;  %v9176_v45 = vmov (%p8191_p2), %v9126_v29 }
 0x9ab   :  { %v9168_v37 = vmov (%p8191_p2), %v3336_v17  ;;  %v9181_v50 = vmov (%p8191_p2), %v9110_v30 }
 0x9ad   :  { %82 = sbr.rel (!%p8191_p2) target bundleno = 43 (0x2b), region = 63 }
 0x9ae   : > { %v3303_v48 = vpop.permute.xlu0 %3302 }
 0x9af   : > { %vm3321_vm13 = vcmp.eq.s32.totalorder %v3303_v48, 1  ;;  %v9160_v48 = vmov %v9133_v5 }
 0x9b0   : > { %v3337_v32 = vsel %vm3321_vm13, %v3224_v6, %v9142_v33   ;;  %v3353_v52 = vsel %vm3321_vm13, %v3160_v3, %v2555_v39   ;;  %v9147_v6 = vmov %v8001_v18  ;;  %v9151_v39 = vmov %v3336_v17 }
 0x9b1   : > { %v9150_v38 = vmov %v3337_v32  ;;  %v9164_v33 = vmov %v9110_v30  ;;  %v9167_v36 = vmov (%p8191_p2), %v3337_v32  ;;  %v9170_v39 = vmov (%p8191_p2), %v9135_v28 }
 0x9b2   :  { %v9169_v38 = vmov %v3335_v7  ;;  %v9179_v48 = vmov %v8129_v14 }
 0x9b3 PF:  { %v4155_v34 = vld [vmem:[%s8556_s5 + $0x38] sm:$0xff]  ;;  %v4154_v2 = vld [vmem:[%s8556_s5 + $0x30] sm:$0xff]  ;;  %v4153_v0 = vld [vmem:[%s8556_s5 + $0x28] sm:$0xff]  ;;  %v5513_v50 = vphi %v5774_v50, %v9181_v50   ;;  %v5509_v49 = vphi %v5772_v49, %v9180_v49   ;;  %v5505_v48 = vphi %v5770_v48, %v9179_v48   ;;  %v5501_v47 = vphi %v5768_v47, %v9178_v47   ;;  %v5497_v46 = vphi %v5766_v46, %v9177_v46   ;;  %v5493_v45 = vphi %v5764_v45, %v9176_v45   ;;  %v5489_v44 = vphi %v5762_v44, %v9175_v44   ;;  %v5485_v43 = vphi %v5760_v43, %v9174_v43   ;;  %v5481_v42 = vphi %v5758_v42, %v9173_v42   ;;  %v5477_v41 = vphi %v5756_v41, %v9172_v41   ;;  %v5473_v40 = vphi %v5754_v40, %v9171_v40   ;;  %v5469_v39 = vphi %v5752_v39, %v9170_v39   ;;  %v5465_v38 = vphi %v5750_v38, %v9169_v38   ;;  %v5461_v37 = vphi %v5748_v37, %v9168_v37   ;;  %v5457_v36 = vphi %v5746_v36, %v9167_v36   ;;  %v5453_v35 = vphi %v5744_v35, %v9166_v35  }
 0x9b4   :  { %3487 = vmatpush.bf16.msra.mxu0 %v4155_v34  ;;  %4323 = vmatpush.bf16.msra.mxu2 %v4155_v34  ;;  %v4152_v23 = vld [vmem:[%s8556_s5 + $0x20] sm:$0xff]  ;;  %v4151_v26 = vld [vmem:[%s8556_s5 + $0x18] sm:$0xff]  ;;  %v4150_v12 = vld [vmem:[%s8556_s5 + $0x10] sm:$0xff] }
 0x9b5   :  { %v4149_v57 = vld [vmem:[%s8556_s5 + $0x8] sm:$0xff]  ;;  %v4148_v60 = vld [vmem:[%s8556_s5] sm:$0xff]  ;;  %v4163_v9 = vld [vmem:[%s8558_s7 + $0x38] sm:$0xff] }
 0x9b6   :  { %v4140_v62 = vld [vmem:[%s8554_s3] sm:$0xff]  ;;  %v4141_v18 = vld [vmem:[%s8554_s3 + $0x8] sm:$0xff]  ;;  %3628 = vmatpush.bf16.msra.mxu1 %v4163_v9  ;;  %v4162_v56 = vld [vmem:[%s8558_s7 + $0x30] sm:$0xff]  ;;  %4331 = vmatpush.bf16.msra.mxu3 %v4163_v9 }
 0x9b7   :  { %v4144_v61 = vld [vmem:[%s8554_s3 + $0x20] sm:$0xff]  ;;  %v4145_v58 = vld [vmem:[%s8554_s3 + $0x28] sm:$0xff]  ;;  %v4142_v30 = vld [vmem:[%s8554_s3 + $0x10] sm:$0xff] }
 0x9b8   :  { %3488 = vmatpush.bf16.msra.mxu0 %v4154_v2  ;;  %4324 = vmatpush.bf16.msra.mxu2 %v4154_v2  ;;  %v4161_v55 = vld [vmem:[%s8558_s7 + $0x28] sm:$0xff]  ;;  %v4160_v25 = vld [vmem:[%s8558_s7 + $0x20] sm:$0xff]  ;;  %v4146_v13 = vld [vmem:[%s8554_s3 + $0x30] sm:$0xff] }
 0x9b9   :  { %v4159_v11 = vld [vmem:[%s8558_s7 + $0x18] sm:$0xff]  ;;  %v4158_v14 = vld [vmem:[%s8558_s7 + $0x10] sm:$0xff]  ;;  %v4157_v16 = vld [vmem:[%s8558_s7 + $0x8] sm:$0xff] }
 0x9ba   :  { %3629 = vmatpush.bf16.msra.mxu1 %v4162_v56  ;;  %4332 = vmatpush.bf16.msra.mxu3 %v4162_v56  ;;  %v4143_v8 = vld [vmem:[%s8554_s3 + $0x18] sm:$0xff]  ;;  %v4156_v29 = vld [vmem:[%s8558_s7] sm:$0xff]  ;;  %v9182_v59 = vld [vmem:[#allocation22_spill] sm:$0xff] }
 0x9bb   :  { %v4147_v3 = vld [vmem:[%s8554_s3 + $0x38] sm:$0xff]  ;;  %v5121_v20 = vld [vmem:[%s8557_s6] ss:$0 sm:$0xff]  ;;  %vm9183_vm3 = vcmp.ge.s32.totalorder %v9182_v59, 96 }
 0x9bc   :  { %3489 = vmatpush.bf16.msra.mxu0 %v4153_v0  ;;  %4325 = vmatpush.bf16.msra.mxu2 %v4153_v0  ;;  %vm9184_vm4 = vmmov %vm9183_vm3 }
 0x9bd   :  { %vm9185_vm1 = vmmov %vm9183_vm3 }
 0x9be   :  { %3630 = vmatpush.bf16.msra.mxu1 %v4161_v55  ;;  %4333 = vmatpush.bf16.msra.mxu3 %v4161_v55  ;;  %vm9186_vm12 = vmmov %vm9185_vm1 }
 0x9bf   :  { %vm9187_vm5 = vmmov %vm9185_vm1 }
 0x9c0   :  { %3490 = vmatpush.bf16.msra.mxu0 %v4152_v23  ;;  %4326 = vmatpush.bf16.msra.mxu2 %v4152_v23  ;;  %vm9188_vm14 = vmmov %vm9185_vm1 }
 0x9c1   :  { %vm9189_vm15 = vmmov %vm9185_vm1 }
 0x9c2   :  { %3631 = vmatpush.bf16.msra.mxu1 %v4160_v25  ;;  %4334 = vmatpush.bf16.msra.mxu3 %v4160_v25  ;;  %vm9190_vm11 = vmmov %vm9185_vm1 }
 0x9c3   :  { %vm9191_vm8 = vmmov %vm9185_vm1 }
 0x9c4   :  { %3491 = vmatpush.bf16.msra.mxu0 %v4151_v26  ;;  %4327 = vmatpush.bf16.msra.mxu2 %v4151_v26  ;;  %vm9192_vm10 = vmmov %vm9185_vm1 }
 0x9c5   :  { %vm9193_vm7 = vmmov %vm9185_vm1 }
 0x9c6   :  { %3632 = vmatpush.bf16.msra.mxu1 %v4159_v11  ;;  %4335 = vmatpush.bf16.msra.mxu3 %v4159_v11  ;;  %vm9194_vm2 = vmmov %vm9185_vm1 }
 0x9c7   :  { %vm9195_vm9 = vmmov %vm9185_vm1 }
 0x9c8   :  { %3492 = vmatpush.bf16.msra.mxu0 %v4150_v12  ;;  %4328 = vmatpush.bf16.msra.mxu2 %v4150_v12  ;;  %vm9196_vm6 = vmmov %vm9185_vm1 }
 0x9c9   :  { %vm9197_vm0 = vmmov %vm9185_vm1 }
 0x9ca   :  { %3633 = vmatpush.bf16.msra.mxu1 %v4158_v14  ;;  %4336 = vmatpush.bf16.msra.mxu3 %v4158_v14  ;;  %vm9198_vm13 = vmmov %vm9197_vm0 }
 0x9cc   :  { %3493 = vmatpush.bf16.msra.mxu0 %v4149_v57  ;;  %4329 = vmatpush.bf16.msra.mxu2 %v4149_v57 }
 0x9ce   :  { %3634 = vmatpush.bf16.msra.mxu1 %v4157_v16  ;;  %4337 = vmatpush.bf16.msra.mxu3 %v4157_v16 }
 0x9d0   :  { %3494 = vmatpush.bf16.msra.mxu0 %v4148_v60  ;;  %4330 = vmatpush.bf16.msra.mxu2 %v4148_v60 }
 0x9d2   :  { %3635 = vmatpush.bf16.msra.mxu1 %v4156_v29  ;;  %4338 = vmatpush.bf16.msra.mxu3 %v4156_v29 }
 0x9d3   :  { %3495 = vmatmul.bf16.vlgmr.msra.gmra.mxu0 %v4140_v62  ;;  %3515 = vmatmul.bf16.vlgmr.msra.gmra.mxu2 %v4144_v61 }
 0x9e3   :  { %3500 = vmatmul.bf16.gmra.mxu0 %v4141_v18  ;;  %3520 = vmatmul.bf16.gmra.mxu2 %v4145_v58 }
 0x9f3   :  { %3505 = vmatmul.bf16.gmra.mxu0 %v4142_v30  ;;  %3525 = vmatmul.bf16.gmra.mxu2 %v4146_v13 }
 0xa03   :  { %3510 = vmatmul.bf16.gmra.mxu0 %v4143_v8  ;;  %3530 = vmatmul.bf16.gmra.mxu2 %v4147_v3 }
 0xa50   :  { %v3496_v27 = vpop.f32.mrf.mxu0 }
 0xa51   :  { %v3497_v54 = vadd.f32 %v5121_v20, %v3496_v27 }
 0xa53   :  { %v3536_v28 = vsel %vm9183_vm3, %v5513_v50, %v3497_v54 }
 0xa56   :  { %v3516_v63 = vpop.f32.mrf.mxu2 }
 0xa57   :  { %v3517_v4 = vadd.f32 %v5121_v20, %v3516_v63 }
 0xa58   :  { %v3498_v5 = vpop.f32.mrf.mxu0 }
 0xa59   :  { %v3499_v51 = vadd.f32 %v5121_v20, %v3498_v5  ;;  %v3544_v7 = vsel %vm9185_vm1, %v5481_v42, %v3517_v4 }
 0xa5b   :  { %v3537_v22 = vsel %vm9184_vm4, %v5509_v49, %v3499_v51 }
 0xa5c   :  { %v3552_v21 = vpack.c.bf16 %v3537_v22, %v3536_v28 }
 0xa5e   :  { %v3518_v10 = vpop.f32.mrf.mxu2  ;;  %3636 = vmatmul.bf16.vlgmr.msra.gmra.mxu1 %v3552_v21 }
 0xa5f   :  { %v3519_v52 = vadd.f32 %v5121_v20, %v3518_v10 }
 0xa60   :  { %v3501_v15 = vpop.f32.mrf.mxu0 }
 0xa61   :  { %v3545_v19 = vsel %vm9186_vm12, %v5477_v41, %v3519_v52  ;;  %v3502_v31 = vadd.f32 %v5121_v20, %v3501_v15 }
 0xa62   :  { %v3556_v53 = vpack.c.bf16 %v3545_v19, %v3544_v7 }
 0xa63   :  { %v3538_v49 = vsel %vm9187_vm5, %v5505_v48, %v3502_v31 }
 0xa64   :  { %3656 = vmatmul.bf16.vlgmr.msra.gmra.mxu3 %v3556_v53 }
 0xa66   :  { %v3521_v50 = vpop.f32.mrf.mxu2 }
 0xa67   :  { %v3522_v42 = vadd.f32 %v5121_v20, %v3521_v50 }
 0xa68   :  { %v3503_v17 = vpop.f32.mrf.mxu0 }
 0xa69   :  { %v3504_v24 = vadd.f32 %v5121_v20, %v3503_v17  ;;  %v3546_v34 = vsel %vm9189_vm15, %v5473_v40, %v3522_v42 }
 0xa6b   :  { %v3539_v1 = vsel %vm9188_vm14, %v5501_v47, %v3504_v24 }
 0xa6c   :  { %v3553_v6 = vpack.c.bf16 %v3539_v1, %v3538_v49 }
 0xa6e   :  { %v3523_v33 = vpop.f32.mrf.mxu2  ;;  %3641 = vmatmul.bf16.gmra.mxu1 %v3553_v6 }
 0xa6f   :  { %v3524_v32 = vadd.f32 %v5121_v20, %v3523_v33 }
 0xa70   :  { %v3506_v41 = vpop.f32.mrf.mxu0 }
 0xa71   :  { %v3547_v2 = vsel %vm9190_vm11, %v5469_v39, %v3524_v32  ;;  %v3507_v0 = vadd.f32 %v5121_v20, %v3506_v41 }
 0xa72   :  { %v3557_v48 = vpack.c.bf16 %v3547_v2, %v3546_v34 }
 0xa73   :  { %v3540_v47 = vsel %vm9191_vm8, %v5497_v46, %v3507_v0 }
 0xa74   :  { %3661 = vmatmul.bf16.gmra.mxu3 %v3557_v48 }
 0xa76   :  { %v3526_v23 = vpop.f32.mrf.mxu2 }
 0xa77   :  { %v3527_v40 = vadd.f32 %v5121_v20, %v3526_v23 }
 0xa78   :  { %v3508_v26 = vpop.f32.mrf.mxu0 }
 0xa79   :  { %v3509_v12 = vadd.f32 %v5121_v20, %v3508_v26  ;;  %v3548_v18 = vsel %vm9193_vm7, %v5465_v38, %v3527_v40 }
 0xa7b   :  { %v3541_v57 = vsel %vm9192_vm10, %v5493_v45, %v3509_v12 }
 0xa7c   :  { %v3554_v60 = vpack.c.bf16 %v3541_v57, %v3540_v47 }
 0xa7e   :  { %v3528_v62 = vpop.f32.mrf.mxu2  ;;  %3646 = vmatmul.bf16.gmra.mxu1 %v3554_v60 }
 0xa7f   :  { %v3529_v61 = vadd.f32 %v5121_v20, %v3528_v62 }
 0xa80   :  { %v3511_v39 = vpop.f32.mrf.mxu0 }
 0xa81   :  { %v3549_v58 = vsel %vm9194_vm2, %v5461_v37, %v3529_v61  ;;  %v3512_v9 = vadd.f32 %v5121_v20, %v3511_v39 }
 0xa82   :  { %v3558_v46 = vpack.c.bf16 %v3549_v58, %v3548_v18 }
 0xa83   :  { %v3542_v45 = vsel %vm9195_vm9, %v5489_v44, %v3512_v9  ;;  %v5122_v44 = vld [vmem:[%s8559_s8] ss:$0 sm:$0xff] }
 0xa84   :  { %3666 = vmatmul.bf16.gmra.mxu3 %v3558_v46 }
 0xa86   :  { %v3531_v56 = vpop.f32.mrf.mxu2 }
 0xa87   :  { %v3532_v38 = vadd.f32 %v5121_v20, %v3531_v56 }
 0xa88   :  { %v3513_v55 = vpop.f32.mrf.mxu0 }
 0xa89   :  { %v3514_v25 = vadd.f32 %v5121_v20, %v3513_v55  ;;  %v3550_v37 = vsel %vm9197_vm0, %v5457_v36, %v3532_v38 }
 0xa8b   :  { %v3543_v30 = vsel %vm9196_vm6, %v5485_v43, %v3514_v25 }
 0xa8c   :  { %v3555_v13 = vpack.c.bf16 %v3543_v30, %v3542_v45 }
 0xa8e   :  { %v3533_v11 = vpop.f32.mrf.mxu2  ;;  %3651 = vmatmul.bf16.gmra.mxu1 %v3555_v13 }
 0xa8f   :  { %v3534_v8 = vadd.f32 %v5121_v20, %v3533_v11 }
 0xa91   :  { %v3551_v3 = vsel %vm9198_vm13, %v5453_v35, %v3534_v8 }
 0xa92   :  { %v3559_v14 = vpack.c.bf16 %v3551_v3, %v3550_v37 }
 0xa94   :  { %3671 = vmatmul.bf16.gmra.mxu3 %v3559_v14 }
 0xadb   :  { %v3637_v43 = vpop.f32.mrf.mxu1 }
 0xadc   :  { %v3638_v16 = vadd.f32 %v5122_v44, %v3637_v43 }
 0xade   :  { %3677 = vst [vmem:[%s8560_s9] sm:$0xff] %v3638_v16 }
 0xae3   :  { %v3639_v29 = vpop.f32.mrf.mxu1 }
 0xae4   :  { %v3640_v27 = vadd.f32 %v5122_v44, %v3639_v29 }
 0xae6   :  { %3678 = vst [vmem:[%s8560_s9 + $0x8] sm:$0xff] %v3640_v27 }
 0xae7   :  { %v3657_v36 = vpop.f32.mrf.mxu3 }
 0xae8   :  { %v3658_v35 = vadd.f32 %v5122_v44, %v3657_v36 }
 0xaea   :  { %3685 = vst [vmem:[%s8560_s9 + $0x40] sm:$0xff] %v3658_v35 }
 0xaeb   :  { %v3642_v20 = vpop.f32.mrf.mxu1 }
 0xaec   :  { %v3643_v54 = vadd.f32 %v5122_v44, %v3642_v20 }
 0xaee   :  { %3679 = vst [vmem:[%s8560_s9 + $0x10] sm:$0xff] %v3643_v54 }
 0xaef   :  { %v3659_v63 = vpop.f32.mrf.mxu3 }
 0xaf0   :  { %v3660_v5 = vadd.f32 %v5122_v44, %v3659_v63 }
 0xaf2   :  { %3686 = vst [vmem:[%s8560_s9 + $0x48] sm:$0xff] %v3660_v5 }
 0xaf3   :  { %v3644_v59 = vpop.f32.mrf.mxu1 }
 0xaf4   :  { %v3645_v28 = vadd.f32 %v5122_v44, %v3644_v59 }
 0xaf6   :  { %3680 = vst [vmem:[%s8560_s9 + $0x18] sm:$0xff] %v3645_v28 }
 0xaf7   :  { %v3662_v51 = vpop.f32.mrf.mxu3 }
 0xaf8   :  { %v3663_v22 = vadd.f32 %v5122_v44, %v3662_v51 }
 0xafa   :  { %3687 = vst [vmem:[%s8560_s9 + $0x50] sm:$0xff] %v3663_v22 }
 0xafb   :  { %v3647_v21 = vpop.f32.mrf.mxu1 }
 0xafc   :  { %v3648_v4 = vadd.f32 %v5122_v44, %v3647_v21 }
 0xafe   :  { %3681 = vst [vmem:[%s8560_s9 + $0x20] sm:$0xff] %v3648_v4 }
 0xaff   :  { %v3664_v10 = vpop.f32.mrf.mxu3 }
 0xb00   :  { %v3665_v52 = vadd.f32 %v5122_v44, %v3664_v10 }
 0xb02   :  { %3688 = vst [vmem:[%s8560_s9 + $0x58] sm:$0xff] %v3665_v52 }
 0xb03   :  { %v3649_v15 = vpop.f32.mrf.mxu1 }
 0xb04   :  { %v3650_v7 = vadd.f32 %v5122_v44, %v3649_v15 }
 0xb06   :  { %3682 = vst [vmem:[%s8560_s9 + $0x28] sm:$0xff] %v3650_v7 }
 0xb07   :  { %v3667_v19 = vpop.f32.mrf.mxu3 }
 0xb08   :  { %v3668_v53 = vadd.f32 %v5122_v44, %v3667_v19 }
 0xb0a   :  { %3689 = vst [vmem:[%s8560_s9 + $0x60] sm:$0xff] %v3668_v53 }
 0xb0b   :  { %v3652_v31 = vpop.f32.mrf.mxu1 }
 0xb0c   :  { %v3653_v50 = vadd.f32 %v5122_v44, %v3652_v31 }
 0xb0e   :  { %3683 = vst [vmem:[%s8560_s9 + $0x30] sm:$0xff] %v3653_v50 }
 0xb0f   :  { %v3669_v17 = vpop.f32.mrf.mxu3 }
 0xb10   :  { %v3670_v49 = vadd.f32 %v5122_v44, %v3669_v17 }
 0xb12   :  { %3690 = vst [vmem:[%s8560_s9 + $0x68] sm:$0xff] %v3670_v49 }
 0xb13   :  { %v3654_v24 = vpop.f32.mrf.mxu1 }
 0xb14   :  { %v3655_v1 = vadd.f32 %v5122_v44, %v3654_v24 }
 0xb16   :  { %3684 = vst [vmem:[%s8560_s9 + $0x38] sm:$0xff] %v3655_v1 }
 0xb17   :  { %v3672_v6 = vpop.f32.mrf.mxu3 }
 0xb18   :  { %v3673_v42 = vadd.f32 %v5122_v44, %v3672_v6 }
 0xb1a   :  { %3691 = vst [vmem:[%s8560_s9 + $0x70] sm:$0xff] %v3673_v42 }
 0xb1f   :  { %v3674_v33 = vpop.f32.mrf.mxu3 }
 0xb20   :  { %v3675_v32 = vadd.f32 %v5122_v44, %v3674_v33 }
 0xb22   :  { %3692 = vst [vmem:[%s8560_s9 + $0x78] sm:$0xff] %v3675_v32 }

</bundles_post_ra>
